<compile_context>
chip_gen: v7x
topology: tpu7x:2x2x1
jax: 0.10.0
libtpu: 0.0.40
codegen_flags: <defaults>
</compile_context>

<pallas_src>
import functools

import jax
import jax.numpy as jnp
from jax.experimental import pallas as pl
from jax.experimental.pallas import tpu as pltpu  # noqa: F401  (TPU backend)

PAD = 0  # s2s.Constants.PAD

# ---------------- config (small synthetic shapes) ----------------
SRC_LEN = 8
TGT_LEN = 7            # decoder runs TGT_LEN - 1 = 6 steps (tgt[:-1])
BATCH = 2
V_SRC, V_TGT, V_BIO, V_FEAT = 50, 40, 5, 8
N_FEAT = 2
WORD_VEC, BIO_VEC, FEAT_VEC = 16, 8, 8
ENC_HID = 16                      # per direction
ENC_RNN = 2 * ENC_HID             # bidirectional output size (32)
DEC_RNN = 32
ATT_VEC = 32
POOL = 2                          # maxout pool size
ENC_IN = WORD_VEC + BIO_VEC + N_FEAT * FEAT_VEC   # 40
DEC_IN = WORD_VEC + ENC_RNN                       # 48 (input feed)


# ---------------- shared GRU gate math (PyTorch gate order r, z, n) ----------------
def _gru_gates(gi, gh, h, hid):
    r = jax.nn.sigmoid(gi[:, :hid] + gh[:, :hid])
    z = jax.nn.sigmoid(gi[:, hid:2 * hid] + gh[:, hid:2 * hid])
    n = jnp.tanh(gi[:, 2 * hid:] + r * gh[:, 2 * hid:])
    return (1.0 - z) * n + z * h


# ---------------- kernel 1: fused bidirectional GRU encoder + decIniter ----------------
def _encoder_kernel(x_ref, wih_ref, bih_ref, whh_ref, bhh_ref, diw_ref, dib_ref,
                    ctx_ref, h0_ref, *, seq_len, batch, hid):
    H = hid
    # Hoisted input projection for BOTH directions: one MXU push for all timesteps.
    gi_all = (jnp.dot(x_ref[...], wih_ref[...], preferred_element_type=jnp.float32)
              + bih_ref[...])                                     # (S*B, 6H)
    h_cat = jnp.zeros((batch, 2 * H), jnp.float32)                # [h_fwd | h_bwd]

    for t in range(seq_len):                                      # fully unrolled
        rev = seq_len - 1 - t
        # One block-diagonal recurrent matmul drives both directions.
        gh_all = (jnp.dot(h_cat, whh_ref[...], preferred_element_type=jnp.float32)
                  + bhh_ref[...])                                 # (B, 6H)
        gi_f = gi_all[t * batch:(t + 1) * batch, :3 * H]
        gi_b = gi_all[rev * batch:(rev + 1) * batch, 3 * H:]
        h_f = _gru_gates(gi_f, gh_all[:, :3 * H], h_cat[:, :H], H)
        h_b = _gru_gates(gi_b, gh_all[:, 3 * H:], h_cat[:, H:], H)
        ctx_ref[t, :, :H] = h_f                                   # forward output at t
        ctx_ref[rev, :, H:] = h_b                                 # backward output at rev
        h_cat = jnp.concatenate([h_f, h_b], axis=-1)

    # decIniter(enc_hidden[1]) = tanh-linear of the backward final hidden state.
    h0_ref[...] = jnp.tanh(
        jnp.dot(h_cat[:, H:], diw_ref[...], preferred_element_type=jnp.float32)
        + dib_ref[...])


def encoder_call(x_flat, p):
    SB = x_flat.shape[0]
    S = SB // BATCH
    return pl.pallas_call(
        functools.partial(_encoder_kernel, seq_len=S, batch=BATCH, hid=ENC_HID),
        out_shape=(jax.ShapeDtypeStruct((S, BATCH, ENC_RNN), jnp.float32),
                   jax.ShapeDtypeStruct((BATCH, DEC_RNN), jnp.float32)),
    )(x_flat, p["enc_wih_cat"], p["enc_bih_cat"], p["enc_whh_blk"], p["enc_bhh_cat"],
      p["di_w"], p["di_b"])


# ---------------- kernel 2: fused decoder (attention precompute + T unrolled steps) ----
def _decoder_kernel(emb_ref, ctx_ref, mask_ref, h0_ref,
                    embw_ref, embb_ref, wihc_ref, whh_ref, bhh_ref,
                    wpre_ref, bpre_ref, wq_ref, wv_ref, wpost_ref, bpost_ref,
                    out_ref, *, steps, batch, dhid, ehid, pool):
    D, B = dhid, batch
    ctx = ctx_ref[...]                                   # (B, S, E), batch-major
    mask = mask_ref[...]                                 # (B, S)
    keep = 1.0 - mask
    neg = mask * (-1000000.0)
    wv = wv_ref[...]                                     # (1, A)

    # Hoisted embedding projection: GRU input gates (3D) + readout emb part (D).
    emb_proj = (jnp.dot(emb_ref[...], embw_ref[...], preferred_element_type=jnp.float32)
                + embb_ref[...])                         # (T*B, 4D)

    # Attention precompute (folded linear_pre); per batch row to stay 2-D.
    pre = jnp.stack(
        [jnp.dot(ctx[b], wpre_ref[...], preferred_element_type=jnp.float32) + bpre_ref[...]
         for b in range(B)], axis=0)                     # (B, S, A)

    h = h0_ref[...]                                      # (B, D)  decIniter output
    cur_ctx = jnp.zeros((B, ehid), jnp.float32)          # make_init_att zeros
    Dp = D // pool

    for t in range(steps):                               # fully unrolled
        blk = emb_proj[t * B:(t + 1) * B, :]             # (B, 4D)

        # StackedGRU (1 layer) with input feed; emb part of gi already hoisted.
        gi = blk[:, :3 * D] + jnp.dot(cur_ctx, wihc_ref[...],
                                      preferred_element_type=jnp.float32)
        gh = jnp.dot(h, whh_ref[...], preferred_element_type=jnp.float32) + bhh_ref[...]
        h_new = _gru_gates(gi, gh, h, D)                 # (B, D)

        # Concat attention.
        q = jnp.dot(h_new, wq_ref[...], preferred_element_type=jnp.float32)   # (B, A)
        tmp = jnp.tanh(pre + q[:, None, :])                                   # (B, S, A)
        energy = jnp.sum(tmp * wv[None, :, :], axis=-1)                       # (B, S)
        energy = energy * keep + neg
        emax = jnp.max(energy, axis=-1, keepdims=True)
        eexp = jnp.exp(energy - emax)
        score = eexp * pl.reciprocal(jnp.sum(eexp, axis=-1, keepdims=True), approx=True)
        new_ctx = jnp.sum(score[:, :, None] * ctx, axis=1)                    # (B, E)

        # Merged readout + copy-switch matmul on [h_new ; new_ctx].
        post = (jnp.dot(jnp.concatenate([h_new, new_ctx], axis=-1), wpost_ref[...],
                        preferred_element_type=jnp.float32) + bpost_ref[...])  # (B, D+1)
        ro = blk[:, 3 * D:] + post[:, :D]            # readout (columns maxout-permuted)
        copy_prob = jax.nn.sigmoid(post[:, D:D + 1])                           # (B, 1)

        # Maxout: columns were permuted offline so pool partners are D/pool apart.
        maxout = ro[:, :Dp]
        for k in range(1, pool):
            maxout = jnp.maximum(maxout, ro[:, k * Dp:(k + 1) * Dp])

        # Single packed store per step: [maxout | attn score | copy prob].
        out_ref[t] = jnp.concatenate([maxout, score, copy_prob], axis=-1)

        h = h_new
        cur_ctx = new_ctx


def decoder_call(tgt_emb_flat, ctx_bse, mask, h0, p, steps):
    B, S, E = ctx_bse.shape
    D = DEC_RNN
    out_w = D // POOL + S + 1
    return pl.pallas_call(
        functools.partial(_decoder_kernel, steps=steps, batch=B, dhid=D, ehid=E, pool=POOL),
        out_shape=jax.ShapeDtypeStruct((steps, B, out_w), jnp.float32),
    )(tgt_emb_flat, ctx_bse, mask, h0,
      p["dec_emb_w"], p["dec_emb_b"], p["dec_wih_ctx"], p["dec_whh"], p["dec_bhh"],
      p["att_wpre"], p["att_bpre"], p["att_wq"], p["att_wv"],
      p["dec_w_post"], p["dec_b_post"])


# ---------------- NMTModel.forward (JAX glue: embeddings + 2 fused kernels) ----------
def nmt_forward(params, src_ids, bio_ids, feat_ids, tgt_ids):
    # src_ids: (S, B) int32; bio_ids: (S, B); feat_ids: (N_FEAT, S, B); tgt_ids: (T, B)
    # TODO(synk): variable-length pack/unpack semantics not implemented; all
    # sequences are assumed full length (no PAD), which makes it exact here.
    S, B = src_ids.shape

    # encoder embeddings (glue)
    word_e = jnp.take(params["enc_word_emb"], src_ids, axis=0)       # (S, B, 16)
    bio_e = jnp.take(params["bio_emb"], bio_ids, axis=0)             # (S, B, 8)
    feat_e = [jnp.take(params["feat_emb"], feat_ids[i], axis=0) for i in range(N_FEAT)]
    x = jnp.concatenate([word_e, bio_e] + feat_e, axis=-1)           # (S, B, 40)
    x_flat = x.reshape(S * B, ENC_IN)

    # fused bidirectional GRU encoder + decIniter (Pallas, 1 launch)
    ctx_sbe, dec_h0 = encoder_call(x_flat, params)                   # (S,B,32), (B,32)
    ctx_bse = jnp.transpose(ctx_sbe, (1, 0, 2))                      # (B, S, 32)
    src_pad_mask = (src_ids == PAD).T.astype(jnp.float32)            # (B, S)

    # fused decoder over tgt[:-1] (Pallas, 1 launch)
    tgt_in = tgt_ids[:-1]
    T = tgt_in.shape[0]
    tgt_emb = jnp.take(params["dec_word_emb"], tgt_in, axis=0).reshape(T * B, WORD_VEC)
    packed = decoder_call(tgt_emb, ctx_bse, src_pad_mask, dec_h0, params, T)

    gp = DEC_RNN // POOL
    g_out = packed[..., :gp]                                         # (T, B, 16)
    c_out = packed[..., gp:gp + S]                                   # (T, B, S)
    cg_out = packed[..., gp + S:]                                    # (T, B, 1)
    return g_out, c_out, cg_out, src_ids


# ---------------- parameter init (raw, module-style) + offline weight fusion ----------
def init_params(key):
    ks = list(jax.random.split(key, 32))
    it = iter(ks)

    def u(shape, scale=0.1):
        return jax.random.uniform(next(it), shape, jnp.float32, -scale, scale)

    p = {}
    p["enc_word_emb"] = u((V_SRC, WORD_VEC)).at[PAD].set(0.0)
    p["bio_emb"] = u((V_BIO, BIO_VEC)).at[PAD].set(0.0)
    p["feat_emb"] = u((V_FEAT, FEAT_VEC)).at[PAD].set(0.0)
    p["enc_wih_f"] = u((ENC_IN, 3 * ENC_HID)); p["enc_whh_f"] = u((ENC_HID, 3 * ENC_HID))
    p["enc_bih_f"] = u((1, 3 * ENC_HID));      p["enc_bhh_f"] = u((1, 3 * ENC_HID))
    p["enc_wih_b"] = u((ENC_IN, 3 * ENC_HID)); p["enc_whh_b"] = u((ENC_HID, 3 * ENC_HID))
    p["enc_bih_b"] = u((1, 3 * ENC_HID));      p["enc_bhh_b"] = u((1, 3 * ENC_HID))
    p["di_w"] = u((ENC_HID, DEC_RNN));         p["di_b"] = u((1, DEC_RNN))
    p["dec_word_emb"] = u((V_TGT, WORD_VEC)).at[PAD].set(0.0)
    p["dec_wih"] = u((DEC_IN, 3 * DEC_RNN));   p["dec_whh"] = u((DEC_RNN, 3 * DEC_RNN))
    p["dec_bih"] = u((1, 3 * DEC_RNN));        p["dec_bhh"] = u((1, 3 * DEC_RNN))
    p["att_wpre"] = u((ENC_RNN, ATT_VEC));     p["att_bpre"] = u((1, ATT_VEC))
    p["att_wq"] = u((DEC_RNN, ATT_VEC));       p["att_wv"] = u((1, ATT_VEC))
    p["cs_w"] = u((DEC_RNN + ENC_RNN, 1));     p["cs_b"] = u((1, 1))
    p["ro_w"] = u((WORD_VEC + DEC_RNN + ENC_RNN, DEC_RNN))
    p["ro_b"] = u((1, DEC_RNN))
    return p


def fuse_params(p):
    """One-time (offline) weight packing/permutation used by the fused kernels."""
    H, D, wv = ENC_HID, DEC_RNN, WORD_VEC
    f = {k: p[k] for k in ("enc_word_emb", "bio_emb", "feat_emb", "dec_word_emb",
                           "di_w", "di_b", "dec_whh", "dec_bhh",
                           "att_wpre", "att_bpre", "att_wq", "att_wv")}

    # Encoder: both directions' input projections side by side; recurrent weights block-diag.
    f["enc_wih_cat"] = jnp.concatenate([p["enc_wih_f"], p["enc_wih_b"]], axis=1)
    f["enc_bih_cat"] = jnp.concatenate([p["enc_bih_f"], p["enc_bih_b"]], axis=1)
    whh_blk = jnp.zeros((2 * H, 6 * H), jnp.float32)
    whh_blk = whh_blk.at[:H, :3 * H].set(p["enc_whh_f"]).at[H:, 3 * H:].set(p["enc_whh_b"])
    f["enc_whh_blk"] = whh_blk
    f["enc_bhh_cat"] = jnp.concatenate([p["enc_bhh_f"], p["enc_bhh_b"]], axis=1)

    # Decoder: permute readout columns so maxout partners sit D/POOL apart.
    perm = jnp.concatenate([jnp.arange(k, D, POOL) for k in range(POOL)])
    ro_w_p = p["ro_w"][:, perm]
    ro_b_p = p["ro_b"][:, perm]

    # Hoisted embedding projection: [W_ih(emb rows) | W_ro(emb rows, permuted)].
    f["dec_emb_w"] = jnp.concatenate([p["dec_wih"][:wv, :], ro_w_p[:wv, :]], axis=1)
    f["dec_emb_b"] = jnp.concatenate([p["dec_bih"], ro_b_p], axis=1)
    f["dec_wih_ctx"] = p["dec_wih"][wv:, :]                       # (E, 3D)

    # Merged per-step weight on [h_new ; ctx]: columns = [readout (D, permuted) | copySwitch (1)].
    f["dec_w_post"] = jnp.concatenate([
        jnp.concatenate([ro_w_p[wv:wv + D, :], p["cs_w"][:D, :]], axis=1),
        jnp.concatenate([ro_w_p[wv + D:, :], p["cs_w"][D:, :]], axis=1)], axis=0)  # (D+E, D+1)
    f["dec_b_post"] = jnp.concatenate([jnp.zeros((1, D), jnp.float32), p["cs_b"]], axis=1)
    return f


if __name__ == "__main__":
    key = jax.random.PRNGKey(0)
    pkey, k1, k2, k3, k4 = jax.random.split(key, 5)
    params = fuse_params(init_params(pkey))

    # ids start at 1 so no PAD tokens (full-length sequences)
    src_ids = jax.random.randint(k1, (SRC_LEN, BATCH), 1, V_SRC, dtype=jnp.int32)
    bio_ids = jax.random.randint(k2, (SRC_LEN, BATCH), 1, V_BIO, dtype=jnp.int32)
    feat_ids = jax.random.randint(k3, (N_FEAT, SRC_LEN, BATCH), 1, V_FEAT, dtype=jnp.int32)
    tgt_ids = jax.random.randint(k4, (TGT_LEN, BATCH), 1, V_TGT, dtype=jnp.int32)

    g_out, c_out, cg_out, src_words = jax.jit(nmt_forward)(
        params, src_ids, bio_ids, feat_ids, tgt_ids)
    jax.block_until_ready((g_out, c_out, cg_out, src_words))

    assert g_out.shape == (TGT_LEN - 1, BATCH, DEC_RNN // POOL)
    assert c_out.shape == (TGT_LEN - 1, BATCH, SRC_LEN)
    assert cg_out.shape == (TGT_LEN - 1, BATCH, 1)
    assert src_words.shape == (SRC_LEN, BATCH)
    assert bool(jnp.all(jnp.isfinite(g_out)))
    assert bool(jnp.all(jnp.isfinite(c_out)))
    print("KERNEL_OK")
</pallas_src>

<mosaic_0001>
module attributes {stable_mosaic.version = 11 : i64} {
  func.func @_encoder_kernel(%arg0: memref<16x40xf32, #tpu.memory_space<vmem>>, %arg1: memref<40x96xf32, #tpu.memory_space<vmem>>, %arg2: memref<1x96xf32, #tpu.memory_space<vmem>>, %arg3: memref<32x96xf32, #tpu.memory_space<vmem>>, %arg4: memref<1x96xf32, #tpu.memory_space<vmem>>, %arg5: memref<16x32xf32, #tpu.memory_space<vmem>>, %arg6: memref<1x32xf32, #tpu.memory_space<vmem>>, %arg7: memref<8x2x32xf32, #tpu.memory_space<vmem>>, %arg8: memref<2x32xf32, #tpu.memory_space<vmem>>) attributes {dimension_semantics = [], scalar_prefetch = 0 : i64, scratch_operands = 0 : i64, tpu.core_type = #tpu.core_type<tc>} {
    %c0 = arith.constant 0 : index
    %c0_0 = arith.constant 0 : index
    %0 = vector.load %arg0[%c0, %c0_0] : memref<16x40xf32, #tpu.memory_space<vmem>>, vector<16x40xf32>
    %c0_1 = arith.constant 0 : index
    %c0_2 = arith.constant 0 : index
    %1 = vector.load %arg1[%c0_1, %c0_2] : memref<40x96xf32, #tpu.memory_space<vmem>>, vector<40x96xf32>
    %cst = arith.constant dense<0.000000e+00> : vector<16x96xf32>
    %2 = tpu.matmul %0, %1, %cst {dimension_numbers = #tpu.dot_dimension_numbers<[1], [0], [0], [1], [0, 0, 1, 1], [], []>} : vector<16x40xf32>, vector<40x96xf32>, vector<16x96xf32> -> vector<16x96xf32>
    %c0_3 = arith.constant 0 : index
    %c0_4 = arith.constant 0 : index
    %3 = vector.load %arg2[%c0_3, %c0_4] : memref<1x96xf32, #tpu.memory_space<vmem>>, vector<1x96xf32>
    %4 = vector.broadcast %3 : vector<1x96xf32> to vector<16x96xf32>
    %5 = arith.addf %2, %4 : vector<16x96xf32>
    %cst_5 = arith.constant 0.000000e+00 : f32
    %6 = vector.broadcast %cst_5 : f32 to vector<2x32xf32>
    %c0_6 = arith.constant 0 : index
    %c0_7 = arith.constant 0 : index
    %7 = vector.load %arg3[%c0_6, %c0_7] : memref<32x96xf32, #tpu.memory_space<vmem>>, vector<32x96xf32>
    %cst_8 = arith.constant dense<0.000000e+00> : vector<2x96xf32>
    %8 = tpu.matmul %6, %7, %cst_8 {dimension_numbers = #tpu.dot_dimension_numbers<[1], [0], [0], [1], [0, 0, 1, 1], [], []>} : vector<2x32xf32>, vector<32x96xf32>, vector<2x96xf32> -> vector<2x96xf32>
    %c0_9 = arith.constant 0 : index
    %c0_10 = arith.constant 0 : index
    %9 = vector.load %arg4[%c0_9, %c0_10] : memref<1x96xf32, #tpu.memory_space<vmem>>, vector<1x96xf32>
    %10 = vector.broadcast %9 : vector<1x96xf32> to vector<2x96xf32>
    %11 = arith.addf %8, %10 : vector<2x96xf32>
    %12 = vector.extract_strided_slice %5 {offsets = [0, 0], sizes = [2, 48], strides = [1, 1]} : vector<16x96xf32> to vector<2x48xf32>
    %13 = vector.extract_strided_slice %5 {offsets = [14, 48], sizes = [2, 48], strides = [1, 1]} : vector<16x96xf32> to vector<2x48xf32>
    %14 = vector.extract_strided_slice %11 {offsets = [0, 0], sizes = [2, 48], strides = [1, 1]} : vector<2x96xf32> to vector<2x48xf32>
    %15 = vector.extract_strided_slice %6 {offsets = [0, 0], sizes = [2, 16], strides = [1, 1]} : vector<2x32xf32> to vector<2x16xf32>
    %16 = vector.extract_strided_slice %12 {offsets = [0, 0], sizes = [2, 16], strides = [1, 1]} : vector<2x48xf32> to vector<2x16xf32>
    %17 = vector.extract_strided_slice %14 {offsets = [0, 0], sizes = [2, 16], strides = [1, 1]} : vector<2x48xf32> to vector<2x16xf32>
    %18 = arith.addf %16, %17 : vector<2x16xf32>
    %19 = arith.negf %18 : vector<2x16xf32>
    %20 = math.exp %19 : vector<2x16xf32>
    %cst_11 = arith.constant 1.000000e+00 : f32
    %21 = vector.broadcast %cst_11 : f32 to vector<2x16xf32>
    %22 = arith.addf %21, %20 : vector<2x16xf32>
    %23 = arith.divf %21, %22 : vector<2x16xf32>
    %24 = vector.extract_strided_slice %12 {offsets = [0, 16], sizes = [2, 16], strides = [1, 1]} : vector<2x48xf32> to vector<2x16xf32>
    %25 = vector.extract_strided_slice %14 {offsets = [0, 16], sizes = [2, 16], strides = [1, 1]} : vector<2x48xf32> to vector<2x16xf32>
    %26 = arith.addf %24, %25 : vector<2x16xf32>
    %27 = arith.negf %26 : vector<2x16xf32>
    %28 = math.exp %27 : vector<2x16xf32>
    %cst_12 = arith.constant 1.000000e+00 : f32
    %29 = vector.broadcast %cst_12 : f32 to vector<2x16xf32>
    %30 = arith.addf %29, %28 : vector<2x16xf32>
    %31 = arith.divf %29, %30 : vector<2x16xf32>
    %32 = vector.extract_strided_slice %12 {offsets = [0, 32], sizes = [2, 16], strides = [1, 1]} : vector<2x48xf32> to vector<2x16xf32>
    %33 = vector.extract_strided_slice %14 {offsets = [0, 32], sizes = [2, 16], strides = [1, 1]} : vector<2x48xf32> to vector<2x16xf32>
    %34 = arith.mulf %23, %33 : vector<2x16xf32>
    %35 = arith.addf %32, %34 : vector<2x16xf32>
    %36 = math.tanh %35 : vector<2x16xf32>
    %cst_13 = arith.constant 1.000000e+00 : f32
    %37 = vector.broadcast %cst_13 : f32 to vector<2x16xf32>
    %38 = arith.subf %37, %31 : vector<2x16xf32>
    %39 = arith.mulf %38, %36 : vector<2x16xf32>
    %40 = arith.mulf %31, %15 : vector<2x16xf32>
    %41 = arith.addf %39, %40 : vector<2x16xf32>
    %42 = vector.extract_strided_slice %11 {offsets = [0, 48], sizes = [2, 48], strides = [1, 1]} : vector<2x96xf32> to vector<2x48xf32>
    %43 = vector.extract_strided_slice %6 {offsets = [0, 16], sizes = [2, 16], strides = [1, 1]} : vector<2x32xf32> to vector<2x16xf32>
    %44 = vector.extract_strided_slice %13 {offsets = [0, 0], sizes = [2, 16], strides = [1, 1]} : vector<2x48xf32> to vector<2x16xf32>
    %45 = vector.extract_strided_slice %42 {offsets = [0, 0], sizes = [2, 16], strides = [1, 1]} : vector<2x48xf32> to vector<2x16xf32>
    %46 = arith.addf %44, %45 : vector<2x16xf32>
    %47 = arith.negf %46 : vector<2x16xf32>
    %48 = math.exp %47 : vector<2x16xf32>
    %cst_14 = arith.constant 1.000000e+00 : f32
    %49 = vector.broadcast %cst_14 : f32 to vector<2x16xf32>
    %50 = arith.addf %49, %48 : vector<2x16xf32>
    %51 = arith.divf %49, %50 : vector<2x16xf32>
    %52 = vector.extract_strided_slice %13 {offsets = [0, 16], sizes = [2, 16], strides = [1, 1]} : vector<2x48xf32> to vector<2x16xf32>
    %53 = vector.extract_strided_slice %42 {offsets = [0, 16], sizes = [2, 16], strides = [1, 1]} : vector<2x48xf32> to vector<2x16xf32>
    %54 = arith.addf %52, %53 : vector<2x16xf32>
    %55 = arith.negf %54 : vector<2x16xf32>
    %56 = math.exp %55 : vector<2x16xf32>
    %cst_15 = arith.constant 1.000000e+00 : f32
    %57 = vector.broadcast %cst_15 : f32 to vector<2x16xf32>
    %58 = arith.addf %57, %56 : vector<2x16xf32>
    %59 = arith.divf %57, %58 : vector<2x16xf32>
    %60 = vector.extract_strided_slice %13 {offsets = [0, 32], sizes = [2, 16], strides = [1, 1]} : vector<2x48xf32> to vector<2x16xf32>
    %61 = vector.extract_strided_slice %42 {offsets = [0, 32], sizes = [2, 16], strides = [1, 1]} : vector<2x48xf32> to vector<2x16xf32>
    %62 = arith.mulf %51, %61 : vector<2x16xf32>
    %63 = arith.addf %60, %62 : vector<2x16xf32>
    %64 = math.tanh %63 : vector<2x16xf32>
    %cst_16 = arith.constant 1.000000e+00 : f32
    %65 = vector.broadcast %cst_16 : f32 to vector<2x16xf32>
    %66 = arith.subf %65, %59 : vector<2x16xf32>
    %67 = arith.mulf %66, %64 : vector<2x16xf32>
    %68 = arith.mulf %59, %43 : vector<2x16xf32>
    %69 = arith.addf %67, %68 : vector<2x16xf32>
    %c0_17 = arith.constant 0 : index
    %c0_18 = arith.constant 0 : index
    %c0_19 = arith.constant 0 : index
    %70 = vector.load %arg7[%c0_17, %c0_18, %c0_19] : memref<8x2x32xf32, #tpu.memory_space<vmem>>, vector<1x2x16xf32>
    %71 = vector.shape_cast %70 : vector<1x2x16xf32> to vector<2x16xf32>
    %72 = vector.shape_cast %41 : vector<2x16xf32> to vector<1x2x16xf32>
    tpu.vector_store %arg7[%c0_17, %c0_18, %c0_19], %72 {strides = array<i32>} : memref<8x2x32xf32, #tpu.memory_space<vmem>>, vector<1x2x16xf32>,
    %c7 = arith.constant 7 : index
    %c0_20 = arith.constant 0 : index
    %c16 = arith.constant 16 : index
    %73 = vector.load %arg7[%c7, %c0_20, %c16] : memref<8x2x32xf32, #tpu.memory_space<vmem>>, vector<1x2x16xf32>
    %74 = vector.shape_cast %73 : vector<1x2x16xf32> to vector<2x16xf32>
    %75 = vector.shape_cast %69 : vector<2x16xf32> to vector<1x2x16xf32>
    tpu.vector_store %arg7[%c7, %c0_20, %c16], %75 {strides = array<i32>} : memref<8x2x32xf32, #tpu.memory_space<vmem>>, vector<1x2x16xf32>,
    %76 = tpu.concatenate %41, %69 in 1 : vector<2x16xf32>, vector<2x16xf32> -> vector<2x32xf32>
    %c0_21 = arith.constant 0 : index
    %c0_22 = arith.constant 0 : index
    %77 = vector.load %arg3[%c0_21, %c0_22] : memref<32x96xf32, #tpu.memory_space<vmem>>, vector<32x96xf32>
    %cst_23 = arith.constant dense<0.000000e+00> : vector<2x96xf32>
    %78 = tpu.matmul %76, %77, %cst_23 {dimension_numbers = #tpu.dot_dimension_numbers<[1], [0], [0], [1], [0, 0, 1, 1], [], []>} : vector<2x32xf32>, vector<32x96xf32>, vector<2x96xf32> -> vector<2x96xf32>
    %c0_24 = arith.constant 0 : index
    %c0_25 = arith.constant 0 : index
    %79 = vector.load %arg4[%c0_24, %c0_25] : memref<1x96xf32, #tpu.memory_space<vmem>>, vector<1x96xf32>
    %80 = vector.broadcast %79 : vector<1x96xf32> to vector<2x96xf32>
    %81 = arith.addf %78, %80 : vector<2x96xf32>
    %82 = vector.extract_strided_slice %5 {offsets = [2, 0], sizes = [2, 48], strides = [1, 1]} : vector<16x96xf32> to vector<2x48xf32>
    %83 = vector.extract_strided_slice %5 {offsets = [12, 48], sizes = [2, 48], strides = [1, 1]} : vector<16x96xf32> to vector<2x48xf32>
    %84 = vector.extract_strided_slice %81 {offsets = [0, 0], sizes = [2, 48], strides = [1, 1]} : vector<2x96xf32> to vector<2x48xf32>
    %85 = vector.extract_strided_slice %76 {offsets = [0, 0], sizes = [2, 16], strides = [1, 1]} : vector<2x32xf32> to vector<2x16xf32>
    %86 = vector.extract_strided_slice %82 {offsets = [0, 0], sizes = [2, 16], strides = [1, 1]} : vector<2x48xf32> to vector<2x16xf32>
    %87 = vector.extract_strided_slice %84 {offsets = [0, 0], sizes = [2, 16], strides = [1, 1]} : vector<2x48xf32> to vector<2x16xf32>
    %88 = arith.addf %86, %87 : vector<2x16xf32>
    %89 = arith.negf %88 : vector<2x16xf32>
    %90 = math.exp %89 : vector<2x16xf32>
    %cst_26 = arith.constant 1.000000e+00 : f32
    %91 = vector.broadcast %cst_26 : f32 to vector<2x16xf32>
    %92 = arith.addf %91, %90 : vector<2x16xf32>
    %93 = arith.divf %91, %92 : vector<2x16xf32>
    %94 = vector.extract_strided_slice %82 {offsets = [0, 16], sizes = [2, 16], strides = [1, 1]} : vector<2x48xf32> to vector<2x16xf32>
    %95 = vector.extract_strided_slice %84 {offsets = [0, 16], sizes = [2, 16], strides = [1, 1]} : vector<2x48xf32> to vector<2x16xf32>
    %96 = arith.addf %94, %95 : vector<2x16xf32>
    %97 = arith.negf %96 : vector<2x16xf32>
    %98 = math.exp %97 : vector<2x16xf32>
    %cst_27 = arith.constant 1.000000e+00 : f32
    %99 = vector.broadcast %cst_27 : f32 to vector<2x16xf32>
    %100 = arith.addf %99, %98 : vector<2x16xf32>
    %101 = arith.divf %99, %100 : vector<2x16xf32>
    %102 = vector.extract_strided_slice %82 {offsets = [0, 32], sizes = [2, 16], strides = [1, 1]} : vector<2x48xf32> to vector<2x16xf32>
    %103 = vector.extract_strided_slice %84 {offsets = [0, 32], sizes = [2, 16], strides = [1, 1]} : vector<2x48xf32> to vector<2x16xf32>
    %104 = arith.mulf %93, %103 : vector<2x16xf32>
    %105 = arith.addf %102, %104 : vector<2x16xf32>
    %106 = math.tanh %105 : vector<2x16xf32>
    %cst_28 = arith.constant 1.000000e+00 : f32
    %107 = vector.broadcast %cst_28 : f32 to vector<2x16xf32>
    %108 = arith.subf %107, %101 : vector<2x16xf32>
    %109 = arith.mulf %108, %106 : vector<2x16xf32>
    %110 = arith.mulf %101, %85 : vector<2x16xf32>
    %111 = arith.addf %109, %110 : vector<2x16xf32>
    %112 = vector.extract_strided_slice %81 {offsets = [0, 48], sizes = [2, 48], strides = [1, 1]} : vector<2x96xf32> to vector<2x48xf32>
    %113 = vector.extract_strided_slice %76 {offsets = [0, 16], sizes = [2, 16], strides = [1, 1]} : vector<2x32xf32> to vector<2x16xf32>
    %114 = vector.extract_strided_slice %83 {offsets = [0, 0], sizes = [2, 16], strides = [1, 1]} : vector<2x48xf32> to vector<2x16xf32>
    %115 = vector.extract_strided_slice %112 {offsets = [0, 0], sizes = [2, 16], strides = [1, 1]} : vector<2x48xf32> to vector<2x16xf32>
    %116 = arith.addf %114, %115 : vector<2x16xf32>
    %117 = arith.negf %116 : vector<2x16xf32>
    %118 = math.exp %117 : vector<2x16xf32>
    %cst_29 = arith.constant 1.000000e+00 : f32
    %119 = vector.broadcast %cst_29 : f32 to vector<2x16xf32>
    %120 = arith.addf %119, %118 : vector<2x16xf32>
    %121 = arith.divf %119, %120 : vector<2x16xf32>
    %122 = vector.extract_strided_slice %83 {offsets = [0, 16], sizes = [2, 16], strides = [1, 1]} : vector<2x48xf32> to vector<2x16xf32>
    %123 = vector.extract_strided_slice %112 {offsets = [0, 16], sizes = [2, 16], strides = [1, 1]} : vector<2x48xf32> to vector<2x16xf32>
    %124 = arith.addf %122, %123 : vector<2x16xf32>
    %125 = arith.negf %124 : vector<2x16xf32>
    %126 = math.exp %125 : vector<2x16xf32>
    %cst_30 = arith.constant 1.000000e+00 : f32
    %127 = vector.broadcast %cst_30 : f32 to vector<2x16xf32>
    %128 = arith.addf %127, %126 : vector<2x16xf32>
    %129 = arith.divf %127, %128 : vector<2x16xf32>
    %130 = vector.extract_strided_slice %83 {offsets = [0, 32], sizes = [2, 16], strides = [1, 1]} : vector<2x48xf32> to vector<2x16xf32>
    %131 = vector.extract_strided_slice %112 {offsets = [0, 32], sizes = [2, 16], strides = [1, 1]} : vector<2x48xf32> to vector<2x16xf32>
    %132 = arith.mulf %121, %131 : vector<2x16xf32>
    %133 = arith.addf %130, %132 : vector<2x16xf32>
    %134 = math.tanh %133 : vector<2x16xf32>
    %cst_31 = arith.constant 1.000000e+00 : f32
    %135 = vector.broadcast %cst_31 : f32 to vector<2x16xf32>
    %136 = arith.subf %135, %129 : vector<2x16xf32>
    %137 = arith.mulf %136, %134 : vector<2x16xf32>
    %138 = arith.mulf %129, %113 : vector<2x16xf32>
    %139 = arith.addf %137, %138 : vector<2x16xf32>
    %c1 = arith.constant 1 : index
    %c0_32 = arith.constant 0 : index
    %c0_33 = arith.constant 0 : index
    %140 = vector.load %arg7[%c1, %c0_32, %c0_33] : memref<8x2x32xf32, #tpu.memory_space<vmem>>, vector<1x2x16xf32>
    %141 = vector.shape_cast %140 : vector<1x2x16xf32> to vector<2x16xf32>
    %142 = vector.shape_cast %111 : vector<2x16xf32> to vector<1x2x16xf32>
    tpu.vector_store %arg7[%c1, %c0_32, %c0_33], %142 {strides = array<i32>} : memref<8x2x32xf32, #tpu.memory_space<vmem>>, vector<1x2x16xf32>,
    %c6 = arith.constant 6 : index
    %c0_34 = arith.constant 0 : index
    %c16_35 = arith.constant 16 : index
    %143 = vector.load %arg7[%c6, %c0_34, %c16_35] : memref<8x2x32xf32, #tpu.memory_space<vmem>>, vector<1x2x16xf32>
    %144 = vector.shape_cast %143 : vector<1x2x16xf32> to vector<2x16xf32>
    %145 = vector.shape_cast %139 : vector<2x16xf32> to vector<1x2x16xf32>
    tpu.vector_store %arg7[%c6, %c0_34, %c16_35], %145 {strides = array<i32>} : memref<8x2x32xf32, #tpu.memory_space<vmem>>, vector<1x2x16xf32>,
    %146 = tpu.concatenate %111, %139 in 1 : vector<2x16xf32>, vector<2x16xf32> -> vector<2x32xf32>
    %c0_36 = arith.constant 0 : index
    %c0_37 = arith.constant 0 : index
    %147 = vector.load %arg3[%c0_36, %c0_37] : memref<32x96xf32, #tpu.memory_space<vmem>>, vector<32x96xf32>
    %cst_38 = arith.constant dense<0.000000e+00> : vector<2x96xf32>
    %148 = tpu.matmul %146, %147, %cst_38 {dimension_numbers = #tpu.dot_dimension_numbers<[1], [0], [0], [1], [0, 0, 1, 1], [], []>} : vector<2x32xf32>, vector<32x96xf32>, vector<2x96xf32> -> vector<2x96xf32>
    %c0_39 = arith.constant 0 : index
    %c0_40 = arith.constant 0 : index
    %149 = vector.load %arg4[%c0_39, %c0_40] : memref<1x96xf32, #tpu.memory_space<vmem>>, vector<1x96xf32>
    %150 = vector.broadcast %149 : vector<1x96xf32> to vector<2x96xf32>
    %151 = arith.addf %148, %150 : vector<2x96xf32>
    %152 = vector.extract_strided_slice %5 {offsets = [4, 0], sizes = [2, 48], strides = [1, 1]} : vector<16x96xf32> to vector<2x48xf32>
    %153 = vector.extract_strided_slice %5 {offsets = [10, 48], sizes = [2, 48], strides = [1, 1]} : vector<16x96xf32> to vector<2x48xf32>
    %154 = vector.extract_strided_slice %151 {offsets = [0, 0], sizes = [2, 48], strides = [1, 1]} : vector<2x96xf32> to vector<2x48xf32>
    %155 = vector.extract_strided_slice %146 {offsets = [0, 0], sizes = [2, 16], strides = [1, 1]} : vector<2x32xf32> to vector<2x16xf32>
    %156 = vector.extract_strided_slice %152 {offsets = [0, 0], sizes = [2, 16], strides = [1, 1]} : vector<2x48xf32> to vector<2x16xf32>
    %157 = vector.extract_strided_slice %154 {offsets = [0, 0], sizes = [2, 16], strides = [1, 1]} : vector<2x48xf32> to vector<2x16xf32>
    %158 = arith.addf %156, %157 : vector<2x16xf32>
    %159 = arith.negf %158 : vector<2x16xf32>
    %160 = math.exp %159 : vector<2x16xf32>
    %cst_41 = arith.constant 1.000000e+00 : f32
    %161 = vector.broadcast %cst_41 : f32 to vector<2x16xf32>
    %162 = arith.addf %161, %160 : vector<2x16xf32>
    %163 = arith.divf %161, %162 : vector<2x16xf32>
    %164 = vector.extract_strided_slice %152 {offsets = [0, 16], sizes = [2, 16], strides = [1, 1]} : vector<2x48xf32> to vector<2x16xf32>
    %165 = vector.extract_strided_slice %154 {offsets = [0, 16], sizes = [2, 16], strides = [1, 1]} : vector<2x48xf32> to vector<2x16xf32>
    %166 = arith.addf %164, %165 : vector<2x16xf32>
    %167 = arith.negf %166 : vector<2x16xf32>
    %168 = math.exp %167 : vector<2x16xf32>
    %cst_42 = arith.constant 1.000000e+00 : f32
    %169 = vector.broadcast %cst_42 : f32 to vector<2x16xf32>
    %170 = arith.addf %169, %168 : vector<2x16xf32>
    %171 = arith.divf %169, %170 : vector<2x16xf32>
    %172 = vector.extract_strided_slice %152 {offsets = [0, 32], sizes = [2, 16], strides = [1, 1]} : vector<2x48xf32> to vector<2x16xf32>
    %173 = vector.extract_strided_slice %154 {offsets = [0, 32], sizes = [2, 16], strides = [1, 1]} : vector<2x48xf32> to vector<2x16xf32>
    %174 = arith.mulf %163, %173 : vector<2x16xf32>
    %175 = arith.addf %172, %174 : vector<2x16xf32>
    %176 = math.tanh %175 : vector<2x16xf32>
    %cst_43 = arith.constant 1.000000e+00 : f32
    %177 = vector.broadcast %cst_43 : f32 to vector<2x16xf32>
    %178 = arith.subf %177, %171 : vector<2x16xf32>
    %179 = arith.mulf %178, %176 : vector<2x16xf32>
    %180 = arith.mulf %171, %155 : vector<2x16xf32>
    %181 = arith.addf %179, %180 : vector<2x16xf32>
    %182 = vector.extract_strided_slice %151 {offsets = [0, 48], sizes = [2, 48], strides = [1, 1]} : vector<2x96xf32> to vector<2x48xf32>
    %183 = vector.extract_strided_slice %146 {offsets = [0, 16], sizes = [2, 16], strides = [1, 1]} : vector<2x32xf32> to vector<2x16xf32>
    %184 = vector.extract_strided_slice %153 {offsets = [0, 0], sizes = [2, 16], strides = [1, 1]} : vector<2x48xf32> to vector<2x16xf32>
    %185 = vector.extract_strided_slice %182 {offsets = [0, 0], sizes = [2, 16], strides = [1, 1]} : vector<2x48xf32> to vector<2x16xf32>
    %186 = arith.addf %184, %185 : vector<2x16xf32>
    %187 = arith.negf %186 : vector<2x16xf32>
    %188 = math.exp %187 : vector<2x16xf32>
    %cst_44 = arith.constant 1.000000e+00 : f32
    %189 = vector.broadcast %cst_44 : f32 to vector<2x16xf32>
    %190 = arith.addf %189, %188 : vector<2x16xf32>
    %191 = arith.divf %189, %190 : vector<2x16xf32>
    %192 = vector.extract_strided_slice %153 {offsets = [0, 16], sizes = [2, 16], strides = [1, 1]} : vector<2x48xf32> to vector<2x16xf32>
    %193 = vector.extract_strided_slice %182 {offsets = [0, 16], sizes = [2, 16], strides = [1, 1]} : vector<2x48xf32> to vector<2x16xf32>
    %194 = arith.addf %192, %193 : vector<2x16xf32>
    %195 = arith.negf %194 : vector<2x16xf32>
    %196 = math.exp %195 : vector<2x16xf32>
    %cst_45 = arith.constant 1.000000e+00 : f32
    %197 = vector.broadcast %cst_45 : f32 to vector<2x16xf32>
    %198 = arith.addf %197, %196 : vector<2x16xf32>
    %199 = arith.divf %197, %198 : vector<2x16xf32>
    %200 = vector.extract_strided_slice %153 {offsets = [0, 32], sizes = [2, 16], strides = [1, 1]} : vector<2x48xf32> to vector<2x16xf32>
    %201 = vector.extract_strided_slice %182 {offsets = [0, 32], sizes = [2, 16], strides = [1, 1]} : vector<2x48xf32> to vector<2x16xf32>
    %202 = arith.mulf %191, %201 : vector<2x16xf32>
    %203 = arith.addf %200, %202 : vector<2x16xf32>
    %204 = math.tanh %203 : vector<2x16xf32>
    %cst_46 = arith.constant 1.000000e+00 : f32
    %205 = vector.broadcast %cst_46 : f32 to vector<2x16xf32>
    %206 = arith.subf %205, %199 : vector<2x16xf32>
    %207 = arith.mulf %206, %204 : vector<2x16xf32>
    %208 = arith.mulf %199, %183 : vector<2x16xf32>
    %209 = arith.addf %207, %208 : vector<2x16xf32>
    %c2 = arith.constant 2 : index
    %c0_47 = arith.constant 0 : index
    %c0_48 = arith.constant 0 : index
    %210 = vector.load %arg7[%c2, %c0_47, %c0_48] : memref<8x2x32xf32, #tpu.memory_space<vmem>>, vector<1x2x16xf32>
    %211 = vector.shape_cast %210 : vector<1x2x16xf32> to vector<2x16xf32>
    %212 = vector.shape_cast %181 : vector<2x16xf32> to vector<1x2x16xf32>
    tpu.vector_store %arg7[%c2, %c0_47, %c0_48], %212 {strides = array<i32>} : memref<8x2x32xf32, #tpu.memory_space<vmem>>, vector<1x2x16xf32>,
    %c5 = arith.constant 5 : index
    %c0_49 = arith.constant 0 : index
    %c16_50 = arith.constant 16 : index
    %213 = vector.load %arg7[%c5, %c0_49, %c16_50] : memref<8x2x32xf32, #tpu.memory_space<vmem>>, vector<1x2x16xf32>
    %214 = vector.shape_cast %213 : vector<1x2x16xf32> to vector<2x16xf32>
    %215 = vector.shape_cast %209 : vector<2x16xf32> to vector<1x2x16xf32>
    tpu.vector_store %arg7[%c5, %c0_49, %c16_50], %215 {strides = array<i32>} : memref<8x2x32xf32, #tpu.memory_space<vmem>>, vector<1x2x16xf32>,
    %216 = tpu.concatenate %181, %209 in 1 : vector<2x16xf32>, vector<2x16xf32> -> vector<2x32xf32>
    %c0_51 = arith.constant 0 : index
    %c0_52 = arith.constant 0 : index
    %217 = vector.load %arg3[%c0_51, %c0_52] : memref<32x96xf32, #tpu.memory_space<vmem>>, vector<32x96xf32>
    %cst_53 = arith.constant dense<0.000000e+00> : vector<2x96xf32>
    %218 = tpu.matmul %216, %217, %cst_53 {dimension_numbers = #tpu.dot_dimension_numbers<[1], [0], [0], [1], [0, 0, 1, 1], [], []>} : vector<2x32xf32>, vector<32x96xf32>, vector<2x96xf32> -> vector<2x96xf32>
    %c0_54 = arith.constant 0 : index
    %c0_55 = arith.constant 0 : index
    %219 = vector.load %arg4[%c0_54, %c0_55] : memref<1x96xf32, #tpu.memory_space<vmem>>, vector<1x96xf32>
    %220 = vector.broadcast %219 : vector<1x96xf32> to vector<2x96xf32>
    %221 = arith.addf %218, %220 : vector<2x96xf32>
    %222 = vector.extract_strided_slice %5 {offsets = [6, 0], sizes = [2, 48], strides = [1, 1]} : vector<16x96xf32> to vector<2x48xf32>
    %223 = vector.extract_strided_slice %5 {offsets = [8, 48], sizes = [2, 48], strides = [1, 1]} : vector<16x96xf32> to vector<2x48xf32>
    %224 = vector.extract_strided_slice %221 {offsets = [0, 0], sizes = [2, 48], strides = [1, 1]} : vector<2x96xf32> to vector<2x48xf32>
    %225 = vector.extract_strided_slice %216 {offsets = [0, 0], sizes = [2, 16], strides = [1, 1]} : vector<2x32xf32> to vector<2x16xf32>
    %226 = vector.extract_strided_slice %222 {offsets = [0, 0], sizes = [2, 16], strides = [1, 1]} : vector<2x48xf32> to vector<2x16xf32>
    %227 = vector.extract_strided_slice %224 {offsets = [0, 0], sizes = [2, 16], strides = [1, 1]} : vector<2x48xf32> to vector<2x16xf32>
    %228 = arith.addf %226, %227 : vector<2x16xf32>
    %229 = arith.negf %228 : vector<2x16xf32>
    %230 = math.exp %229 : vector<2x16xf32>
    %cst_56 = arith.constant 1.000000e+00 : f32
    %231 = vector.broadcast %cst_56 : f32 to vector<2x16xf32>
    %232 = arith.addf %231, %230 : vector<2x16xf32>
    %233 = arith.divf %231, %232 : vector<2x16xf32>
    %234 = vector.extract_strided_slice %222 {offsets = [0, 16], sizes = [2, 16], strides = [1, 1]} : vector<2x48xf32> to vector<2x16xf32>
    %235 = vector.extract_strided_slice %224 {offsets = [0, 16], sizes = [2, 16], strides = [1, 1]} : vector<2x48xf32> to vector<2x16xf32>
    %236 = arith.addf %234, %235 : vector<2x16xf32>
    %237 = arith.negf %236 : vector<2x16xf32>
    %238 = math.exp %237 : vector<2x16xf32>
    %cst_57 = arith.constant 1.000000e+00 : f32
    %239 = vector.broadcast %cst_57 : f32 to vector<2x16xf32>
    %240 = arith.addf %239, %238 : vector<2x16xf32>
    %241 = arith.divf %239, %240 : vector<2x16xf32>
    %242 = vector.extract_strided_slice %222 {offsets = [0, 32], sizes = [2, 16], strides = [1, 1]} : vector<2x48xf32> to vector<2x16xf32>
    %243 = vector.extract_strided_slice %224 {offsets = [0, 32], sizes = [2, 16], strides = [1, 1]} : vector<2x48xf32> to vector<2x16xf32>
    %244 = arith.mulf %233, %243 : vector<2x16xf32>
    %245 = arith.addf %242, %244 : vector<2x16xf32>
    %246 = math.tanh %245 : vector<2x16xf32>
    %cst_58 = arith.constant 1.000000e+00 : f32
    %247 = vector.broadcast %cst_58 : f32 to vector<2x16xf32>
    %248 = arith.subf %247, %241 : vector<2x16xf32>
    %249 = arith.mulf %248, %246 : vector<2x16xf32>
    %250 = arith.mulf %241, %225 : vector<2x16xf32>
    %251 = arith.addf %249, %250 : vector<2x16xf32>
    %252 = vector.extract_strided_slice %221 {offsets = [0, 48], sizes = [2, 48], strides = [1, 1]} : vector<2x96xf32> to vector<2x48xf32>
    %253 = vector.extract_strided_slice %216 {offsets = [0, 16], sizes = [2, 16], strides = [1, 1]} : vector<2x32xf32> to vector<2x16xf32>
    %254 = vector.extract_strided_slice %223 {offsets = [0, 0], sizes = [2, 16], strides = [1, 1]} : vector<2x48xf32> to vector<2x16xf32>
    %255 = vector.extract_strided_slice %252 {offsets = [0, 0], sizes = [2, 16], strides = [1, 1]} : vector<2x48xf32> to vector<2x16xf32>
    %256 = arith.addf %254, %255 : vector<2x16xf32>
    %257 = arith.negf %256 : vector<2x16xf32>
    %258 = math.exp %257 : vector<2x16xf32>
    %cst_59 = arith.constant 1.000000e+00 : f32
    %259 = vector.broadcast %cst_59 : f32 to vector<2x16xf32>
    %260 = arith.addf %259, %258 : vector<2x16xf32>
    %261 = arith.divf %259, %260 : vector<2x16xf32>
    %262 = vector.extract_strided_slice %223 {offsets = [0, 16], sizes = [2, 16], strides = [1, 1]} : vector<2x48xf32> to vector<2x16xf32>
    %263 = vector.extract_strided_slice %252 {offsets = [0, 16], sizes = [2, 16], strides = [1, 1]} : vector<2x48xf32> to vector<2x16xf32>
    %264 = arith.addf %262, %263 : vector<2x16xf32>
    %265 = arith.negf %264 : vector<2x16xf32>
    %266 = math.exp %265 : vector<2x16xf32>
    %cst_60 = arith.constant 1.000000e+00 : f32
    %267 = vector.broadcast %cst_60 : f32 to vector<2x16xf32>
    %268 = arith.addf %267, %266 : vector<2x16xf32>
    %269 = arith.divf %267, %268 : vector<2x16xf32>
    %270 = vector.extract_strided_slice %223 {offsets = [0, 32], sizes = [2, 16], strides = [1, 1]} : vector<2x48xf32> to vector<2x16xf32>
    %271 = vector.extract_strided_slice %252 {offsets = [0, 32], sizes = [2, 16], strides = [1, 1]} : vector<2x48xf32> to vector<2x16xf32>
    %272 = arith.mulf %261, %271 : vector<2x16xf32>
    %273 = arith.addf %270, %272 : vector<2x16xf32>
    %274 = math.tanh %273 : vector<2x16xf32>
    %cst_61 = arith.constant 1.000000e+00 : f32
    %275 = vector.broadcast %cst_61 : f32 to vector<2x16xf32>
    %276 = arith.subf %275, %269 : vector<2x16xf32>
    %277 = arith.mulf %276, %274 : vector<2x16xf32>
    %278 = arith.mulf %269, %253 : vector<2x16xf32>
    %279 = arith.addf %277, %278 : vector<2x16xf32>
    %c3 = arith.constant 3 : index
    %c0_62 = arith.constant 0 : index
    %c0_63 = arith.constant 0 : index
    %280 = vector.load %arg7[%c3, %c0_62, %c0_63] : memref<8x2x32xf32, #tpu.memory_space<vmem>>, vector<1x2x16xf32>
    %281 = vector.shape_cast %280 : vector<1x2x16xf32> to vector<2x16xf32>
    %282 = vector.shape_cast %251 : vector<2x16xf32> to vector<1x2x16xf32>
    tpu.vector_store %arg7[%c3, %c0_62, %c0_63], %282 {strides = array<i32>} : memref<8x2x32xf32, #tpu.memory_space<vmem>>, vector<1x2x16xf32>,
    %c4 = arith.constant 4 : index
    %c0_64 = arith.constant 0 : index
    %c16_65 = arith.constant 16 : index
    %283 = vector.load %arg7[%c4, %c0_64, %c16_65] : memref<8x2x32xf32, #tpu.memory_space<vmem>>, vector<1x2x16xf32>
    %284 = vector.shape_cast %283 : vector<1x2x16xf32> to vector<2x16xf32>
    %285 = vector.shape_cast %279 : vector<2x16xf32> to vector<1x2x16xf32>
    tpu.vector_store %arg7[%c4, %c0_64, %c16_65], %285 {strides = array<i32>} : memref<8x2x32xf32, #tpu.memory_space<vmem>>, vector<1x2x16xf32>,
    %286 = tpu.concatenate %251, %279 in 1 : vector<2x16xf32>, vector<2x16xf32> -> vector<2x32xf32>
    %c0_66 = arith.constant 0 : index
    %c0_67 = arith.constant 0 : index
    %287 = vector.load %arg3[%c0_66, %c0_67] : memref<32x96xf32, #tpu.memory_space<vmem>>, vector<32x96xf32>
    %cst_68 = arith.constant dense<0.000000e+00> : vector<2x96xf32>
    %288 = tpu.matmul %286, %287, %cst_68 {dimension_numbers = #tpu.dot_dimension_numbers<[1], [0], [0], [1], [0, 0, 1, 1], [], []>} : vector<2x32xf32>, vector<32x96xf32>, vector<2x96xf32> -> vector<2x96xf32>
    %c0_69 = arith.constant 0 : index
    %c0_70 = arith.constant 0 : index
    %289 = vector.load %arg4[%c0_69, %c0_70] : memref<1x96xf32, #tpu.memory_space<vmem>>, vector<1x96xf32>
    %290 = vector.broadcast %289 : vector<1x96xf32> to vector<2x96xf32>
    %291 = arith.addf %288, %290 : vector<2x96xf32>
    %292 = vector.extract_strided_slice %5 {offsets = [8, 0], sizes = [2, 48], strides = [1, 1]} : vector<16x96xf32> to vector<2x48xf32>
    %293 = vector.extract_strided_slice %5 {offsets = [6, 48], sizes = [2, 48], strides = [1, 1]} : vector<16x96xf32> to vector<2x48xf32>
    %294 = vector.extract_strided_slice %291 {offsets = [0, 0], sizes = [2, 48], strides = [1, 1]} : vector<2x96xf32> to vector<2x48xf32>
    %295 = vector.extract_strided_slice %286 {offsets = [0, 0], sizes = [2, 16], strides = [1, 1]} : vector<2x32xf32> to vector<2x16xf32>
    %296 = vector.extract_strided_slice %292 {offsets = [0, 0], sizes = [2, 16], strides = [1, 1]} : vector<2x48xf32> to vector<2x16xf32>
    %297 = vector.extract_strided_slice %294 {offsets = [0, 0], sizes = [2, 16], strides = [1, 1]} : vector<2x48xf32> to vector<2x16xf32>
    %298 = arith.addf %296, %297 : vector<2x16xf32>
    %299 = arith.negf %298 : vector<2x16xf32>
    %300 = math.exp %299 : vector<2x16xf32>
    %cst_71 = arith.constant 1.000000e+00 : f32
    %301 = vector.broadcast %cst_71 : f32 to vector<2x16xf32>
    %302 = arith.addf %301, %300 : vector<2x16xf32>
    %303 = arith.divf %301, %302 : vector<2x16xf32>
    %304 = vector.extract_strided_slice %292 {offsets = [0, 16], sizes = [2, 16], strides = [1, 1]} : vector<2x48xf32> to vector<2x16xf32>
    %305 = vector.extract_strided_slice %294 {offsets = [0, 16], sizes = [2, 16], strides = [1, 1]} : vector<2x48xf32> to vector<2x16xf32>
    %306 = arith.addf %304, %305 : vector<2x16xf32>
    %307 = arith.negf %306 : vector<2x16xf32>
    %308 = math.exp %307 : vector<2x16xf32>
    %cst_72 = arith.constant 1.000000e+00 : f32
    %309 = vector.broadcast %cst_72 : f32 to vector<2x16xf32>
    %310 = arith.addf %309, %308 : vector<2x16xf32>
    %311 = arith.divf %309, %310 : vector<2x16xf32>
    %312 = vector.extract_strided_slice %292 {offsets = [0, 32], sizes = [2, 16], strides = [1, 1]} : vector<2x48xf32> to vector<2x16xf32>
    %313 = vector.extract_strided_slice %294 {offsets = [0, 32], sizes = [2, 16], strides = [1, 1]} : vector<2x48xf32> to vector<2x16xf32>
    %314 = arith.mulf %303, %313 : vector<2x16xf32>
    %315 = arith.addf %312, %314 : vector<2x16xf32>
    %316 = math.tanh %315 : vector<2x16xf32>
    %cst_73 = arith.constant 1.000000e+00 : f32
    %317 = vector.broadcast %cst_73 : f32 to vector<2x16xf32>
    %318 = arith.subf %317, %311 : vector<2x16xf32>
    %319 = arith.mulf %318, %316 : vector<2x16xf32>
    %320 = arith.mulf %311, %295 : vector<2x16xf32>
    %321 = arith.addf %319, %320 : vector<2x16xf32>
    %322 = vector.extract_strided_slice %291 {offsets = [0, 48], sizes = [2, 48], strides = [1, 1]} : vector<2x96xf32> to vector<2x48xf32>
    %323 = vector.extract_strided_slice %286 {offsets = [0, 16], sizes = [2, 16], strides = [1, 1]} : vector<2x32xf32> to vector<2x16xf32>
    %324 = vector.extract_strided_slice %293 {offsets = [0, 0], sizes = [2, 16], strides = [1, 1]} : vector<2x48xf32> to vector<2x16xf32>
    %325 = vector.extract_strided_slice %322 {offsets = [0, 0], sizes = [2, 16], strides = [1, 1]} : vector<2x48xf32> to vector<2x16xf32>
    %326 = arith.addf %324, %325 : vector<2x16xf32>
    %327 = arith.negf %326 : vector<2x16xf32>
    %328 = math.exp %327 : vector<2x16xf32>
    %cst_74 = arith.constant 1.000000e+00 : f32
    %329 = vector.broadcast %cst_74 : f32 to vector<2x16xf32>
    %330 = arith.addf %329, %328 : vector<2x16xf32>
    %331 = arith.divf %329, %330 : vector<2x16xf32>
    %332 = vector.extract_strided_slice %293 {offsets = [0, 16], sizes = [2, 16], strides = [1, 1]} : vector<2x48xf32> to vector<2x16xf32>
    %333 = vector.extract_strided_slice %322 {offsets = [0, 16], sizes = [2, 16], strides = [1, 1]} : vector<2x48xf32> to vector<2x16xf32>
    %334 = arith.addf %332, %333 : vector<2x16xf32>
    %335 = arith.negf %334 : vector<2x16xf32>
    %336 = math.exp %335 : vector<2x16xf32>
    %cst_75 = arith.constant 1.000000e+00 : f32
    %337 = vector.broadcast %cst_75 : f32 to vector<2x16xf32>
    %338 = arith.addf %337, %336 : vector<2x16xf32>
    %339 = arith.divf %337, %338 : vector<2x16xf32>
    %340 = vector.extract_strided_slice %293 {offsets = [0, 32], sizes = [2, 16], strides = [1, 1]} : vector<2x48xf32> to vector<2x16xf32>
    %341 = vector.extract_strided_slice %322 {offsets = [0, 32], sizes = [2, 16], strides = [1, 1]} : vector<2x48xf32> to vector<2x16xf32>
    %342 = arith.mulf %331, %341 : vector<2x16xf32>
    %343 = arith.addf %340, %342 : vector<2x16xf32>
    %344 = math.tanh %343 : vector<2x16xf32>
    %cst_76 = arith.constant 1.000000e+00 : f32
    %345 = vector.broadcast %cst_76 : f32 to vector<2x16xf32>
    %346 = arith.subf %345, %339 : vector<2x16xf32>
    %347 = arith.mulf %346, %344 : vector<2x16xf32>
    %348 = arith.mulf %339, %323 : vector<2x16xf32>
    %349 = arith.addf %347, %348 : vector<2x16xf32>
    %c4_77 = arith.constant 4 : index
    %c0_78 = arith.constant 0 : index
    %c0_79 = arith.constant 0 : index
    %350 = vector.load %arg7[%c4_77, %c0_78, %c0_79] : memref<8x2x32xf32, #tpu.memory_space<vmem>>, vector<1x2x16xf32>
    %351 = vector.shape_cast %350 : vector<1x2x16xf32> to vector<2x16xf32>
    %352 = vector.shape_cast %321 : vector<2x16xf32> to vector<1x2x16xf32>
    tpu.vector_store %arg7[%c4_77, %c0_78, %c0_79], %352 {strides = array<i32>} : memref<8x2x32xf32, #tpu.memory_space<vmem>>, vector<1x2x16xf32>,
    %c3_80 = arith.constant 3 : index
    %c0_81 = arith.constant 0 : index
    %c16_82 = arith.constant 16 : index
    %353 = vector.load %arg7[%c3_80, %c0_81, %c16_82] : memref<8x2x32xf32, #tpu.memory_space<vmem>>, vector<1x2x16xf32>
    %354 = vector.shape_cast %353 : vector<1x2x16xf32> to vector<2x16xf32>
    %355 = vector.shape_cast %349 : vector<2x16xf32> to vector<1x2x16xf32>
    tpu.vector_store %arg7[%c3_80, %c0_81, %c16_82], %355 {strides = array<i32>} : memref<8x2x32xf32, #tpu.memory_space<vmem>>, vector<1x2x16xf32>,
    %356 = tpu.concatenate %321, %349 in 1 : vector<2x16xf32>, vector<2x16xf32> -> vector<2x32xf32>
    %c0_83 = arith.constant 0 : index
    %c0_84 = arith.constant 0 : index
    %357 = vector.load %arg3[%c0_83, %c0_84] : memref<32x96xf32, #tpu.memory_space<vmem>>, vector<32x96xf32>
    %cst_85 = arith.constant dense<0.000000e+00> : vector<2x96xf32>
    %358 = tpu.matmul %356, %357, %cst_85 {dimension_numbers = #tpu.dot_dimension_numbers<[1], [0], [0], [1], [0, 0, 1, 1], [], []>} : vector<2x32xf32>, vector<32x96xf32>, vector<2x96xf32> -> vector<2x96xf32>
    %c0_86 = arith.constant 0 : index
    %c0_87 = arith.constant 0 : index
    %359 = vector.load %arg4[%c0_86, %c0_87] : memref<1x96xf32, #tpu.memory_space<vmem>>, vector<1x96xf32>
    %360 = vector.broadcast %359 : vector<1x96xf32> to vector<2x96xf32>
    %361 = arith.addf %358, %360 : vector<2x96xf32>
    %362 = vector.extract_strided_slice %5 {offsets = [10, 0], sizes = [2, 48], strides = [1, 1]} : vector<16x96xf32> to vector<2x48xf32>
    %363 = vector.extract_strided_slice %5 {offsets = [4, 48], sizes = [2, 48], strides = [1, 1]} : vector<16x96xf32> to vector<2x48xf32>
    %364 = vector.extract_strided_slice %361 {offsets = [0, 0], sizes = [2, 48], strides = [1, 1]} : vector<2x96xf32> to vector<2x48xf32>
    %365 = vector.extract_strided_slice %356 {offsets = [0, 0], sizes = [2, 16], strides = [1, 1]} : vector<2x32xf32> to vector<2x16xf32>
    %366 = vector.extract_strided_slice %362 {offsets = [0, 0], sizes = [2, 16], strides = [1, 1]} : vector<2x48xf32> to vector<2x16xf32>
    %367 = vector.extract_strided_slice %364 {offsets = [0, 0], sizes = [2, 16], strides = [1, 1]} : vector<2x48xf32> to vector<2x16xf32>
    %368 = arith.addf %366, %367 : vector<2x16xf32>
    %369 = arith.negf %368 : vector<2x16xf32>
    %370 = math.exp %369 : vector<2x16xf32>
    %cst_88 = arith.constant 1.000000e+00 : f32
    %371 = vector.broadcast %cst_88 : f32 to vector<2x16xf32>
    %372 = arith.addf %371, %370 : vector<2x16xf32>
    %373 = arith.divf %371, %372 : vector<2x16xf32>
    %374 = vector.extract_strided_slice %362 {offsets = [0, 16], sizes = [2, 16], strides = [1, 1]} : vector<2x48xf32> to vector<2x16xf32>
    %375 = vector.extract_strided_slice %364 {offsets = [0, 16], sizes = [2, 16], strides = [1, 1]} : vector<2x48xf32> to vector<2x16xf32>
    %376 = arith.addf %374, %375 : vector<2x16xf32>
    %377 = arith.negf %376 : vector<2x16xf32>
    %378 = math.exp %377 : vector<2x16xf32>
    %cst_89 = arith.constant 1.000000e+00 : f32
    %379 = vector.broadcast %cst_89 : f32 to vector<2x16xf32>
    %380 = arith.addf %379, %378 : vector<2x16xf32>
    %381 = arith.divf %379, %380 : vector<2x16xf32>
    %382 = vector.extract_strided_slice %362 {offsets = [0, 32], sizes = [2, 16], strides = [1, 1]} : vector<2x48xf32> to vector<2x16xf32>
    %383 = vector.extract_strided_slice %364 {offsets = [0, 32], sizes = [2, 16], strides = [1, 1]} : vector<2x48xf32> to vector<2x16xf32>
    %384 = arith.mulf %373, %383 : vector<2x16xf32>
    %385 = arith.addf %382, %384 : vector<2x16xf32>
    %386 = math.tanh %385 : vector<2x16xf32>
    %cst_90 = arith.constant 1.000000e+00 : f32
    %387 = vector.broadcast %cst_90 : f32 to vector<2x16xf32>
    %388 = arith.subf %387, %381 : vector<2x16xf32>
    %389 = arith.mulf %388, %386 : vector<2x16xf32>
    %390 = arith.mulf %381, %365 : vector<2x16xf32>
    %391 = arith.addf %389, %390 : vector<2x16xf32>
    %392 = vector.extract_strided_slice %361 {offsets = [0, 48], sizes = [2, 48], strides = [1, 1]} : vector<2x96xf32> to vector<2x48xf32>
    %393 = vector.extract_strided_slice %356 {offsets = [0, 16], sizes = [2, 16], strides = [1, 1]} : vector<2x32xf32> to vector<2x16xf32>
    %394 = vector.extract_strided_slice %363 {offsets = [0, 0], sizes = [2, 16], strides = [1, 1]} : vector<2x48xf32> to vector<2x16xf32>
    %395 = vector.extract_strided_slice %392 {offsets = [0, 0], sizes = [2, 16], strides = [1, 1]} : vector<2x48xf32> to vector<2x16xf32>
    %396 = arith.addf %394, %395 : vector<2x16xf32>
    %397 = arith.negf %396 : vector<2x16xf32>
    %398 = math.exp %397 : vector<2x16xf32>
    %cst_91 = arith.constant 1.000000e+00 : f32
    %399 = vector.broadcast %cst_91 : f32 to vector<2x16xf32>
    %400 = arith.addf %399, %398 : vector<2x16xf32>
    %401 = arith.divf %399, %400 : vector<2x16xf32>
    %402 = vector.extract_strided_slice %363 {offsets = [0, 16], sizes = [2, 16], strides = [1, 1]} : vector<2x48xf32> to vector<2x16xf32>
    %403 = vector.extract_strided_slice %392 {offsets = [0, 16], sizes = [2, 16], strides = [1, 1]} : vector<2x48xf32> to vector<2x16xf32>
    %404 = arith.addf %402, %403 : vector<2x16xf32>
    %405 = arith.negf %404 : vector<2x16xf32>
    %406 = math.exp %405 : vector<2x16xf32>
    %cst_92 = arith.constant 1.000000e+00 : f32
    %407 = vector.broadcast %cst_92 : f32 to vector<2x16xf32>
    %408 = arith.addf %407, %406 : vector<2x16xf32>
    %409 = arith.divf %407, %408 : vector<2x16xf32>
    %410 = vector.extract_strided_slice %363 {offsets = [0, 32], sizes = [2, 16], strides = [1, 1]} : vector<2x48xf32> to vector<2x16xf32>
    %411 = vector.extract_strided_slice %392 {offsets = [0, 32], sizes = [2, 16], strides = [1, 1]} : vector<2x48xf32> to vector<2x16xf32>
    %412 = arith.mulf %401, %411 : vector<2x16xf32>
    %413 = arith.addf %410, %412 : vector<2x16xf32>
    %414 = math.tanh %413 : vector<2x16xf32>
    %cst_93 = arith.constant 1.000000e+00 : f32
    %415 = vector.broadcast %cst_93 : f32 to vector<2x16xf32>
    %416 = arith.subf %415, %409 : vector<2x16xf32>
    %417 = arith.mulf %416, %414 : vector<2x16xf32>
    %418 = arith.mulf %409, %393 : vector<2x16xf32>
    %419 = arith.addf %417, %418 : vector<2x16xf32>
    %c5_94 = arith.constant 5 : index
    %c0_95 = arith.constant 0 : index
    %c0_96 = arith.constant 0 : index
    %420 = vector.load %arg7[%c5_94, %c0_95, %c0_96] : memref<8x2x32xf32, #tpu.memory_space<vmem>>, vector<1x2x16xf32>
    %421 = vector.shape_cast %420 : vector<1x2x16xf32> to vector<2x16xf32>
    %422 = vector.shape_cast %391 : vector<2x16xf32> to vector<1x2x16xf32>
    tpu.vector_store %arg7[%c5_94, %c0_95, %c0_96], %422 {strides = array<i32>} : memref<8x2x32xf32, #tpu.memory_space<vmem>>, vector<1x2x16xf32>,
    %c2_97 = arith.constant 2 : index
    %c0_98 = arith.constant 0 : index
    %c16_99 = arith.constant 16 : index
    %423 = vector.load %arg7[%c2_97, %c0_98, %c16_99] : memref<8x2x32xf32, #tpu.memory_space<vmem>>, vector<1x2x16xf32>
    %424 = vector.shape_cast %423 : vector<1x2x16xf32> to vector<2x16xf32>
    %425 = vector.shape_cast %419 : vector<2x16xf32> to vector<1x2x16xf32>
    tpu.vector_store %arg7[%c2_97, %c0_98, %c16_99], %425 {strides = array<i32>} : memref<8x2x32xf32, #tpu.memory_space<vmem>>, vector<1x2x16xf32>,
    %426 = tpu.concatenate %391, %419 in 1 : vector<2x16xf32>, vector<2x16xf32> -> vector<2x32xf32>
    %c0_100 = arith.constant 0 : index
    %c0_101 = arith.constant 0 : index
    %427 = vector.load %arg3[%c0_100, %c0_101] : memref<32x96xf32, #tpu.memory_space<vmem>>, vector<32x96xf32>
    %cst_102 = arith.constant dense<0.000000e+00> : vector<2x96xf32>
    %428 = tpu.matmul %426, %427, %cst_102 {dimension_numbers = #tpu.dot_dimension_numbers<[1], [0], [0], [1], [0, 0, 1, 1], [], []>} : vector<2x32xf32>, vector<32x96xf32>, vector<2x96xf32> -> vector<2x96xf32>
    %c0_103 = arith.constant 0 : index
    %c0_104 = arith.constant 0 : index
    %429 = vector.load %arg4[%c0_103, %c0_104] : memref<1x96xf32, #tpu.memory_space<vmem>>, vector<1x96xf32>
    %430 = vector.broadcast %429 : vector<1x96xf32> to vector<2x96xf32>
    %431 = arith.addf %428, %430 : vector<2x96xf32>
    %432 = vector.extract_strided_slice %5 {offsets = [12, 0], sizes = [2, 48], strides = [1, 1]} : vector<16x96xf32> to vector<2x48xf32>
    %433 = vector.extract_strided_slice %5 {offsets = [2, 48], sizes = [2, 48], strides = [1, 1]} : vector<16x96xf32> to vector<2x48xf32>
    %434 = vector.extract_strided_slice %431 {offsets = [0, 0], sizes = [2, 48], strides = [1, 1]} : vector<2x96xf32> to vector<2x48xf32>
    %435 = vector.extract_strided_slice %426 {offsets = [0, 0], sizes = [2, 16], strides = [1, 1]} : vector<2x32xf32> to vector<2x16xf32>
    %436 = vector.extract_strided_slice %432 {offsets = [0, 0], sizes = [2, 16], strides = [1, 1]} : vector<2x48xf32> to vector<2x16xf32>
    %437 = vector.extract_strided_slice %434 {offsets = [0, 0], sizes = [2, 16], strides = [1, 1]} : vector<2x48xf32> to vector<2x16xf32>
    %438 = arith.addf %436, %437 : vector<2x16xf32>
    %439 = arith.negf %438 : vector<2x16xf32>
    %440 = math.exp %439 : vector<2x16xf32>
    %cst_105 = arith.constant 1.000000e+00 : f32
    %441 = vector.broadcast %cst_105 : f32 to vector<2x16xf32>
    %442 = arith.addf %441, %440 : vector<2x16xf32>
    %443 = arith.divf %441, %442 : vector<2x16xf32>
    %444 = vector.extract_strided_slice %432 {offsets = [0, 16], sizes = [2, 16], strides = [1, 1]} : vector<2x48xf32> to vector<2x16xf32>
    %445 = vector.extract_strided_slice %434 {offsets = [0, 16], sizes = [2, 16], strides = [1, 1]} : vector<2x48xf32> to vector<2x16xf32>
    %446 = arith.addf %444, %445 : vector<2x16xf32>
    %447 = arith.negf %446 : vector<2x16xf32>
    %448 = math.exp %447 : vector<2x16xf32>
    %cst_106 = arith.constant 1.000000e+00 : f32
    %449 = vector.broadcast %cst_106 : f32 to vector<2x16xf32>
    %450 = arith.addf %449, %448 : vector<2x16xf32>
    %451 = arith.divf %449, %450 : vector<2x16xf32>
    %452 = vector.extract_strided_slice %432 {offsets = [0, 32], sizes = [2, 16], strides = [1, 1]} : vector<2x48xf32> to vector<2x16xf32>
    %453 = vector.extract_strided_slice %434 {offsets = [0, 32], sizes = [2, 16], strides = [1, 1]} : vector<2x48xf32> to vector<2x16xf32>
    %454 = arith.mulf %443, %453 : vector<2x16xf32>
    %455 = arith.addf %452, %454 : vector<2x16xf32>
    %456 = math.tanh %455 : vector<2x16xf32>
    %cst_107 = arith.constant 1.000000e+00 : f32
    %457 = vector.broadcast %cst_107 : f32 to vector<2x16xf32>
    %458 = arith.subf %457, %451 : vector<2x16xf32>
    %459 = arith.mulf %458, %456 : vector<2x16xf32>
    %460 = arith.mulf %451, %435 : vector<2x16xf32>
    %461 = arith.addf %459, %460 : vector<2x16xf32>
    %462 = vector.extract_strided_slice %431 {offsets = [0, 48], sizes = [2, 48], strides = [1, 1]} : vector<2x96xf32> to vector<2x48xf32>
    %463 = vector.extract_strided_slice %426 {offsets = [0, 16], sizes = [2, 16], strides = [1, 1]} : vector<2x32xf32> to vector<2x16xf32>
    %464 = vector.extract_strided_slice %433 {offsets = [0, 0], sizes = [2, 16], strides = [1, 1]} : vector<2x48xf32> to vector<2x16xf32>
    %465 = vector.extract_strided_slice %462 {offsets = [0, 0], sizes = [2, 16], strides = [1, 1]} : vector<2x48xf32> to vector<2x16xf32>
    %466 = arith.addf %464, %465 : vector<2x16xf32>
    %467 = arith.negf %466 : vector<2x16xf32>
    %468 = math.exp %467 : vector<2x16xf32>
    %cst_108 = arith.constant 1.000000e+00 : f32
    %469 = vector.broadcast %cst_108 : f32 to vector<2x16xf32>
    %470 = arith.addf %469, %468 : vector<2x16xf32>
    %471 = arith.divf %469, %470 : vector<2x16xf32>
    %472 = vector.extract_strided_slice %433 {offsets = [0, 16], sizes = [2, 16], strides = [1, 1]} : vector<2x48xf32> to vector<2x16xf32>
    %473 = vector.extract_strided_slice %462 {offsets = [0, 16], sizes = [2, 16], strides = [1, 1]} : vector<2x48xf32> to vector<2x16xf32>
    %474 = arith.addf %472, %473 : vector<2x16xf32>
    %475 = arith.negf %474 : vector<2x16xf32>
    %476 = math.exp %475 : vector<2x16xf32>
    %cst_109 = arith.constant 1.000000e+00 : f32
    %477 = vector.broadcast %cst_109 : f32 to vector<2x16xf32>
    %478 = arith.addf %477, %476 : vector<2x16xf32>
    %479 = arith.divf %477, %478 : vector<2x16xf32>
    %480 = vector.extract_strided_slice %433 {offsets = [0, 32], sizes = [2, 16], strides = [1, 1]} : vector<2x48xf32> to vector<2x16xf32>
    %481 = vector.extract_strided_slice %462 {offsets = [0, 32], sizes = [2, 16], strides = [1, 1]} : vector<2x48xf32> to vector<2x16xf32>
    %482 = arith.mulf %471, %481 : vector<2x16xf32>
    %483 = arith.addf %480, %482 : vector<2x16xf32>
    %484 = math.tanh %483 : vector<2x16xf32>
    %cst_110 = arith.constant 1.000000e+00 : f32
    %485 = vector.broadcast %cst_110 : f32 to vector<2x16xf32>
    %486 = arith.subf %485, %479 : vector<2x16xf32>
    %487 = arith.mulf %486, %484 : vector<2x16xf32>
    %488 = arith.mulf %479, %463 : vector<2x16xf32>
    %489 = arith.addf %487, %488 : vector<2x16xf32>
    %c6_111 = arith.constant 6 : index
    %c0_112 = arith.constant 0 : index
    %c0_113 = arith.constant 0 : index
    %490 = vector.load %arg7[%c6_111, %c0_112, %c0_113] : memref<8x2x32xf32, #tpu.memory_space<vmem>>, vector<1x2x16xf32>
    %491 = vector.shape_cast %490 : vector<1x2x16xf32> to vector<2x16xf32>
    %492 = vector.shape_cast %461 : vector<2x16xf32> to vector<1x2x16xf32>
    tpu.vector_store %arg7[%c6_111, %c0_112, %c0_113], %492 {strides = array<i32>} : memref<8x2x32xf32, #tpu.memory_space<vmem>>, vector<1x2x16xf32>,
    %c1_114 = arith.constant 1 : index
    %c0_115 = arith.constant 0 : index
    %c16_116 = arith.constant 16 : index
    %493 = vector.load %arg7[%c1_114, %c0_115, %c16_116] : memref<8x2x32xf32, #tpu.memory_space<vmem>>, vector<1x2x16xf32>
    %494 = vector.shape_cast %493 : vector<1x2x16xf32> to vector<2x16xf32>
    %495 = vector.shape_cast %489 : vector<2x16xf32> to vector<1x2x16xf32>
    tpu.vector_store %arg7[%c1_114, %c0_115, %c16_116], %495 {strides = array<i32>} : memref<8x2x32xf32, #tpu.memory_space<vmem>>, vector<1x2x16xf32>,
    %496 = tpu.concatenate %461, %489 in 1 : vector<2x16xf32>, vector<2x16xf32> -> vector<2x32xf32>
    %c0_117 = arith.constant 0 : index
    %c0_118 = arith.constant 0 : index
    %497 = vector.load %arg3[%c0_117, %c0_118] : memref<32x96xf32, #tpu.memory_space<vmem>>, vector<32x96xf32>
    %cst_119 = arith.constant dense<0.000000e+00> : vector<2x96xf32>
    %498 = tpu.matmul %496, %497, %cst_119 {dimension_numbers = #tpu.dot_dimension_numbers<[1], [0], [0], [1], [0, 0, 1, 1], [], []>} : vector<2x32xf32>, vector<32x96xf32>, vector<2x96xf32> -> vector<2x96xf32>
    %c0_120 = arith.constant 0 : index
    %c0_121 = arith.constant 0 : index
    %499 = vector.load %arg4[%c0_120, %c0_121] : memref<1x96xf32, #tpu.memory_space<vmem>>, vector<1x96xf32>
    %500 = vector.broadcast %499 : vector<1x96xf32> to vector<2x96xf32>
    %501 = arith.addf %498, %500 : vector<2x96xf32>
    %502 = vector.extract_strided_slice %5 {offsets = [14, 0], sizes = [2, 48], strides = [1, 1]} : vector<16x96xf32> to vector<2x48xf32>
    %503 = vector.extract_strided_slice %5 {offsets = [0, 48], sizes = [2, 48], strides = [1, 1]} : vector<16x96xf32> to vector<2x48xf32>
    %504 = vector.extract_strided_slice %501 {offsets = [0, 0], sizes = [2, 48], strides = [1, 1]} : vector<2x96xf32> to vector<2x48xf32>
    %505 = vector.extract_strided_slice %496 {offsets = [0, 0], sizes = [2, 16], strides = [1, 1]} : vector<2x32xf32> to vector<2x16xf32>
    %506 = vector.extract_strided_slice %502 {offsets = [0, 0], sizes = [2, 16], strides = [1, 1]} : vector<2x48xf32> to vector<2x16xf32>
    %507 = vector.extract_strided_slice %504 {offsets = [0, 0], sizes = [2, 16], strides = [1, 1]} : vector<2x48xf32> to vector<2x16xf32>
    %508 = arith.addf %506, %507 : vector<2x16xf32>
    %509 = arith.negf %508 : vector<2x16xf32>
    %510 = math.exp %509 : vector<2x16xf32>
    %cst_122 = arith.constant 1.000000e+00 : f32
    %511 = vector.broadcast %cst_122 : f32 to vector<2x16xf32>
    %512 = arith.addf %511, %510 : vector<2x16xf32>
    %513 = arith.divf %511, %512 : vector<2x16xf32>
    %514 = vector.extract_strided_slice %502 {offsets = [0, 16], sizes = [2, 16], strides = [1, 1]} : vector<2x48xf32> to vector<2x16xf32>
    %515 = vector.extract_strided_slice %504 {offsets = [0, 16], sizes = [2, 16], strides = [1, 1]} : vector<2x48xf32> to vector<2x16xf32>
    %516 = arith.addf %514, %515 : vector<2x16xf32>
    %517 = arith.negf %516 : vector<2x16xf32>
    %518 = math.exp %517 : vector<2x16xf32>
    %cst_123 = arith.constant 1.000000e+00 : f32
    %519 = vector.broadcast %cst_123 : f32 to vector<2x16xf32>
    %520 = arith.addf %519, %518 : vector<2x16xf32>
    %521 = arith.divf %519, %520 : vector<2x16xf32>
    %522 = vector.extract_strided_slice %502 {offsets = [0, 32], sizes = [2, 16], strides = [1, 1]} : vector<2x48xf32> to vector<2x16xf32>
    %523 = vector.extract_strided_slice %504 {offsets = [0, 32], sizes = [2, 16], strides = [1, 1]} : vector<2x48xf32> to vector<2x16xf32>
    %524 = arith.mulf %513, %523 : vector<2x16xf32>
    %525 = arith.addf %522, %524 : vector<2x16xf32>
    %526 = math.tanh %525 : vector<2x16xf32>
    %cst_124 = arith.constant 1.000000e+00 : f32
    %527 = vector.broadcast %cst_124 : f32 to vector<2x16xf32>
    %528 = arith.subf %527, %521 : vector<2x16xf32>
    %529 = arith.mulf %528, %526 : vector<2x16xf32>
    %530 = arith.mulf %521, %505 : vector<2x16xf32>
    %531 = arith.addf %529, %530 : vector<2x16xf32>
    %532 = vector.extract_strided_slice %501 {offsets = [0, 48], sizes = [2, 48], strides = [1, 1]} : vector<2x96xf32> to vector<2x48xf32>
    %533 = vector.extract_strided_slice %496 {offsets = [0, 16], sizes = [2, 16], strides = [1, 1]} : vector<2x32xf32> to vector<2x16xf32>
    %534 = vector.extract_strided_slice %503 {offsets = [0, 0], sizes = [2, 16], strides = [1, 1]} : vector<2x48xf32> to vector<2x16xf32>
    %535 = vector.extract_strided_slice %532 {offsets = [0, 0], sizes = [2, 16], strides = [1, 1]} : vector<2x48xf32> to vector<2x16xf32>
    %536 = arith.addf %534, %535 : vector<2x16xf32>
    %537 = arith.negf %536 : vector<2x16xf32>
    %538 = math.exp %537 : vector<2x16xf32>
    %cst_125 = arith.constant 1.000000e+00 : f32
    %539 = vector.broadcast %cst_125 : f32 to vector<2x16xf32>
    %540 = arith.addf %539, %538 : vector<2x16xf32>
    %541 = arith.divf %539, %540 : vector<2x16xf32>
    %542 = vector.extract_strided_slice %503 {offsets = [0, 16], sizes = [2, 16], strides = [1, 1]} : vector<2x48xf32> to vector<2x16xf32>
    %543 = vector.extract_strided_slice %532 {offsets = [0, 16], sizes = [2, 16], strides = [1, 1]} : vector<2x48xf32> to vector<2x16xf32>
    %544 = arith.addf %542, %543 : vector<2x16xf32>
    %545 = arith.negf %544 : vector<2x16xf32>
    %546 = math.exp %545 : vector<2x16xf32>
    %cst_126 = arith.constant 1.000000e+00 : f32
    %547 = vector.broadcast %cst_126 : f32 to vector<2x16xf32>
    %548 = arith.addf %547, %546 : vector<2x16xf32>
    %549 = arith.divf %547, %548 : vector<2x16xf32>
    %550 = vector.extract_strided_slice %503 {offsets = [0, 32], sizes = [2, 16], strides = [1, 1]} : vector<2x48xf32> to vector<2x16xf32>
    %551 = vector.extract_strided_slice %532 {offsets = [0, 32], sizes = [2, 16], strides = [1, 1]} : vector<2x48xf32> to vector<2x16xf32>
    %552 = arith.mulf %541, %551 : vector<2x16xf32>
    %553 = arith.addf %550, %552 : vector<2x16xf32>
    %554 = math.tanh %553 : vector<2x16xf32>
    %cst_127 = arith.constant 1.000000e+00 : f32
    %555 = vector.broadcast %cst_127 : f32 to vector<2x16xf32>
    %556 = arith.subf %555, %549 : vector<2x16xf32>
    %557 = arith.mulf %556, %554 : vector<2x16xf32>
    %558 = arith.mulf %549, %533 : vector<2x16xf32>
    %559 = arith.addf %557, %558 : vector<2x16xf32>
    %c7_128 = arith.constant 7 : index
    %c0_129 = arith.constant 0 : index
    %c0_130 = arith.constant 0 : index
    %560 = vector.load %arg7[%c7_128, %c0_129, %c0_130] : memref<8x2x32xf32, #tpu.memory_space<vmem>>, vector<1x2x16xf32>
    %561 = vector.shape_cast %560 : vector<1x2x16xf32> to vector<2x16xf32>
    %562 = vector.shape_cast %531 : vector<2x16xf32> to vector<1x2x16xf32>
    tpu.vector_store %arg7[%c7_128, %c0_129, %c0_130], %562 {strides = array<i32>} : memref<8x2x32xf32, #tpu.memory_space<vmem>>, vector<1x2x16xf32>,
    %c0_131 = arith.constant 0 : index
    %c0_132 = arith.constant 0 : index
    %c16_133 = arith.constant 16 : index
    %563 = vector.load %arg7[%c0_131, %c0_132, %c16_133] : memref<8x2x32xf32, #tpu.memory_space<vmem>>, vector<1x2x16xf32>
    %564 = vector.shape_cast %563 : vector<1x2x16xf32> to vector<2x16xf32>
    %565 = vector.shape_cast %559 : vector<2x16xf32> to vector<1x2x16xf32>
    tpu.vector_store %arg7[%c0_131, %c0_132, %c16_133], %565 {strides = array<i32>} : memref<8x2x32xf32, #tpu.memory_space<vmem>>, vector<1x2x16xf32>,
    %566 = tpu.concatenate %531, %559 in 1 : vector<2x16xf32>, vector<2x16xf32> -> vector<2x32xf32>
    %567 = vector.extract_strided_slice %566 {offsets = [0, 16], sizes = [2, 16], strides = [1, 1]} : vector<2x32xf32> to vector<2x16xf32>
    %c0_134 = arith.constant 0 : index
    %c0_135 = arith.constant 0 : index
    %568 = vector.load %arg5[%c0_134, %c0_135] : memref<16x32xf32, #tpu.memory_space<vmem>>, vector<16x32xf32>
    %cst_136 = arith.constant dense<0.000000e+00> : vector<2x32xf32>
    %569 = tpu.matmul %567, %568, %cst_136 {dimension_numbers = #tpu.dot_dimension_numbers<[1], [0], [0], [1], [0, 0, 1, 1], [], []>} : vector<2x16xf32>, vector<16x32xf32>, vector<2x32xf32> -> vector<2x32xf32>
    %c0_137 = arith.constant 0 : index
    %c0_138 = arith.constant 0 : index
    %570 = vector.load %arg6[%c0_137, %c0_138] : memref<1x32xf32, #tpu.memory_space<vmem>>, vector<1x32xf32>
    %571 = vector.broadcast %570 : vector<1x32xf32> to vector<2x32xf32>
    %572 = arith.addf %569, %571 : vector<2x32xf32>
    %573 = math.tanh %572 : vector<2x32xf32>
    %c0_139 = arith.constant 0 : index
    %c0_140 = arith.constant 0 : index
    %574 = vector.load %arg8[%c0_139, %c0_140] : memref<2x32xf32, #tpu.memory_space<vmem>>, vector<2x32xf32>
    tpu.vector_store %arg8[%c0_139, %c0_140], %573 {strides = array<i32>} : memref<2x32xf32, #tpu.memory_space<vmem>>, vector<2x32xf32>,
    return
  }
}

module attributes {stable_mosaic.version = 11 : i64} {
  func.func @_decoder_kernel(%arg0: memref<12x16xf32, #tpu.memory_space<vmem>>, %arg1: memref<2x8x32xf32, #tpu.memory_space<vmem>>, %arg2: memref<2x8xf32, #tpu.memory_space<vmem>>, %arg3: memref<2x32xf32, #tpu.memory_space<vmem>>, %arg4: memref<16x128xf32, #tpu.memory_space<vmem>>, %arg5: memref<1x128xf32, #tpu.memory_space<vmem>>, %arg6: memref<32x96xf32, #tpu.memory_space<vmem>>, %arg7: memref<32x96xf32, #tpu.memory_space<vmem>>, %arg8: memref<1x96xf32, #tpu.memory_space<vmem>>, %arg9: memref<32x32xf32, #tpu.memory_space<vmem>>, %arg10: memref<1x32xf32, #tpu.memory_space<vmem>>, %arg11: memref<32x32xf32, #tpu.memory_space<vmem>>, %arg12: memref<1x32xf32, #tpu.memory_space<vmem>>, %arg13: memref<64x33xf32, #tpu.memory_space<vmem>>, %arg14: memref<1x33xf32, #tpu.memory_space<vmem>>, %arg15: memref<6x2x25xf32, #tpu.memory_space<vmem>>) attributes {dimension_semantics = [], scalar_prefetch = 0 : i64, scratch_operands = 0 : i64, tpu.core_type = #tpu.core_type<tc>} {
    %c0 = arith.constant 0 : index
    %c0_0 = arith.constant 0 : index
    %c0_1 = arith.constant 0 : index
    %0 = vector.load %arg1[%c0, %c0_0, %c0_1] : memref<2x8x32xf32, #tpu.memory_space<vmem>>, vector<2x8x32xf32>
    %c0_2 = arith.constant 0 : index
    %c0_3 = arith.constant 0 : index
    %1 = vector.load %arg2[%c0_2, %c0_3] : memref<2x8xf32, #tpu.memory_space<vmem>>, vector<2x8xf32>
    %cst = arith.constant 1.000000e+00 : f32
    %2 = vector.broadcast %cst : f32 to vector<2x8xf32>
    %3 = arith.subf %2, %1 : vector<2x8xf32>
    %cst_4 = arith.constant -1.000000e+06 : f32
    %4 = vector.broadcast %cst_4 : f32 to vector<2x8xf32>
    %5 = arith.mulf %1, %4 : vector<2x8xf32>
    %c0_5 = arith.constant 0 : index
    %c0_6 = arith.constant 0 : index
    %6 = vector.load %arg12[%c0_5, %c0_6] : memref<1x32xf32, #tpu.memory_space<vmem>>, vector<1x32xf32>
    %c0_7 = arith.constant 0 : index
    %c0_8 = arith.constant 0 : index
    %7 = vector.load %arg0[%c0_7, %c0_8] : memref<12x16xf32, #tpu.memory_space<vmem>>, vector<12x16xf32>
    %c0_9 = arith.constant 0 : index
    %c0_10 = arith.constant 0 : index
    %8 = vector.load %arg4[%c0_9, %c0_10] : memref<16x128xf32, #tpu.memory_space<vmem>>, vector<16x128xf32>
    %cst_11 = arith.constant dense<0.000000e+00> : vector<12x128xf32>
    %9 = tpu.matmul %7, %8, %cst_11 {dimension_numbers = #tpu.dot_dimension_numbers<[1], [0], [0], [1], [0, 0, 1, 1], [], []>} : vector<12x16xf32>, vector<16x128xf32>, vector<12x128xf32> -> vector<12x128xf32>
    %c0_12 = arith.constant 0 : index
    %c0_13 = arith.constant 0 : index
    %10 = vector.load %arg5[%c0_12, %c0_13] : memref<1x128xf32, #tpu.memory_space<vmem>>, vector<1x128xf32>
    %11 = vector.broadcast %10 : vector<1x128xf32> to vector<12x128xf32>
    %12 = arith.addf %9, %11 : vector<12x128xf32>
    %13 = vector.extract_strided_slice %0 {offsets = [0, 0, 0], sizes = [1, 8, 32], strides = [1, 1, 1]} : vector<2x8x32xf32> to vector<1x8x32xf32>
    %14 = vector.shape_cast %13 : vector<1x8x32xf32> to vector<8x32xf32>
    %c0_14 = arith.constant 0 : index
    %c0_15 = arith.constant 0 : index
    %15 = vector.load %arg9[%c0_14, %c0_15] : memref<32x32xf32, #tpu.memory_space<vmem>>, vector<32x32xf32>
    %cst_16 = arith.constant dense<0.000000e+00> : vector<8x32xf32>
    %16 = tpu.matmul %14, %15, %cst_16 {dimension_numbers = #tpu.dot_dimension_numbers<[1], [0], [0], [1], [0, 0, 1, 1], [], []>} : vector<8x32xf32>, vector<32x32xf32>, vector<8x32xf32> -> vector<8x32xf32>
    %c0_17 = arith.constant 0 : index
    %c0_18 = arith.constant 0 : index
    %17 = vector.load %arg10[%c0_17, %c0_18] : memref<1x32xf32, #tpu.memory_space<vmem>>, vector<1x32xf32>
    %18 = vector.broadcast %17 : vector<1x32xf32> to vector<8x32xf32>
    %19 = arith.addf %16, %18 : vector<8x32xf32>
    %20 = vector.extract_strided_slice %0 {offsets = [1, 0, 0], sizes = [1, 8, 32], strides = [1, 1, 1]} : vector<2x8x32xf32> to vector<1x8x32xf32>
    %21 = vector.shape_cast %20 : vector<1x8x32xf32> to vector<8x32xf32>
    %c0_19 = arith.constant 0 : index
    %c0_20 = arith.constant 0 : index
    %22 = vector.load %arg9[%c0_19, %c0_20] : memref<32x32xf32, #tpu.memory_space<vmem>>, vector<32x32xf32>
    %cst_21 = arith.constant dense<0.000000e+00> : vector<8x32xf32>
    %23 = tpu.matmul %21, %22, %cst_21 {dimension_numbers = #tpu.dot_dimension_numbers<[1], [0], [0], [1], [0, 0, 1, 1], [], []>} : vector<8x32xf32>, vector<32x32xf32>, vector<8x32xf32> -> vector<8x32xf32>
    %c0_22 = arith.constant 0 : index
    %c0_23 = arith.constant 0 : index
    %24 = vector.load %arg10[%c0_22, %c0_23] : memref<1x32xf32, #tpu.memory_space<vmem>>, vector<1x32xf32>
    %25 = vector.broadcast %24 : vector<1x32xf32> to vector<8x32xf32>
    %26 = arith.addf %23, %25 : vector<8x32xf32>
    %27 = vector.shape_cast %19 : vector<8x32xf32> to vector<1x8x32xf32>
    %28 = vector.shape_cast %26 : vector<8x32xf32> to vector<1x8x32xf32>
    %29 = tpu.concatenate %27, %28 in 0 : vector<1x8x32xf32>, vector<1x8x32xf32> -> vector<2x8x32xf32>
    %c0_24 = arith.constant 0 : index
    %c0_25 = arith.constant 0 : index
    %30 = vector.load %arg3[%c0_24, %c0_25] : memref<2x32xf32, #tpu.memory_space<vmem>>, vector<2x32xf32>
    %cst_26 = arith.constant 0.000000e+00 : f32
    %31 = vector.broadcast %cst_26 : f32 to vector<2x32xf32>
    %32 = vector.extract_strided_slice %12 {offsets = [0, 0], sizes = [2, 128], strides = [1, 1]} : vector<12x128xf32> to vector<2x128xf32>
    %33 = vector.extract_strided_slice %32 {offsets = [0, 0], sizes = [2, 96], strides = [1, 1]} : vector<2x128xf32> to vector<2x96xf32>
    %c0_27 = arith.constant 0 : index
    %c0_28 = arith.constant 0 : index
    %34 = vector.load %arg6[%c0_27, %c0_28] : memref<32x96xf32, #tpu.memory_space<vmem>>, vector<32x96xf32>
    %cst_29 = arith.constant dense<0.000000e+00> : vector<2x96xf32>
    %35 = tpu.matmul %31, %34, %cst_29 {dimension_numbers = #tpu.dot_dimension_numbers<[1], [0], [0], [1], [0, 0, 1, 1], [], []>} : vector<2x32xf32>, vector<32x96xf32>, vector<2x96xf32> -> vector<2x96xf32>
    %36 = arith.addf %33, %35 : vector<2x96xf32>
    %c0_30 = arith.constant 0 : index
    %c0_31 = arith.constant 0 : index
    %37 = vector.load %arg7[%c0_30, %c0_31] : memref<32x96xf32, #tpu.memory_space<vmem>>, vector<32x96xf32>
    %cst_32 = arith.constant dense<0.000000e+00> : vector<2x96xf32>
    %38 = tpu.matmul %30, %37, %cst_32 {dimension_numbers = #tpu.dot_dimension_numbers<[1], [0], [0], [1], [0, 0, 1, 1], [], []>} : vector<2x32xf32>, vector<32x96xf32>, vector<2x96xf32> -> vector<2x96xf32>
    %c0_33 = arith.constant 0 : index
    %c0_34 = arith.constant 0 : index
    %39 = vector.load %arg8[%c0_33, %c0_34] : memref<1x96xf32, #tpu.memory_space<vmem>>, vector<1x96xf32>
    %40 = vector.broadcast %39 : vector<1x96xf32> to vector<2x96xf32>
    %41 = arith.addf %38, %40 : vector<2x96xf32>
    %42 = vector.extract_strided_slice %36 {offsets = [0, 0], sizes = [2, 32], strides = [1, 1]} : vector<2x96xf32> to vector<2x32xf32>
    %43 = vector.extract_strided_slice %41 {offsets = [0, 0], sizes = [2, 32], strides = [1, 1]} : vector<2x96xf32> to vector<2x32xf32>
    %44 = arith.addf %42, %43 : vector<2x32xf32>
    %45 = arith.negf %44 : vector<2x32xf32>
    %46 = math.exp %45 : vector<2x32xf32>
    %cst_35 = arith.constant 1.000000e+00 : f32
    %47 = vector.broadcast %cst_35 : f32 to vector<2x32xf32>
    %48 = arith.addf %47, %46 : vector<2x32xf32>
    %49 = arith.divf %47, %48 : vector<2x32xf32>
    %50 = vector.extract_strided_slice %36 {offsets = [0, 32], sizes = [2, 32], strides = [1, 1]} : vector<2x96xf32> to vector<2x32xf32>
    %51 = vector.extract_strided_slice %41 {offsets = [0, 32], sizes = [2, 32], strides = [1, 1]} : vector<2x96xf32> to vector<2x32xf32>
    %52 = arith.addf %50, %51 : vector<2x32xf32>
    %53 = arith.negf %52 : vector<2x32xf32>
    %54 = math.exp %53 : vector<2x32xf32>
    %cst_36 = arith.constant 1.000000e+00 : f32
    %55 = vector.broadcast %cst_36 : f32 to vector<2x32xf32>
    %56 = arith.addf %55, %54 : vector<2x32xf32>
    %57 = arith.divf %55, %56 : vector<2x32xf32>
    %58 = vector.extract_strided_slice %36 {offsets = [0, 64], sizes = [2, 32], strides = [1, 1]} : vector<2x96xf32> to vector<2x32xf32>
    %59 = vector.extract_strided_slice %41 {offsets = [0, 64], sizes = [2, 32], strides = [1, 1]} : vector<2x96xf32> to vector<2x32xf32>
    %60 = arith.mulf %49, %59 : vector<2x32xf32>
    %61 = arith.addf %58, %60 : vector<2x32xf32>
    %62 = math.tanh %61 : vector<2x32xf32>
    %cst_37 = arith.constant 1.000000e+00 : f32
    %63 = vector.broadcast %cst_37 : f32 to vector<2x32xf32>
    %64 = arith.subf %63, %57 : vector<2x32xf32>
    %65 = arith.mulf %64, %62 : vector<2x32xf32>
    %66 = arith.mulf %57, %30 : vector<2x32xf32>
    %67 = arith.addf %65, %66 : vector<2x32xf32>
    %c0_38 = arith.constant 0 : index
    %c0_39 = arith.constant 0 : index
    %68 = vector.load %arg11[%c0_38, %c0_39] : memref<32x32xf32, #tpu.memory_space<vmem>>, vector<32x32xf32>
    %cst_40 = arith.constant dense<0.000000e+00> : vector<2x32xf32>
    %69 = tpu.matmul %67, %68, %cst_40 {dimension_numbers = #tpu.dot_dimension_numbers<[1], [0], [0], [1], [0, 0, 1, 1], [], []>} : vector<2x32xf32>, vector<32x32xf32>, vector<2x32xf32> -> vector<2x32xf32>
    %70 = vector.shape_cast %69 : vector<2x32xf32> to vector<2x1x32xf32>
    %71 = vector.broadcast %70 : vector<2x1x32xf32> to vector<2x8x32xf32>
    %72 = arith.addf %29, %71 : vector<2x8x32xf32>
    %73 = math.tanh %72 : vector<2x8x32xf32>
    %74 = vector.shape_cast %6 : vector<1x32xf32> to vector<1x1x32xf32>
    %75 = vector.broadcast %74 : vector<1x1x32xf32> to vector<2x8x32xf32>
    %76 = arith.mulf %73, %75 : vector<2x8x32xf32>
    %cst_41 = arith.constant dense<0.000000e+00> : vector<2x8xf32>
    %77 = vector.multi_reduction <add>, %76, %cst_41 [2] : vector<2x8x32xf32> to vector<2x8xf32>
    %78 = arith.mulf %77, %3 : vector<2x8xf32>
    %79 = arith.addf %78, %5 : vector<2x8xf32>
    %cst_42 = arith.constant dense<0xFF800000> : vector<2xf32>
    %80 = vector.multi_reduction <maximumf>, %79, %cst_42 [1] : vector<2x8xf32> to vector<2xf32>
    %81 = vector.shape_cast %80 : vector<2xf32> to vector<2x1xf32>
    %82 = vector.broadcast %81 : vector<2x1xf32> to vector<2x8xf32>
    %83 = arith.subf %79, %82 : vector<2x8xf32>
    %84 = math.exp %83 : vector<2x8xf32>
    %cst_43 = arith.constant dense<0.000000e+00> : vector<2xf32>
    %85 = vector.multi_reduction <add>, %84, %cst_43 [1] : vector<2x8xf32> to vector<2xf32>
    %86 = vector.shape_cast %85 : vector<2xf32> to vector<2x1xf32>
    %87 = tpu.reciprocal %86 {approx = true} : vector<2x1xf32> -> vector<2x1xf32>
    %88 = vector.broadcast %87 : vector<2x1xf32> to vector<2x8xf32>
    %89 = arith.mulf %84, %88 : vector<2x8xf32>
    %90 = vector.shape_cast %89 : vector<2x8xf32> to vector<2x8x1xf32>
    %91 = vector.broadcast %90 : vector<2x8x1xf32> to vector<2x8x32xf32>
    %92 = arith.mulf %91, %0 : vector<2x8x32xf32>
    %cst_44 = arith.constant dense<0.000000e+00> : vector<2x32xf32>
    %93 = vector.multi_reduction <add>, %92, %cst_44 [1] : vector<2x8x32xf32> to vector<2x32xf32>
    %94 = tpu.concatenate %67, %93 in 1 : vector<2x32xf32>, vector<2x32xf32> -> vector<2x64xf32>
    %c0_45 = arith.constant 0 : index
    %c0_46 = arith.constant 0 : index
    %95 = vector.load %arg13[%c0_45, %c0_46] : memref<64x33xf32, #tpu.memory_space<vmem>>, vector<64x33xf32>
    %cst_47 = arith.constant dense<0.000000e+00> : vector<2x33xf32>
    %96 = tpu.matmul %94, %95, %cst_47 {dimension_numbers = #tpu.dot_dimension_numbers<[1], [0], [0], [1], [0, 0, 1, 1], [], []>} : vector<2x64xf32>, vector<64x33xf32>, vector<2x33xf32> -> vector<2x33xf32>
    %c0_48 = arith.constant 0 : index
    %c0_49 = arith.constant 0 : index
    %97 = vector.load %arg14[%c0_48, %c0_49] : memref<1x33xf32, #tpu.memory_space<vmem>>, vector<1x33xf32>
    %98 = vector.broadcast %97 : vector<1x33xf32> to vector<2x33xf32>
    %99 = arith.addf %96, %98 : vector<2x33xf32>
    %100 = vector.extract_strided_slice %32 {offsets = [0, 96], sizes = [2, 32], strides = [1, 1]} : vector<2x128xf32> to vector<2x32xf32>
    %101 = vector.extract_strided_slice %99 {offsets = [0, 0], sizes = [2, 32], strides = [1, 1]} : vector<2x33xf32> to vector<2x32xf32>
    %102 = arith.addf %100, %101 : vector<2x32xf32>
    %103 = vector.extract_strided_slice %99 {offsets = [0, 32], sizes = [2, 1], strides = [1, 1]} : vector<2x33xf32> to vector<2x1xf32>
    %104 = arith.negf %103 : vector<2x1xf32>
    %105 = math.exp %104 : vector<2x1xf32>
    %cst_50 = arith.constant 1.000000e+00 : f32
    %106 = vector.broadcast %cst_50 : f32 to vector<2x1xf32>
    %107 = arith.addf %106, %105 : vector<2x1xf32>
    %108 = arith.divf %106, %107 : vector<2x1xf32>
    %109 = vector.extract_strided_slice %102 {offsets = [0, 0], sizes = [2, 16], strides = [1, 1]} : vector<2x32xf32> to vector<2x16xf32>
    %110 = vector.extract_strided_slice %102 {offsets = [0, 16], sizes = [2, 16], strides = [1, 1]} : vector<2x32xf32> to vector<2x16xf32>
    %111 = arith.maximumf %109, %110 : vector<2x16xf32>
    %112 = tpu.concatenate %111, %89, %108 in 1 : vector<2x16xf32>, vector<2x8xf32>, vector<2x1xf32> -> vector<2x25xf32>
    %c0_51 = arith.constant 0 : index
    %c0_52 = arith.constant 0 : index
    %c0_53 = arith.constant 0 : index
    %113 = vector.load %arg15[%c0_51, %c0_52, %c0_53] : memref<6x2x25xf32, #tpu.memory_space<vmem>>, vector<1x2x25xf32>
    %114 = vector.shape_cast %113 : vector<1x2x25xf32> to vector<2x25xf32>
    %115 = vector.shape_cast %112 : vector<2x25xf32> to vector<1x2x25xf32>
    tpu.vector_store %arg15[%c0_51, %c0_52, %c0_53], %115 {strides = array<i32>} : memref<6x2x25xf32, #tpu.memory_space<vmem>>, vector<1x2x25xf32>,
    %116 = vector.extract_strided_slice %12 {offsets = [2, 0], sizes = [2, 128], strides = [1, 1]} : vector<12x128xf32> to vector<2x128xf32>
    %117 = vector.extract_strided_slice %116 {offsets = [0, 0], sizes = [2, 96], strides = [1, 1]} : vector<2x128xf32> to vector<2x96xf32>
    %c0_54 = arith.constant 0 : index
    %c0_55 = arith.constant 0 : index
    %118 = vector.load %arg6[%c0_54, %c0_55] : memref<32x96xf32, #tpu.memory_space<vmem>>, vector<32x96xf32>
    %cst_56 = arith.constant dense<0.000000e+00> : vector<2x96xf32>
    %119 = tpu.matmul %93, %118, %cst_56 {dimension_numbers = #tpu.dot_dimension_numbers<[1], [0], [0], [1], [0, 0, 1, 1], [], []>} : vector<2x32xf32>, vector<32x96xf32>, vector<2x96xf32> -> vector<2x96xf32>
    %120 = arith.addf %117, %119 : vector<2x96xf32>
    %c0_57 = arith.constant 0 : index
    %c0_58 = arith.constant 0 : index
    %121 = vector.load %arg7[%c0_57, %c0_58] : memref<32x96xf32, #tpu.memory_space<vmem>>, vector<32x96xf32>
    %cst_59 = arith.constant dense<0.000000e+00> : vector<2x96xf32>
    %122 = tpu.matmul %67, %121, %cst_59 {dimension_numbers = #tpu.dot_dimension_numbers<[1], [0], [0], [1], [0, 0, 1, 1], [], []>} : vector<2x32xf32>, vector<32x96xf32>, vector<2x96xf32> -> vector<2x96xf32>
    %c0_60 = arith.constant 0 : index
    %c0_61 = arith.constant 0 : index
    %123 = vector.load %arg8[%c0_60, %c0_61] : memref<1x96xf32, #tpu.memory_space<vmem>>, vector<1x96xf32>
    %124 = vector.broadcast %123 : vector<1x96xf32> to vector<2x96xf32>
    %125 = arith.addf %122, %124 : vector<2x96xf32>
    %126 = vector.extract_strided_slice %120 {offsets = [0, 0], sizes = [2, 32], strides = [1, 1]} : vector<2x96xf32> to vector<2x32xf32>
    %127 = vector.extract_strided_slice %125 {offsets = [0, 0], sizes = [2, 32], strides = [1, 1]} : vector<2x96xf32> to vector<2x32xf32>
    %128 = arith.addf %126, %127 : vector<2x32xf32>
    %129 = arith.negf %128 : vector<2x32xf32>
    %130 = math.exp %129 : vector<2x32xf32>
    %cst_62 = arith.constant 1.000000e+00 : f32
    %131 = vector.broadcast %cst_62 : f32 to vector<2x32xf32>
    %132 = arith.addf %131, %130 : vector<2x32xf32>
    %133 = arith.divf %131, %132 : vector<2x32xf32>
    %134 = vector.extract_strided_slice %120 {offsets = [0, 32], sizes = [2, 32], strides = [1, 1]} : vector<2x96xf32> to vector<2x32xf32>
    %135 = vector.extract_strided_slice %125 {offsets = [0, 32], sizes = [2, 32], strides = [1, 1]} : vector<2x96xf32> to vector<2x32xf32>
    %136 = arith.addf %134, %135 : vector<2x32xf32>
    %137 = arith.negf %136 : vector<2x32xf32>
    %138 = math.exp %137 : vector<2x32xf32>
    %cst_63 = arith.constant 1.000000e+00 : f32
    %139 = vector.broadcast %cst_63 : f32 to vector<2x32xf32>
    %140 = arith.addf %139, %138 : vector<2x32xf32>
    %141 = arith.divf %139, %140 : vector<2x32xf32>
    %142 = vector.extract_strided_slice %120 {offsets = [0, 64], sizes = [2, 32], strides = [1, 1]} : vector<2x96xf32> to vector<2x32xf32>
    %143 = vector.extract_strided_slice %125 {offsets = [0, 64], sizes = [2, 32], strides = [1, 1]} : vector<2x96xf32> to vector<2x32xf32>
    %144 = arith.mulf %133, %143 : vector<2x32xf32>
    %145 = arith.addf %142, %144 : vector<2x32xf32>
    %146 = math.tanh %145 : vector<2x32xf32>
    %cst_64 = arith.constant 1.000000e+00 : f32
    %147 = vector.broadcast %cst_64 : f32 to vector<2x32xf32>
    %148 = arith.subf %147, %141 : vector<2x32xf32>
    %149 = arith.mulf %148, %146 : vector<2x32xf32>
    %150 = arith.mulf %141, %67 : vector<2x32xf32>
    %151 = arith.addf %149, %150 : vector<2x32xf32>
    %c0_65 = arith.constant 0 : index
    %c0_66 = arith.constant 0 : index
    %152 = vector.load %arg11[%c0_65, %c0_66] : memref<32x32xf32, #tpu.memory_space<vmem>>, vector<32x32xf32>
    %cst_67 = arith.constant dense<0.000000e+00> : vector<2x32xf32>
    %153 = tpu.matmul %151, %152, %cst_67 {dimension_numbers = #tpu.dot_dimension_numbers<[1], [0], [0], [1], [0, 0, 1, 1], [], []>} : vector<2x32xf32>, vector<32x32xf32>, vector<2x32xf32> -> vector<2x32xf32>
    %154 = vector.shape_cast %153 : vector<2x32xf32> to vector<2x1x32xf32>
    %155 = vector.broadcast %154 : vector<2x1x32xf32> to vector<2x8x32xf32>
    %156 = arith.addf %29, %155 : vector<2x8x32xf32>
    %157 = math.tanh %156 : vector<2x8x32xf32>
    %158 = vector.shape_cast %6 : vector<1x32xf32> to vector<1x1x32xf32>
    %159 = vector.broadcast %158 : vector<1x1x32xf32> to vector<2x8x32xf32>
    %160 = arith.mulf %157, %159 : vector<2x8x32xf32>
    %cst_68 = arith.constant dense<0.000000e+00> : vector<2x8xf32>
    %161 = vector.multi_reduction <add>, %160, %cst_68 [2] : vector<2x8x32xf32> to vector<2x8xf32>
    %162 = arith.mulf %161, %3 : vector<2x8xf32>
    %163 = arith.addf %162, %5 : vector<2x8xf32>
    %cst_69 = arith.constant dense<0xFF800000> : vector<2xf32>
    %164 = vector.multi_reduction <maximumf>, %163, %cst_69 [1] : vector<2x8xf32> to vector<2xf32>
    %165 = vector.shape_cast %164 : vector<2xf32> to vector<2x1xf32>
    %166 = vector.broadcast %165 : vector<2x1xf32> to vector<2x8xf32>
    %167 = arith.subf %163, %166 : vector<2x8xf32>
    %168 = math.exp %167 : vector<2x8xf32>
    %cst_70 = arith.constant dense<0.000000e+00> : vector<2xf32>
    %169 = vector.multi_reduction <add>, %168, %cst_70 [1] : vector<2x8xf32> to vector<2xf32>
    %170 = vector.shape_cast %169 : vector<2xf32> to vector<2x1xf32>
    %171 = tpu.reciprocal %170 {approx = true} : vector<2x1xf32> -> vector<2x1xf32>
    %172 = vector.broadcast %171 : vector<2x1xf32> to vector<2x8xf32>
    %173 = arith.mulf %168, %172 : vector<2x8xf32>
    %174 = vector.shape_cast %173 : vector<2x8xf32> to vector<2x8x1xf32>
    %175 = vector.broadcast %174 : vector<2x8x1xf32> to vector<2x8x32xf32>
    %176 = arith.mulf %175, %0 : vector<2x8x32xf32>
    %cst_71 = arith.constant dense<0.000000e+00> : vector<2x32xf32>
    %177 = vector.multi_reduction <add>, %176, %cst_71 [1] : vector<2x8x32xf32> to vector<2x32xf32>
    %178 = tpu.concatenate %151, %177 in 1 : vector<2x32xf32>, vector<2x32xf32> -> vector<2x64xf32>
    %c0_72 = arith.constant 0 : index
    %c0_73 = arith.constant 0 : index
    %179 = vector.load %arg13[%c0_72, %c0_73] : memref<64x33xf32, #tpu.memory_space<vmem>>, vector<64x33xf32>
    %cst_74 = arith.constant dense<0.000000e+00> : vector<2x33xf32>
    %180 = tpu.matmul %178, %179, %cst_74 {dimension_numbers = #tpu.dot_dimension_numbers<[1], [0], [0], [1], [0, 0, 1, 1], [], []>} : vector<2x64xf32>, vector<64x33xf32>, vector<2x33xf32> -> vector<2x33xf32>
    %c0_75 = arith.constant 0 : index
    %c0_76 = arith.constant 0 : index
    %181 = vector.load %arg14[%c0_75, %c0_76] : memref<1x33xf32, #tpu.memory_space<vmem>>, vector<1x33xf32>
    %182 = vector.broadcast %181 : vector<1x33xf32> to vector<2x33xf32>
    %183 = arith.addf %180, %182 : vector<2x33xf32>
    %184 = vector.extract_strided_slice %116 {offsets = [0, 96], sizes = [2, 32], strides = [1, 1]} : vector<2x128xf32> to vector<2x32xf32>
    %185 = vector.extract_strided_slice %183 {offsets = [0, 0], sizes = [2, 32], strides = [1, 1]} : vector<2x33xf32> to vector<2x32xf32>
    %186 = arith.addf %184, %185 : vector<2x32xf32>
    %187 = vector.extract_strided_slice %183 {offsets = [0, 32], sizes = [2, 1], strides = [1, 1]} : vector<2x33xf32> to vector<2x1xf32>
    %188 = arith.negf %187 : vector<2x1xf32>
    %189 = math.exp %188 : vector<2x1xf32>
    %cst_77 = arith.constant 1.000000e+00 : f32
    %190 = vector.broadcast %cst_77 : f32 to vector<2x1xf32>
    %191 = arith.addf %190, %189 : vector<2x1xf32>
    %192 = arith.divf %190, %191 : vector<2x1xf32>
    %193 = vector.extract_strided_slice %186 {offsets = [0, 0], sizes = [2, 16], strides = [1, 1]} : vector<2x32xf32> to vector<2x16xf32>
    %194 = vector.extract_strided_slice %186 {offsets = [0, 16], sizes = [2, 16], strides = [1, 1]} : vector<2x32xf32> to vector<2x16xf32>
    %195 = arith.maximumf %193, %194 : vector<2x16xf32>
    %196 = tpu.concatenate %195, %173, %192 in 1 : vector<2x16xf32>, vector<2x8xf32>, vector<2x1xf32> -> vector<2x25xf32>
    %c1 = arith.constant 1 : index
    %c0_78 = arith.constant 0 : index
    %c0_79 = arith.constant 0 : index
    %197 = vector.load %arg15[%c1, %c0_78, %c0_79] : memref<6x2x25xf32, #tpu.memory_space<vmem>>, vector<1x2x25xf32>
    %198 = vector.shape_cast %197 : vector<1x2x25xf32> to vector<2x25xf32>
    %199 = vector.shape_cast %196 : vector<2x25xf32> to vector<1x2x25xf32>
    tpu.vector_store %arg15[%c1, %c0_78, %c0_79], %199 {strides = array<i32>} : memref<6x2x25xf32, #tpu.memory_space<vmem>>, vector<1x2x25xf32>,
    %200 = vector.extract_strided_slice %12 {offsets = [4, 0], sizes = [2, 128], strides = [1, 1]} : vector<12x128xf32> to vector<2x128xf32>
    %201 = vector.extract_strided_slice %200 {offsets = [0, 0], sizes = [2, 96], strides = [1, 1]} : vector<2x128xf32> to vector<2x96xf32>
    %c0_80 = arith.constant 0 : index
    %c0_81 = arith.constant 0 : index
    %202 = vector.load %arg6[%c0_80, %c0_81] : memref<32x96xf32, #tpu.memory_space<vmem>>, vector<32x96xf32>
    %cst_82 = arith.constant dense<0.000000e+00> : vector<2x96xf32>
    %203 = tpu.matmul %177, %202, %cst_82 {dimension_numbers = #tpu.dot_dimension_numbers<[1], [0], [0], [1], [0, 0, 1, 1], [], []>} : vector<2x32xf32>, vector<32x96xf32>, vector<2x96xf32> -> vector<2x96xf32>
    %204 = arith.addf %201, %203 : vector<2x96xf32>
    %c0_83 = arith.constant 0 : index
    %c0_84 = arith.constant 0 : index
    %205 = vector.load %arg7[%c0_83, %c0_84] : memref<32x96xf32, #tpu.memory_space<vmem>>, vector<32x96xf32>
    %cst_85 = arith.constant dense<0.000000e+00> : vector<2x96xf32>
    %206 = tpu.matmul %151, %205, %cst_85 {dimension_numbers = #tpu.dot_dimension_numbers<[1], [0], [0], [1], [0, 0, 1, 1], [], []>} : vector<2x32xf32>, vector<32x96xf32>, vector<2x96xf32> -> vector<2x96xf32>
    %c0_86 = arith.constant 0 : index
    %c0_87 = arith.constant 0 : index
    %207 = vector.load %arg8[%c0_86, %c0_87] : memref<1x96xf32, #tpu.memory_space<vmem>>, vector<1x96xf32>
    %208 = vector.broadcast %207 : vector<1x96xf32> to vector<2x96xf32>
    %209 = arith.addf %206, %208 : vector<2x96xf32>
    %210 = vector.extract_strided_slice %204 {offsets = [0, 0], sizes = [2, 32], strides = [1, 1]} : vector<2x96xf32> to vector<2x32xf32>
    %211 = vector.extract_strided_slice %209 {offsets = [0, 0], sizes = [2, 32], strides = [1, 1]} : vector<2x96xf32> to vector<2x32xf32>
    %212 = arith.addf %210, %211 : vector<2x32xf32>
    %213 = arith.negf %212 : vector<2x32xf32>
    %214 = math.exp %213 : vector<2x32xf32>
    %cst_88 = arith.constant 1.000000e+00 : f32
    %215 = vector.broadcast %cst_88 : f32 to vector<2x32xf32>
    %216 = arith.addf %215, %214 : vector<2x32xf32>
    %217 = arith.divf %215, %216 : vector<2x32xf32>
    %218 = vector.extract_strided_slice %204 {offsets = [0, 32], sizes = [2, 32], strides = [1, 1]} : vector<2x96xf32> to vector<2x32xf32>
    %219 = vector.extract_strided_slice %209 {offsets = [0, 32], sizes = [2, 32], strides = [1, 1]} : vector<2x96xf32> to vector<2x32xf32>
    %220 = arith.addf %218, %219 : vector<2x32xf32>
    %221 = arith.negf %220 : vector<2x32xf32>
    %222 = math.exp %221 : vector<2x32xf32>
    %cst_89 = arith.constant 1.000000e+00 : f32
    %223 = vector.broadcast %cst_89 : f32 to vector<2x32xf32>
    %224 = arith.addf %223, %222 : vector<2x32xf32>
    %225 = arith.divf %223, %224 : vector<2x32xf32>
    %226 = vector.extract_strided_slice %204 {offsets = [0, 64], sizes = [2, 32], strides = [1, 1]} : vector<2x96xf32> to vector<2x32xf32>
    %227 = vector.extract_strided_slice %209 {offsets = [0, 64], sizes = [2, 32], strides = [1, 1]} : vector<2x96xf32> to vector<2x32xf32>
    %228 = arith.mulf %217, %227 : vector<2x32xf32>
    %229 = arith.addf %226, %228 : vector<2x32xf32>
    %230 = math.tanh %229 : vector<2x32xf32>
    %cst_90 = arith.constant 1.000000e+00 : f32
    %231 = vector.broadcast %cst_90 : f32 to vector<2x32xf32>
    %232 = arith.subf %231, %225 : vector<2x32xf32>
    %233 = arith.mulf %232, %230 : vector<2x32xf32>
    %234 = arith.mulf %225, %151 : vector<2x32xf32>
    %235 = arith.addf %233, %234 : vector<2x32xf32>
    %c0_91 = arith.constant 0 : index
    %c0_92 = arith.constant 0 : index
    %236 = vector.load %arg11[%c0_91, %c0_92] : memref<32x32xf32, #tpu.memory_space<vmem>>, vector<32x32xf32>
    %cst_93 = arith.constant dense<0.000000e+00> : vector<2x32xf32>
    %237 = tpu.matmul %235, %236, %cst_93 {dimension_numbers = #tpu.dot_dimension_numbers<[1], [0], [0], [1], [0, 0, 1, 1], [], []>} : vector<2x32xf32>, vector<32x32xf32>, vector<2x32xf32> -> vector<2x32xf32>
    %238 = vector.shape_cast %237 : vector<2x32xf32> to vector<2x1x32xf32>
    %239 = vector.broadcast %238 : vector<2x1x32xf32> to vector<2x8x32xf32>
    %240 = arith.addf %29, %239 : vector<2x8x32xf32>
    %241 = math.tanh %240 : vector<2x8x32xf32>
    %242 = vector.shape_cast %6 : vector<1x32xf32> to vector<1x1x32xf32>
    %243 = vector.broadcast %242 : vector<1x1x32xf32> to vector<2x8x32xf32>
    %244 = arith.mulf %241, %243 : vector<2x8x32xf32>
    %cst_94 = arith.constant dense<0.000000e+00> : vector<2x8xf32>
    %245 = vector.multi_reduction <add>, %244, %cst_94 [2] : vector<2x8x32xf32> to vector<2x8xf32>
    %246 = arith.mulf %245, %3 : vector<2x8xf32>
    %247 = arith.addf %246, %5 : vector<2x8xf32>
    %cst_95 = arith.constant dense<0xFF800000> : vector<2xf32>
    %248 = vector.multi_reduction <maximumf>, %247, %cst_95 [1] : vector<2x8xf32> to vector<2xf32>
    %249 = vector.shape_cast %248 : vector<2xf32> to vector<2x1xf32>
    %250 = vector.broadcast %249 : vector<2x1xf32> to vector<2x8xf32>
    %251 = arith.subf %247, %250 : vector<2x8xf32>
    %252 = math.exp %251 : vector<2x8xf32>
    %cst_96 = arith.constant dense<0.000000e+00> : vector<2xf32>
    %253 = vector.multi_reduction <add>, %252, %cst_96 [1] : vector<2x8xf32> to vector<2xf32>
    %254 = vector.shape_cast %253 : vector<2xf32> to vector<2x1xf32>
    %255 = tpu.reciprocal %254 {approx = true} : vector<2x1xf32> -> vector<2x1xf32>
    %256 = vector.broadcast %255 : vector<2x1xf32> to vector<2x8xf32>
    %257 = arith.mulf %252, %256 : vector<2x8xf32>
    %258 = vector.shape_cast %257 : vector<2x8xf32> to vector<2x8x1xf32>
    %259 = vector.broadcast %258 : vector<2x8x1xf32> to vector<2x8x32xf32>
    %260 = arith.mulf %259, %0 : vector<2x8x32xf32>
    %cst_97 = arith.constant dense<0.000000e+00> : vector<2x32xf32>
    %261 = vector.multi_reduction <add>, %260, %cst_97 [1] : vector<2x8x32xf32> to vector<2x32xf32>
    %262 = tpu.concatenate %235, %261 in 1 : vector<2x32xf32>, vector<2x32xf32> -> vector<2x64xf32>
    %c0_98 = arith.constant 0 : index
    %c0_99 = arith.constant 0 : index
    %263 = vector.load %arg13[%c0_98, %c0_99] : memref<64x33xf32, #tpu.memory_space<vmem>>, vector<64x33xf32>
    %cst_100 = arith.constant dense<0.000000e+00> : vector<2x33xf32>
    %264 = tpu.matmul %262, %263, %cst_100 {dimension_numbers = #tpu.dot_dimension_numbers<[1], [0], [0], [1], [0, 0, 1, 1], [], []>} : vector<2x64xf32>, vector<64x33xf32>, vector<2x33xf32> -> vector<2x33xf32>
    %c0_101 = arith.constant 0 : index
    %c0_102 = arith.constant 0 : index
    %265 = vector.load %arg14[%c0_101, %c0_102] : memref<1x33xf32, #tpu.memory_space<vmem>>, vector<1x33xf32>
    %266 = vector.broadcast %265 : vector<1x33xf32> to vector<2x33xf32>
    %267 = arith.addf %264, %266 : vector<2x33xf32>
    %268 = vector.extract_strided_slice %200 {offsets = [0, 96], sizes = [2, 32], strides = [1, 1]} : vector<2x128xf32> to vector<2x32xf32>
    %269 = vector.extract_strided_slice %267 {offsets = [0, 0], sizes = [2, 32], strides = [1, 1]} : vector<2x33xf32> to vector<2x32xf32>
    %270 = arith.addf %268, %269 : vector<2x32xf32>
    %271 = vector.extract_strided_slice %267 {offsets = [0, 32], sizes = [2, 1], strides = [1, 1]} : vector<2x33xf32> to vector<2x1xf32>
    %272 = arith.negf %271 : vector<2x1xf32>
    %273 = math.exp %272 : vector<2x1xf32>
    %cst_103 = arith.constant 1.000000e+00 : f32
    %274 = vector.broadcast %cst_103 : f32 to vector<2x1xf32>
    %275 = arith.addf %274, %273 : vector<2x1xf32>
    %276 = arith.divf %274, %275 : vector<2x1xf32>
    %277 = vector.extract_strided_slice %270 {offsets = [0, 0], sizes = [2, 16], strides = [1, 1]} : vector<2x32xf32> to vector<2x16xf32>
    %278 = vector.extract_strided_slice %270 {offsets = [0, 16], sizes = [2, 16], strides = [1, 1]} : vector<2x32xf32> to vector<2x16xf32>
    %279 = arith.maximumf %277, %278 : vector<2x16xf32>
    %280 = tpu.concatenate %279, %257, %276 in 1 : vector<2x16xf32>, vector<2x8xf32>, vector<2x1xf32> -> vector<2x25xf32>
    %c2 = arith.constant 2 : index
    %c0_104 = arith.constant 0 : index
    %c0_105 = arith.constant 0 : index
    %281 = vector.load %arg15[%c2, %c0_104, %c0_105] : memref<6x2x25xf32, #tpu.memory_space<vmem>>, vector<1x2x25xf32>
    %282 = vector.shape_cast %281 : vector<1x2x25xf32> to vector<2x25xf32>
    %283 = vector.shape_cast %280 : vector<2x25xf32> to vector<1x2x25xf32>
    tpu.vector_store %arg15[%c2, %c0_104, %c0_105], %283 {strides = array<i32>} : memref<6x2x25xf32, #tpu.memory_space<vmem>>, vector<1x2x25xf32>,
    %284 = vector.extract_strided_slice %12 {offsets = [6, 0], sizes = [2, 128], strides = [1, 1]} : vector<12x128xf32> to vector<2x128xf32>
    %285 = vector.extract_strided_slice %284 {offsets = [0, 0], sizes = [2, 96], strides = [1, 1]} : vector<2x128xf32> to vector<2x96xf32>
    %c0_106 = arith.constant 0 : index
    %c0_107 = arith.constant 0 : index
    %286 = vector.load %arg6[%c0_106, %c0_107] : memref<32x96xf32, #tpu.memory_space<vmem>>, vector<32x96xf32>
    %cst_108 = arith.constant dense<0.000000e+00> : vector<2x96xf32>
    %287 = tpu.matmul %261, %286, %cst_108 {dimension_numbers = #tpu.dot_dimension_numbers<[1], [0], [0], [1], [0, 0, 1, 1], [], []>} : vector<2x32xf32>, vector<32x96xf32>, vector<2x96xf32> -> vector<2x96xf32>
    %288 = arith.addf %285, %287 : vector<2x96xf32>
    %c0_109 = arith.constant 0 : index
    %c0_110 = arith.constant 0 : index
    %289 = vector.load %arg7[%c0_109, %c0_110] : memref<32x96xf32, #tpu.memory_space<vmem>>, vector<32x96xf32>
    %cst_111 = arith.constant dense<0.000000e+00> : vector<2x96xf32>
    %290 = tpu.matmul %235, %289, %cst_111 {dimension_numbers = #tpu.dot_dimension_numbers<[1], [0], [0], [1], [0, 0, 1, 1], [], []>} : vector<2x32xf32>, vector<32x96xf32>, vector<2x96xf32> -> vector<2x96xf32>
    %c0_112 = arith.constant 0 : index
    %c0_113 = arith.constant 0 : index
    %291 = vector.load %arg8[%c0_112, %c0_113] : memref<1x96xf32, #tpu.memory_space<vmem>>, vector<1x96xf32>
    %292 = vector.broadcast %291 : vector<1x96xf32> to vector<2x96xf32>
    %293 = arith.addf %290, %292 : vector<2x96xf32>
    %294 = vector.extract_strided_slice %288 {offsets = [0, 0], sizes = [2, 32], strides = [1, 1]} : vector<2x96xf32> to vector<2x32xf32>
    %295 = vector.extract_strided_slice %293 {offsets = [0, 0], sizes = [2, 32], strides = [1, 1]} : vector<2x96xf32> to vector<2x32xf32>
    %296 = arith.addf %294, %295 : vector<2x32xf32>
    %297 = arith.negf %296 : vector<2x32xf32>
    %298 = math.exp %297 : vector<2x32xf32>
    %cst_114 = arith.constant 1.000000e+00 : f32
    %299 = vector.broadcast %cst_114 : f32 to vector<2x32xf32>
    %300 = arith.addf %299, %298 : vector<2x32xf32>
    %301 = arith.divf %299, %300 : vector<2x32xf32>
    %302 = vector.extract_strided_slice %288 {offsets = [0, 32], sizes = [2, 32], strides = [1, 1]} : vector<2x96xf32> to vector<2x32xf32>
    %303 = vector.extract_strided_slice %293 {offsets = [0, 32], sizes = [2, 32], strides = [1, 1]} : vector<2x96xf32> to vector<2x32xf32>
    %304 = arith.addf %302, %303 : vector<2x32xf32>
    %305 = arith.negf %304 : vector<2x32xf32>
    %306 = math.exp %305 : vector<2x32xf32>
    %cst_115 = arith.constant 1.000000e+00 : f32
    %307 = vector.broadcast %cst_115 : f32 to vector<2x32xf32>
    %308 = arith.addf %307, %306 : vector<2x32xf32>
    %309 = arith.divf %307, %308 : vector<2x32xf32>
    %310 = vector.extract_strided_slice %288 {offsets = [0, 64], sizes = [2, 32], strides = [1, 1]} : vector<2x96xf32> to vector<2x32xf32>
    %311 = vector.extract_strided_slice %293 {offsets = [0, 64], sizes = [2, 32], strides = [1, 1]} : vector<2x96xf32> to vector<2x32xf32>
    %312 = arith.mulf %301, %311 : vector<2x32xf32>
    %313 = arith.addf %310, %312 : vector<2x32xf32>
    %314 = math.tanh %313 : vector<2x32xf32>
    %cst_116 = arith.constant 1.000000e+00 : f32
    %315 = vector.broadcast %cst_116 : f32 to vector<2x32xf32>
    %316 = arith.subf %315, %309 : vector<2x32xf32>
    %317 = arith.mulf %316, %314 : vector<2x32xf32>
    %318 = arith.mulf %309, %235 : vector<2x32xf32>
    %319 = arith.addf %317, %318 : vector<2x32xf32>
    %c0_117 = arith.constant 0 : index
    %c0_118 = arith.constant 0 : index
    %320 = vector.load %arg11[%c0_117, %c0_118] : memref<32x32xf32, #tpu.memory_space<vmem>>, vector<32x32xf32>
    %cst_119 = arith.constant dense<0.000000e+00> : vector<2x32xf32>
    %321 = tpu.matmul %319, %320, %cst_119 {dimension_numbers = #tpu.dot_dimension_numbers<[1], [0], [0], [1], [0, 0, 1, 1], [], []>} : vector<2x32xf32>, vector<32x32xf32>, vector<2x32xf32> -> vector<2x32xf32>
    %322 = vector.shape_cast %321 : vector<2x32xf32> to vector<2x1x32xf32>
    %323 = vector.broadcast %322 : vector<2x1x32xf32> to vector<2x8x32xf32>
    %324 = arith.addf %29, %323 : vector<2x8x32xf32>
    %325 = math.tanh %324 : vector<2x8x32xf32>
    %326 = vector.shape_cast %6 : vector<1x32xf32> to vector<1x1x32xf32>
    %327 = vector.broadcast %326 : vector<1x1x32xf32> to vector<2x8x32xf32>
    %328 = arith.mulf %325, %327 : vector<2x8x32xf32>
    %cst_120 = arith.constant dense<0.000000e+00> : vector<2x8xf32>
    %329 = vector.multi_reduction <add>, %328, %cst_120 [2] : vector<2x8x32xf32> to vector<2x8xf32>
    %330 = arith.mulf %329, %3 : vector<2x8xf32>
    %331 = arith.addf %330, %5 : vector<2x8xf32>
    %cst_121 = arith.constant dense<0xFF800000> : vector<2xf32>
    %332 = vector.multi_reduction <maximumf>, %331, %cst_121 [1] : vector<2x8xf32> to vector<2xf32>
    %333 = vector.shape_cast %332 : vector<2xf32> to vector<2x1xf32>
    %334 = vector.broadcast %333 : vector<2x1xf32> to vector<2x8xf32>
    %335 = arith.subf %331, %334 : vector<2x8xf32>
    %336 = math.exp %335 : vector<2x8xf32>
    %cst_122 = arith.constant dense<0.000000e+00> : vector<2xf32>
    %337 = vector.multi_reduction <add>, %336, %cst_122 [1] : vector<2x8xf32> to vector<2xf32>
    %338 = vector.shape_cast %337 : vector<2xf32> to vector<2x1xf32>
    %339 = tpu.reciprocal %338 {approx = true} : vector<2x1xf32> -> vector<2x1xf32>
    %340 = vector.broadcast %339 : vector<2x1xf32> to vector<2x8xf32>
    %341 = arith.mulf %336, %340 : vector<2x8xf32>
    %342 = vector.shape_cast %341 : vector<2x8xf32> to vector<2x8x1xf32>
    %343 = vector.broadcast %342 : vector<2x8x1xf32> to vector<2x8x32xf32>
    %344 = arith.mulf %343, %0 : vector<2x8x32xf32>
    %cst_123 = arith.constant dense<0.000000e+00> : vector<2x32xf32>
    %345 = vector.multi_reduction <add>, %344, %cst_123 [1] : vector<2x8x32xf32> to vector<2x32xf32>
    %346 = tpu.concatenate %319, %345 in 1 : vector<2x32xf32>, vector<2x32xf32> -> vector<2x64xf32>
    %c0_124 = arith.constant 0 : index
    %c0_125 = arith.constant 0 : index
    %347 = vector.load %arg13[%c0_124, %c0_125] : memref<64x33xf32, #tpu.memory_space<vmem>>, vector<64x33xf32>
    %cst_126 = arith.constant dense<0.000000e+00> : vector<2x33xf32>
    %348 = tpu.matmul %346, %347, %cst_126 {dimension_numbers = #tpu.dot_dimension_numbers<[1], [0], [0], [1], [0, 0, 1, 1], [], []>} : vector<2x64xf32>, vector<64x33xf32>, vector<2x33xf32> -> vector<2x33xf32>
    %c0_127 = arith.constant 0 : index
    %c0_128 = arith.constant 0 : index
    %349 = vector.load %arg14[%c0_127, %c0_128] : memref<1x33xf32, #tpu.memory_space<vmem>>, vector<1x33xf32>
    %350 = vector.broadcast %349 : vector<1x33xf32> to vector<2x33xf32>
    %351 = arith.addf %348, %350 : vector<2x33xf32>
    %352 = vector.extract_strided_slice %284 {offsets = [0, 96], sizes = [2, 32], strides = [1, 1]} : vector<2x128xf32> to vector<2x32xf32>
    %353 = vector.extract_strided_slice %351 {offsets = [0, 0], sizes = [2, 32], strides = [1, 1]} : vector<2x33xf32> to vector<2x32xf32>
    %354 = arith.addf %352, %353 : vector<2x32xf32>
    %355 = vector.extract_strided_slice %351 {offsets = [0, 32], sizes = [2, 1], strides = [1, 1]} : vector<2x33xf32> to vector<2x1xf32>
    %356 = arith.negf %355 : vector<2x1xf32>
    %357 = math.exp %356 : vector<2x1xf32>
    %cst_129 = arith.constant 1.000000e+00 : f32
    %358 = vector.broadcast %cst_129 : f32 to vector<2x1xf32>
    %359 = arith.addf %358, %357 : vector<2x1xf32>
    %360 = arith.divf %358, %359 : vector<2x1xf32>
    %361 = vector.extract_strided_slice %354 {offsets = [0, 0], sizes = [2, 16], strides = [1, 1]} : vector<2x32xf32> to vector<2x16xf32>
    %362 = vector.extract_strided_slice %354 {offsets = [0, 16], sizes = [2, 16], strides = [1, 1]} : vector<2x32xf32> to vector<2x16xf32>
    %363 = arith.maximumf %361, %362 : vector<2x16xf32>
    %364 = tpu.concatenate %363, %341, %360 in 1 : vector<2x16xf32>, vector<2x8xf32>, vector<2x1xf32> -> vector<2x25xf32>
    %c3 = arith.constant 3 : index
    %c0_130 = arith.constant 0 : index
    %c0_131 = arith.constant 0 : index
    %365 = vector.load %arg15[%c3, %c0_130, %c0_131] : memref<6x2x25xf32, #tpu.memory_space<vmem>>, vector<1x2x25xf32>
    %366 = vector.shape_cast %365 : vector<1x2x25xf32> to vector<2x25xf32>
    %367 = vector.shape_cast %364 : vector<2x25xf32> to vector<1x2x25xf32>
    tpu.vector_store %arg15[%c3, %c0_130, %c0_131], %367 {strides = array<i32>} : memref<6x2x25xf32, #tpu.memory_space<vmem>>, vector<1x2x25xf32>,
    %368 = vector.extract_strided_slice %12 {offsets = [8, 0], sizes = [2, 128], strides = [1, 1]} : vector<12x128xf32> to vector<2x128xf32>
    %369 = vector.extract_strided_slice %368 {offsets = [0, 0], sizes = [2, 96], strides = [1, 1]} : vector<2x128xf32> to vector<2x96xf32>
    %c0_132 = arith.constant 0 : index
    %c0_133 = arith.constant 0 : index
    %370 = vector.load %arg6[%c0_132, %c0_133] : memref<32x96xf32, #tpu.memory_space<vmem>>, vector<32x96xf32>
    %cst_134 = arith.constant dense<0.000000e+00> : vector<2x96xf32>
    %371 = tpu.matmul %345, %370, %cst_134 {dimension_numbers = #tpu.dot_dimension_numbers<[1], [0], [0], [1], [0, 0, 1, 1], [], []>} : vector<2x32xf32>, vector<32x96xf32>, vector<2x96xf32> -> vector<2x96xf32>
    %372 = arith.addf %369, %371 : vector<2x96xf32>
    %c0_135 = arith.constant 0 : index
    %c0_136 = arith.constant 0 : index
    %373 = vector.load %arg7[%c0_135, %c0_136] : memref<32x96xf32, #tpu.memory_space<vmem>>, vector<32x96xf32>
    %cst_137 = arith.constant dense<0.000000e+00> : vector<2x96xf32>
    %374 = tpu.matmul %319, %373, %cst_137 {dimension_numbers = #tpu.dot_dimension_numbers<[1], [0], [0], [1], [0, 0, 1, 1], [], []>} : vector<2x32xf32>, vector<32x96xf32>, vector<2x96xf32> -> vector<2x96xf32>
    %c0_138 = arith.constant 0 : index
    %c0_139 = arith.constant 0 : index
    %375 = vector.load %arg8[%c0_138, %c0_139] : memref<1x96xf32, #tpu.memory_space<vmem>>, vector<1x96xf32>
    %376 = vector.broadcast %375 : vector<1x96xf32> to vector<2x96xf32>
    %377 = arith.addf %374, %376 : vector<2x96xf32>
    %378 = vector.extract_strided_slice %372 {offsets = [0, 0], sizes = [2, 32], strides = [1, 1]} : vector<2x96xf32> to vector<2x32xf32>
    %379 = vector.extract_strided_slice %377 {offsets = [0, 0], sizes = [2, 32], strides = [1, 1]} : vector<2x96xf32> to vector<2x32xf32>
    %380 = arith.addf %378, %379 : vector<2x32xf32>
    %381 = arith.negf %380 : vector<2x32xf32>
    %382 = math.exp %381 : vector<2x32xf32>
    %cst_140 = arith.constant 1.000000e+00 : f32
    %383 = vector.broadcast %cst_140 : f32 to vector<2x32xf32>
    %384 = arith.addf %383, %382 : vector<2x32xf32>
    %385 = arith.divf %383, %384 : vector<2x32xf32>
    %386 = vector.extract_strided_slice %372 {offsets = [0, 32], sizes = [2, 32], strides = [1, 1]} : vector<2x96xf32> to vector<2x32xf32>
    %387 = vector.extract_strided_slice %377 {offsets = [0, 32], sizes = [2, 32], strides = [1, 1]} : vector<2x96xf32> to vector<2x32xf32>
    %388 = arith.addf %386, %387 : vector<2x32xf32>
    %389 = arith.negf %388 : vector<2x32xf32>
    %390 = math.exp %389 : vector<2x32xf32>
    %cst_141 = arith.constant 1.000000e+00 : f32
    %391 = vector.broadcast %cst_141 : f32 to vector<2x32xf32>
    %392 = arith.addf %391, %390 : vector<2x32xf32>
    %393 = arith.divf %391, %392 : vector<2x32xf32>
    %394 = vector.extract_strided_slice %372 {offsets = [0, 64], sizes = [2, 32], strides = [1, 1]} : vector<2x96xf32> to vector<2x32xf32>
    %395 = vector.extract_strided_slice %377 {offsets = [0, 64], sizes = [2, 32], strides = [1, 1]} : vector<2x96xf32> to vector<2x32xf32>
    %396 = arith.mulf %385, %395 : vector<2x32xf32>
    %397 = arith.addf %394, %396 : vector<2x32xf32>
    %398 = math.tanh %397 : vector<2x32xf32>
    %cst_142 = arith.constant 1.000000e+00 : f32
    %399 = vector.broadcast %cst_142 : f32 to vector<2x32xf32>
    %400 = arith.subf %399, %393 : vector<2x32xf32>
    %401 = arith.mulf %400, %398 : vector<2x32xf32>
    %402 = arith.mulf %393, %319 : vector<2x32xf32>
    %403 = arith.addf %401, %402 : vector<2x32xf32>
    %c0_143 = arith.constant 0 : index
    %c0_144 = arith.constant 0 : index
    %404 = vector.load %arg11[%c0_143, %c0_144] : memref<32x32xf32, #tpu.memory_space<vmem>>, vector<32x32xf32>
    %cst_145 = arith.constant dense<0.000000e+00> : vector<2x32xf32>
    %405 = tpu.matmul %403, %404, %cst_145 {dimension_numbers = #tpu.dot_dimension_numbers<[1], [0], [0], [1], [0, 0, 1, 1], [], []>} : vector<2x32xf32>, vector<32x32xf32>, vector<2x32xf32> -> vector<2x32xf32>
    %406 = vector.shape_cast %405 : vector<2x32xf32> to vector<2x1x32xf32>
    %407 = vector.broadcast %406 : vector<2x1x32xf32> to vector<2x8x32xf32>
    %408 = arith.addf %29, %407 : vector<2x8x32xf32>
    %409 = math.tanh %408 : vector<2x8x32xf32>
    %410 = vector.shape_cast %6 : vector<1x32xf32> to vector<1x1x32xf32>
    %411 = vector.broadcast %410 : vector<1x1x32xf32> to vector<2x8x32xf32>
    %412 = arith.mulf %409, %411 : vector<2x8x32xf32>
    %cst_146 = arith.constant dense<0.000000e+00> : vector<2x8xf32>
    %413 = vector.multi_reduction <add>, %412, %cst_146 [2] : vector<2x8x32xf32> to vector<2x8xf32>
    %414 = arith.mulf %413, %3 : vector<2x8xf32>
    %415 = arith.addf %414, %5 : vector<2x8xf32>
    %cst_147 = arith.constant dense<0xFF800000> : vector<2xf32>
    %416 = vector.multi_reduction <maximumf>, %415, %cst_147 [1] : vector<2x8xf32> to vector<2xf32>
    %417 = vector.shape_cast %416 : vector<2xf32> to vector<2x1xf32>
    %418 = vector.broadcast %417 : vector<2x1xf32> to vector<2x8xf32>
    %419 = arith.subf %415, %418 : vector<2x8xf32>
    %420 = math.exp %419 : vector<2x8xf32>
    %cst_148 = arith.constant dense<0.000000e+00> : vector<2xf32>
    %421 = vector.multi_reduction <add>, %420, %cst_148 [1] : vector<2x8xf32> to vector<2xf32>
    %422 = vector.shape_cast %421 : vector<2xf32> to vector<2x1xf32>
    %423 = tpu.reciprocal %422 {approx = true} : vector<2x1xf32> -> vector<2x1xf32>
    %424 = vector.broadcast %423 : vector<2x1xf32> to vector<2x8xf32>
    %425 = arith.mulf %420, %424 : vector<2x8xf32>
    %426 = vector.shape_cast %425 : vector<2x8xf32> to vector<2x8x1xf32>
    %427 = vector.broadcast %426 : vector<2x8x1xf32> to vector<2x8x32xf32>
    %428 = arith.mulf %427, %0 : vector<2x8x32xf32>
    %cst_149 = arith.constant dense<0.000000e+00> : vector<2x32xf32>
    %429 = vector.multi_reduction <add>, %428, %cst_149 [1] : vector<2x8x32xf32> to vector<2x32xf32>
    %430 = tpu.concatenate %403, %429 in 1 : vector<2x32xf32>, vector<2x32xf32> -> vector<2x64xf32>
    %c0_150 = arith.constant 0 : index
    %c0_151 = arith.constant 0 : index
    %431 = vector.load %arg13[%c0_150, %c0_151] : memref<64x33xf32, #tpu.memory_space<vmem>>, vector<64x33xf32>
    %cst_152 = arith.constant dense<0.000000e+00> : vector<2x33xf32>
    %432 = tpu.matmul %430, %431, %cst_152 {dimension_numbers = #tpu.dot_dimension_numbers<[1], [0], [0], [1], [0, 0, 1, 1], [], []>} : vector<2x64xf32>, vector<64x33xf32>, vector<2x33xf32> -> vector<2x33xf32>
    %c0_153 = arith.constant 0 : index
    %c0_154 = arith.constant 0 : index
    %433 = vector.load %arg14[%c0_153, %c0_154] : memref<1x33xf32, #tpu.memory_space<vmem>>, vector<1x33xf32>
    %434 = vector.broadcast %433 : vector<1x33xf32> to vector<2x33xf32>
    %435 = arith.addf %432, %434 : vector<2x33xf32>
    %436 = vector.extract_strided_slice %368 {offsets = [0, 96], sizes = [2, 32], strides = [1, 1]} : vector<2x128xf32> to vector<2x32xf32>
    %437 = vector.extract_strided_slice %435 {offsets = [0, 0], sizes = [2, 32], strides = [1, 1]} : vector<2x33xf32> to vector<2x32xf32>
    %438 = arith.addf %436, %437 : vector<2x32xf32>
    %439 = vector.extract_strided_slice %435 {offsets = [0, 32], sizes = [2, 1], strides = [1, 1]} : vector<2x33xf32> to vector<2x1xf32>
    %440 = arith.negf %439 : vector<2x1xf32>
    %441 = math.exp %440 : vector<2x1xf32>
    %cst_155 = arith.constant 1.000000e+00 : f32
    %442 = vector.broadcast %cst_155 : f32 to vector<2x1xf32>
    %443 = arith.addf %442, %441 : vector<2x1xf32>
    %444 = arith.divf %442, %443 : vector<2x1xf32>
    %445 = vector.extract_strided_slice %438 {offsets = [0, 0], sizes = [2, 16], strides = [1, 1]} : vector<2x32xf32> to vector<2x16xf32>
    %446 = vector.extract_strided_slice %438 {offsets = [0, 16], sizes = [2, 16], strides = [1, 1]} : vector<2x32xf32> to vector<2x16xf32>
    %447 = arith.maximumf %445, %446 : vector<2x16xf32>
    %448 = tpu.concatenate %447, %425, %444 in 1 : vector<2x16xf32>, vector<2x8xf32>, vector<2x1xf32> -> vector<2x25xf32>
    %c4 = arith.constant 4 : index
    %c0_156 = arith.constant 0 : index
    %c0_157 = arith.constant 0 : index
    %449 = vector.load %arg15[%c4, %c0_156, %c0_157] : memref<6x2x25xf32, #tpu.memory_space<vmem>>, vector<1x2x25xf32>
    %450 = vector.shape_cast %449 : vector<1x2x25xf32> to vector<2x25xf32>
    %451 = vector.shape_cast %448 : vector<2x25xf32> to vector<1x2x25xf32>
    tpu.vector_store %arg15[%c4, %c0_156, %c0_157], %451 {strides = array<i32>} : memref<6x2x25xf32, #tpu.memory_space<vmem>>, vector<1x2x25xf32>,
    %452 = vector.extract_strided_slice %12 {offsets = [10, 0], sizes = [2, 128], strides = [1, 1]} : vector<12x128xf32> to vector<2x128xf32>
    %453 = vector.extract_strided_slice %452 {offsets = [0, 0], sizes = [2, 96], strides = [1, 1]} : vector<2x128xf32> to vector<2x96xf32>
    %c0_158 = arith.constant 0 : index
    %c0_159 = arith.constant 0 : index
    %454 = vector.load %arg6[%c0_158, %c0_159] : memref<32x96xf32, #tpu.memory_space<vmem>>, vector<32x96xf32>
    %cst_160 = arith.constant dense<0.000000e+00> : vector<2x96xf32>
    %455 = tpu.matmul %429, %454, %cst_160 {dimension_numbers = #tpu.dot_dimension_numbers<[1], [0], [0], [1], [0, 0, 1, 1], [], []>} : vector<2x32xf32>, vector<32x96xf32>, vector<2x96xf32> -> vector<2x96xf32>
    %456 = arith.addf %453, %455 : vector<2x96xf32>
    %c0_161 = arith.constant 0 : index
    %c0_162 = arith.constant 0 : index
    %457 = vector.load %arg7[%c0_161, %c0_162] : memref<32x96xf32, #tpu.memory_space<vmem>>, vector<32x96xf32>
    %cst_163 = arith.constant dense<0.000000e+00> : vector<2x96xf32>
    %458 = tpu.matmul %403, %457, %cst_163 {dimension_numbers = #tpu.dot_dimension_numbers<[1], [0], [0], [1], [0, 0, 1, 1], [], []>} : vector<2x32xf32>, vector<32x96xf32>, vector<2x96xf32> -> vector<2x96xf32>
    %c0_164 = arith.constant 0 : index
    %c0_165 = arith.constant 0 : index
    %459 = vector.load %arg8[%c0_164, %c0_165] : memref<1x96xf32, #tpu.memory_space<vmem>>, vector<1x96xf32>
    %460 = vector.broadcast %459 : vector<1x96xf32> to vector<2x96xf32>
    %461 = arith.addf %458, %460 : vector<2x96xf32>
    %462 = vector.extract_strided_slice %456 {offsets = [0, 0], sizes = [2, 32], strides = [1, 1]} : vector<2x96xf32> to vector<2x32xf32>
    %463 = vector.extract_strided_slice %461 {offsets = [0, 0], sizes = [2, 32], strides = [1, 1]} : vector<2x96xf32> to vector<2x32xf32>
    %464 = arith.addf %462, %463 : vector<2x32xf32>
    %465 = arith.negf %464 : vector<2x32xf32>
    %466 = math.exp %465 : vector<2x32xf32>
    %cst_166 = arith.constant 1.000000e+00 : f32
    %467 = vector.broadcast %cst_166 : f32 to vector<2x32xf32>
    %468 = arith.addf %467, %466 : vector<2x32xf32>
    %469 = arith.divf %467, %468 : vector<2x32xf32>
    %470 = vector.extract_strided_slice %456 {offsets = [0, 32], sizes = [2, 32], strides = [1, 1]} : vector<2x96xf32> to vector<2x32xf32>
    %471 = vector.extract_strided_slice %461 {offsets = [0, 32], sizes = [2, 32], strides = [1, 1]} : vector<2x96xf32> to vector<2x32xf32>
    %472 = arith.addf %470, %471 : vector<2x32xf32>
    %473 = arith.negf %472 : vector<2x32xf32>
    %474 = math.exp %473 : vector<2x32xf32>
    %cst_167 = arith.constant 1.000000e+00 : f32
    %475 = vector.broadcast %cst_167 : f32 to vector<2x32xf32>
    %476 = arith.addf %475, %474 : vector<2x32xf32>
    %477 = arith.divf %475, %476 : vector<2x32xf32>
    %478 = vector.extract_strided_slice %456 {offsets = [0, 64], sizes = [2, 32], strides = [1, 1]} : vector<2x96xf32> to vector<2x32xf32>
    %479 = vector.extract_strided_slice %461 {offsets = [0, 64], sizes = [2, 32], strides = [1, 1]} : vector<2x96xf32> to vector<2x32xf32>
    %480 = arith.mulf %469, %479 : vector<2x32xf32>
    %481 = arith.addf %478, %480 : vector<2x32xf32>
    %482 = math.tanh %481 : vector<2x32xf32>
    %cst_168 = arith.constant 1.000000e+00 : f32
    %483 = vector.broadcast %cst_168 : f32 to vector<2x32xf32>
    %484 = arith.subf %483, %477 : vector<2x32xf32>
    %485 = arith.mulf %484, %482 : vector<2x32xf32>
    %486 = arith.mulf %477, %403 : vector<2x32xf32>
    %487 = arith.addf %485, %486 : vector<2x32xf32>
    %c0_169 = arith.constant 0 : index
    %c0_170 = arith.constant 0 : index
    %488 = vector.load %arg11[%c0_169, %c0_170] : memref<32x32xf32, #tpu.memory_space<vmem>>, vector<32x32xf32>
    %cst_171 = arith.constant dense<0.000000e+00> : vector<2x32xf32>
    %489 = tpu.matmul %487, %488, %cst_171 {dimension_numbers = #tpu.dot_dimension_numbers<[1], [0], [0], [1], [0, 0, 1, 1], [], []>} : vector<2x32xf32>, vector<32x32xf32>, vector<2x32xf32> -> vector<2x32xf32>
    %490 = vector.shape_cast %489 : vector<2x32xf32> to vector<2x1x32xf32>
    %491 = vector.broadcast %490 : vector<2x1x32xf32> to vector<2x8x32xf32>
    %492 = arith.addf %29, %491 : vector<2x8x32xf32>
    %493 = math.tanh %492 : vector<2x8x32xf32>
    %494 = vector.shape_cast %6 : vector<1x32xf32> to vector<1x1x32xf32>
    %495 = vector.broadcast %494 : vector<1x1x32xf32> to vector<2x8x32xf32>
    %496 = arith.mulf %493, %495 : vector<2x8x32xf32>
    %cst_172 = arith.constant dense<0.000000e+00> : vector<2x8xf32>
    %497 = vector.multi_reduction <add>, %496, %cst_172 [2] : vector<2x8x32xf32> to vector<2x8xf32>
    %498 = arith.mulf %497, %3 : vector<2x8xf32>
    %499 = arith.addf %498, %5 : vector<2x8xf32>
    %cst_173 = arith.constant dense<0xFF800000> : vector<2xf32>
    %500 = vector.multi_reduction <maximumf>, %499, %cst_173 [1] : vector<2x8xf32> to vector<2xf32>
    %501 = vector.shape_cast %500 : vector<2xf32> to vector<2x1xf32>
    %502 = vector.broadcast %501 : vector<2x1xf32> to vector<2x8xf32>
    %503 = arith.subf %499, %502 : vector<2x8xf32>
    %504 = math.exp %503 : vector<2x8xf32>
    %cst_174 = arith.constant dense<0.000000e+00> : vector<2xf32>
    %505 = vector.multi_reduction <add>, %504, %cst_174 [1] : vector<2x8xf32> to vector<2xf32>
    %506 = vector.shape_cast %505 : vector<2xf32> to vector<2x1xf32>
    %507 = tpu.reciprocal %506 {approx = true} : vector<2x1xf32> -> vector<2x1xf32>
    %508 = vector.broadcast %507 : vector<2x1xf32> to vector<2x8xf32>
    %509 = arith.mulf %504, %508 : vector<2x8xf32>
    %510 = vector.shape_cast %509 : vector<2x8xf32> to vector<2x8x1xf32>
    %511 = vector.broadcast %510 : vector<2x8x1xf32> to vector<2x8x32xf32>
    %512 = arith.mulf %511, %0 : vector<2x8x32xf32>
    %cst_175 = arith.constant dense<0.000000e+00> : vector<2x32xf32>
    %513 = vector.multi_reduction <add>, %512, %cst_175 [1] : vector<2x8x32xf32> to vector<2x32xf32>
    %514 = tpu.concatenate %487, %513 in 1 : vector<2x32xf32>, vector<2x32xf32> -> vector<2x64xf32>
    %c0_176 = arith.constant 0 : index
    %c0_177 = arith.constant 0 : index
    %515 = vector.load %arg13[%c0_176, %c0_177] : memref<64x33xf32, #tpu.memory_space<vmem>>, vector<64x33xf32>
    %cst_178 = arith.constant dense<0.000000e+00> : vector<2x33xf32>
    %516 = tpu.matmul %514, %515, %cst_178 {dimension_numbers = #tpu.dot_dimension_numbers<[1], [0], [0], [1], [0, 0, 1, 1], [], []>} : vector<2x64xf32>, vector<64x33xf32>, vector<2x33xf32> -> vector<2x33xf32>
    %c0_179 = arith.constant 0 : index
    %c0_180 = arith.constant 0 : index
    %517 = vector.load %arg14[%c0_179, %c0_180] : memref<1x33xf32, #tpu.memory_space<vmem>>, vector<1x33xf32>
    %518 = vector.broadcast %517 : vector<1x33xf32> to vector<2x33xf32>
    %519 = arith.addf %516, %518 : vector<2x33xf32>
    %520 = vector.extract_strided_slice %452 {offsets = [0, 96], sizes = [2, 32], strides = [1, 1]} : vector<2x128xf32> to vector<2x32xf32>
    %521 = vector.extract_strided_slice %519 {offsets = [0, 0], sizes = [2, 32], strides = [1, 1]} : vector<2x33xf32> to vector<2x32xf32>
    %522 = arith.addf %520, %521 : vector<2x32xf32>
    %523 = vector.extract_strided_slice %519 {offsets = [0, 32], sizes = [2, 1], strides = [1, 1]} : vector<2x33xf32> to vector<2x1xf32>
    %524 = arith.negf %523 : vector<2x1xf32>
    %525 = math.exp %524 : vector<2x1xf32>
    %cst_181 = arith.constant 1.000000e+00 : f32
    %526 = vector.broadcast %cst_181 : f32 to vector<2x1xf32>
    %527 = arith.addf %526, %525 : vector<2x1xf32>
    %528 = arith.divf %526, %527 : vector<2x1xf32>
    %529 = vector.extract_strided_slice %522 {offsets = [0, 0], sizes = [2, 16], strides = [1, 1]} : vector<2x32xf32> to vector<2x16xf32>
    %530 = vector.extract_strided_slice %522 {offsets = [0, 16], sizes = [2, 16], strides = [1, 1]} : vector<2x32xf32> to vector<2x16xf32>
    %531 = arith.maximumf %529, %530 : vector<2x16xf32>
    %532 = tpu.concatenate %531, %509, %528 in 1 : vector<2x16xf32>, vector<2x8xf32>, vector<2x1xf32> -> vector<2x25xf32>
    %c5 = arith.constant 5 : index
    %c0_182 = arith.constant 0 : index
    %c0_183 = arith.constant 0 : index
    %533 = vector.load %arg15[%c5, %c0_182, %c0_183] : memref<6x2x25xf32, #tpu.memory_space<vmem>>, vector<1x2x25xf32>
    %534 = vector.shape_cast %533 : vector<1x2x25xf32> to vector<2x25xf32>
    %535 = vector.shape_cast %532 : vector<2x25xf32> to vector<1x2x25xf32>
    tpu.vector_store %arg15[%c5, %c0_182, %c0_183], %535 {strides = array<i32>} : memref<6x2x25xf32, #tpu.memory_space<vmem>>, vector<1x2x25xf32>,
    return
  }
}

</mosaic_0001>

<bundles_post_ra>
// kernel: nmt_forward.2
= control target key start
LH: loop header
LB: loop body
LE: loop exit
PB: predicated region body
PF: predicated region fallthrough
CT: control target
= control target key end

     0   :  { %v1890_v0 = vmov 0.0|0.0   ;;  %vm1891_vm0 = vmmov 0   ;;  %v1892_v4 = vmov 0.0   ;;  %vm42_vm1 = vcmask 326656   ;;  %s1893_s26 = smov 96   ;;  %s1896_s29 = smov 80   ;;  %s2298_s1 = inlined_call_operand.vmem [shape: f32[40,96], index: 1, kind: input, shape index: {}]   ;;  %s2299_s3 = inlined_call_operand.vmem [shape: f32[32,96], index: 3, kind: input, shape index: {}]   ;;  %s2300_s0 = inlined_call_operand.vmem [shape: f32[16,40], index: 0, kind: input, shape index: {}]   ;;  %s2301_s4 = inlined_call_operand.vmem [shape: f32[1,96], index: 4, kind: input, shape index: {}]   ;;  %s2302_s2 = inlined_call_operand.vmem [shape: f32[1,96], index: 2, kind: input, shape index: {}]   ;;  %s2303_s7 = inlined_call_operand.vmem [shape: f32[8,2,32], index: 7, kind: output, shape index: {0}]   ;;  %s2304_s5 = inlined_call_operand.vmem [shape: f32[16,32], index: 5, kind: input, shape index: {}]   ;;  %s2305_s6 = inlined_call_operand.vmem [shape: f32[1,32], index: 6, kind: input, shape index: {}]   ;;  %s2306_s8 = inlined_call_operand.vmem [shape: f32[2,32], index: 8, kind: output, shape index: {1}]  }
   0x1   :  { %1732 = vmatprep.subr.bf16.mxu1 %v1890_v0  ;;  %v30_v1 = vld [vmem:[%s2298_s1] sm:$0xff]  ;;  %v31_v2 = vld [vmem:[%s2298_s1 + $0x8] sm:$0xff]  ;;  %1637 = vmatprep.mubr.msk.f32.mxu1 %vm1891_vm0, %v1892_v4  ;;  %v32_v7 = vld [vmem:[%s2298_s1 + $0x10] sm:$0xff]  ;;  %vm266_vm2 = vcmask 123904   ;;  %vm279_vm3 = vcmask 130048   ;;  %vm135_vm4 = vcmask 261120  }
   0x2   :  { %v124_v3 = vld [vmem:[%s2299_s3] sm:$0xff]  ;;  %v1724_v5 = vpack.c.bf16 %v31_v2, %v30_v1  ;;  %v125_v6 = vld [vmem:[%s2299_s3 + $0x8] sm:$0xff]  ;;  %v33_v8 = vld [vmem:[%s2298_s1 + $0x18] sm:$0xff]  ;;  %s1897_s10 = smov 48   ;;  %s1898_s11 = smov 16   ;;  %vm433_vm5 = vcmask 125954  }
   0x3   :  { %v1965_v9 = vpack.c.bf16 %v125_v6, %v124_v3  ;;  %v1728_v10 = vpack.c.bf16 %v33_v8, %v32_v7  ;;  %v126_v11 = vld [vmem:[%s2299_s3 + $0x10] sm:$0xff]  ;;  %v127_v12 = vld [vmem:[%s2299_s3 + $0x18] sm:$0xff]  ;;  %v28_v13 = vld [vmem:[%s2300_s0] sm:$0xff]  ;;  %vm599_vm6 = vcmask 128004   ;;  %vm763_vm7 = vcmask 130054  }
   0x4   :  { %1725 = vmatprep.subr.bf16.mxu0 %v1724_v5  ;;  %v1977_v14 = vpack.c.bf16 %v127_v12, %v126_v11  ;;  %v34_v15 = vld [vmem:[%s2298_s1 + $0x20] sm:$0xff]  ;;  %1626 = vmatprep.mubr.msk.f32.mxu0 %vm42_vm1, %v28_v13  ;;  %v29_v16 = vld [vmem:[%s2300_s0 + $0x8] sm:$0xff]  ;;  %vm273_vm8 = vcmask 261254   ;;  %vm606_vm9 = vcmask 257154   ;;  %vm440_vm10 = vcmask 259204  }
   0x5   :  { %1734 = vmatpush3.bf16.msra.mxu1 %v1965_v9  ;;  %1727 = vmatpush3.bf16.msra.mxu0 %v1724_v5  ;;  %v2007_v17 = vld [vmem:[%s2301_s4] ss:$0 sm:$0xff]  ;;  %s1895_s4 = smov 112   ;;  %vm770_vm11 = vcmask 255104   ;;  %vm1506_vm12 = vcmask 254976  }
   0x6   :  { %1735 = vmatprep.subr.bf16.mxu1 %v1890_v0  ;;  %1729 = vmatprep.subr.bf16.mxu0 %v1728_v10  ;;  %v1516_v24 = vld [vmem:[%s2302_s2] ss:$0 sm:$0xff]  ;;  %s1894_s2 = smov 32  }
   0x9   :  { %1737 = vmatpush3.bf16.msra.mxu1 %v1977_v14  ;;  %1731 = vmatpush3.bf16.msra.mxu0 %v1728_v10 }
   0xa   :  { %1624 = vmatprep.subr.mxu0 %v34_v15  ;;  %1738 = vmatprep.subr.bf16.mxu1 %v1890_v0 }
   0xc   :  { %1638 = vmatmul.mubr.f32.vlgmr.msra.gmra.mrb[0].mxu1 %v1892_v4 }
   0xd   :  { %1625 = vmatpush3.msra.mxu0 %v34_v15  ;;  %1740 = vmatpush3.bf16.msra.mxu1 %v1965_v9 }
   0xe   :  { %1627 = vmatmul.mubr.msk.f32.vlgmr.msra.gmra.mrb[0].mxu0 %vm42_vm1, %v29_v16  ;;  %1741 = vmatprep.subr.bf16.mxu1 %v1890_v0 }
   0xf   :  { %1648 = vmatprep.mubr.msk.f32.mxu1 %vm1891_vm0, %v1892_v4  ;;  %1744 = vmatprep.subr.bf16.mxu0 %v1890_v0 }
  0x10   :  { %1746 = vmatpush3.bf16.msra.mxu0 %v1965_v9  ;;  %1659 = vmatprep.mubr.msk.f32.mxu0 %vm1891_vm0, %v1892_v4 }
  0x11   :  { %1743 = vmatpush3.bf16.msra.mxu1 %v1977_v14  ;;  %1747 = vmatprep.subr.bf16.mxu0 %v1890_v0 }
  0x12   :  { %1750 = vmatprep.subr.bf16.mxu1 %v1890_v0 }
  0x14   :  { %1749 = vmatpush3.bf16.msra.mxu0 %v1977_v14 }
  0x15   :  { %1756 = vmatprep.subr.bf16.mxu0 %v1890_v0 }
  0xdf   :  { %v205_v18 = vpop.f32.mrb[0].mxu1 }
  0xe0   :  { %v206_v19 = vadd.f32 %v2007_v17, %v205_v18  ;;  %v1639_v20 = vpop.f32.mrb[1].mxu1 }
  0xe1   :  { %v1628_v21 = vpop.f32.mrb[0].mxu0 }
  0xe2   :  { %v115_v22 = vpop.f32.mrb[1].mxu0  ;;  %v235_v23 = vrot.slane %v206_v19, 2  ;;  %v2015_v25 = vadd.f32 %v1628_v21, %v1516_v24 }
  0xe3   :  { %v2017_v26 = vadd.f32 %v1516_v24, %v115_v22 }
  0xe4   :  { %244 = vrot.lane.b32.xlu0 %v235_v23, %s1893_s26  ;;  %v237_v27 = vadd.f32 %v235_v23, %v2015_v25 }
  0xe5   :  { %v209_v29 = vadd.f32 %v206_v19, %v2017_v26 }
  0xe6   :  { %v1521_v28 = vmul.f32 -1.442695, %v237_v27 }
  0xe7   :  { %v1520_v30 = vmul.f32 -1.442695, %v209_v29 }
  0xe8   :  { %217 = vrot.lane.b32.xlu0 %v206_v19, %s1893_s26  ;;  %1792 = vpow2.f32 %v1521_v28 }
  0xe9   :  { %1794 = vpow2.f32 %v1520_v30 }
  0xf2   :  { %v1793_v31 = vpop.eup %1792 }
  0xf3   :  { %v241_v32 = vadd.f32 1.0, %v1793_v31  ;;  %v1795_v33 = vpop.eup %1794 }
  0xf4   :  { %v213_v34 = vadd.f32 1.0, %v1795_v33 }
  0xf5   :  { %1796 = vrcp.f32 %v241_v32 }
  0xf6   :  { %1798 = vrcp.f32 %v213_v34 }
  0xff   :  { %v1797_v35 = vpop.eup %1796 }
 0x100   :  { %v1799_v38 = vpop.eup %1798  ;;  %v254_v47 = vsub.f32 1.0, %v1797_v35  ;;  %v260_v49 = vmul.f32 0.0, %v1797_v35 }
 0x101   :  { %v227_v52 = vsub.f32 1.0, %v1799_v38  ;;  %v233_v54 = vmul.f32 0.0, %v1799_v38 }
 0x156   :  { %v245_v36 = vpop.permute.xlu0 %244 }
 0x157   :  { %v247_v37 = vmul.f32 %v1797_v35, %v245_v36 }
 0x159   :  { %249 = vrot.lane.b32.xlu1 %v247_v37, %s1894_s2 }
 0x15a   :  { %v218_v39 = vpop.permute.xlu0 %217 }
 0x15b   :  { %v220_v40 = vmul.f32 %v1799_v38, %v218_v39 }
 0x15d   :  { %222 = vrot.lane.b32.xlu1 %v220_v40, %s1894_s2 }
 0x1cb   :  { %v250_v41 = vpop.permute.xlu1 %249 }
 0x1cc   :  { %v252_v42 = vadd.f32 %v250_v41, %v2015_v25 }
 0x1ce   :  { %1800 = vtanh.f32 %v252_v42 }
 0x1cf   :  { %v223_v43 = vpop.permute.xlu1 %222 }
 0x1d0   :  { %v225_v44 = vadd.f32 %v223_v43, %v2017_v26 }
 0x1d2   :  { %1802 = vtanh.f32 %v225_v44 }
 0x1d8   :  { %v1801_v45 = vpop.eup %1800 }
 0x1d9   :  { %256 = vrot.lane.b32.xlu0 %v1801_v45, %s1895_s4 }
 0x1dc   :  { %v1803_v46 = vpop.eup %1802 }
 0x1dd   :  { %229 = vrot.lane.b32.xlu1 %v1803_v46, %s1895_s4 }
 0x24b   :  { %v257_v48 = vpop.permute.xlu0 %256 }
 0x24c   :  { %v259_v50 = vmul.f32 %v257_v48, %v254_v47 }
 0x24e   :  { %v2027_v51 = vadd.f32 %v260_v49, %v259_v50 }
 0x24f   :  { %v230_v53 = vpop.permute.xlu1 %229 }
 0x250   :  { %v232_v55 = vmul.f32 %v230_v53, %v227_v52  ;;  %v275_v56 = vrot.slane %v2027_v51, 6 }
 0x252   :  { %v234_v57 = vadd.f32 %v233_v54, %v232_v55  ;;  %276 = vrot.lane.b32.xlu1 %v275_v56, %s1896_s29 }
 0x254   :  { %263 = vrot.lane.b32.xlu0 %v234_v57, %s1895_s4 }
 0x2c4   :  { %v277_v58 = vpop.permute.xlu1 %276 }
 0x2c6   :  { %v264_v59 = vpop.permute.xlu0 %263 }
 0x2c7   :  { %267 = vst.msk [vmem:[%s2303_s7] sm:$0x3] %vm266_vm2, %v264_v59  ;;  %v280_v60 = vsel %vm279_vm3, %v264_v59, %v277_v58 }
 0x2c8   :  { %1649 = vmatmul.mubr.msk.f32.vlgmr.msra.gmra.mrb[2].mxu1 %vm135_vm4, %v280_v60  ;;  %v422_v21 = vrot.slane %v280_v60, 4  ;;  %v391_v22 = vrot.slane %v280_v60, 6 }
 0x2c9   :  { %1752 = vmatpush3.bf16.msra.mxu1 %v1965_v9  ;;  %1670 = vmatprep.mubr.msk.f32.mxu1 %vm1891_vm0, %v1892_v4 }
 0x2ca   :  { %1753 = vmatprep.subr.bf16.mxu1 %v1890_v0 }
 0x2cd   :  { %1755 = vmatpush3.bf16.msra.mxu1 %v1977_v14 }
 0x2ce   :  { %1762 = vmatprep.subr.bf16.mxu1 %v1890_v0 }
 0x39b   :  { %v361_v61 = vpop.f32.mrb[2].mxu1 }
 0x39c   :  { %v362_v62 = vadd.f32 %v2007_v17, %v361_v61  ;;  %v1650_v63 = vpop.f32.mrb[3].mxu1 }
 0x39e   :  { %v366_v1 = vrot.slane %v362_v62, 6  ;;  %v397_v2 = vrot.slane %v362_v62, 4 }
 0x3a0   :  { %406 = vrot.lane.b32.xlu0 %v397_v2, %s1893_s26  ;;  %375 = vrot.lane.b32.xlu1 %v366_v1, %s1893_s26  ;;  %v368_v3 = vadd.f32 %v366_v1, %v2017_v26  ;;  %v399_v5 = vadd.f32 %v397_v2, %v2015_v25 }
 0x3a2   :  { %v1525_v6 = vmul.f32 -1.442695, %v368_v3  ;;  %v1526_v7 = vmul.f32 -1.442695, %v399_v5 }
 0x3a4   :  { %1804 = vpow2.f32 %v1525_v6 }
 0x3a5   :  { %1806 = vpow2.f32 %v1526_v7 }
 0x3ae   :  { %v1805_v8 = vpop.eup %1804 }
 0x3af   :  { %v1807_v10 = vpop.eup %1806  ;;  %v372_v11 = vadd.f32 1.0, %v1805_v8 }
 0x3b0   :  { %v403_v12 = vadd.f32 1.0, %v1807_v10 }
 0x3b1   :  { %1808 = vrcp.f32 %v372_v11 }
 0x3b2   :  { %1810 = vrcp.f32 %v403_v12 }
 0x3bb   :  { %v1809_v13 = vpop.eup %1808 }
 0x3bc   :  { %v1811_v15 = vpop.eup %1810  ;;  %v385_v38 = vsub.f32 1.0, %v1809_v13 }
 0x3bd   :  { %v416_v32 = vsub.f32 1.0, %v1811_v15 }
 0x412   :  { %v407_v16 = vpop.permute.xlu0 %406  ;;  %v376_v18 = vpop.permute.xlu1 %375 }
 0x413   :  { %v409_v19 = vmul.f32 %v1811_v15, %v407_v16  ;;  %v378_v20 = vmul.f32 %v1809_v13, %v376_v18 }
 0x415   :  { %411 = vrot.lane.b32.xlu0 %v409_v19, %s1894_s2  ;;  %380 = vrot.lane.b32.xlu1 %v378_v20, %s1894_s2 }
 0x419   :  { %423 = vrot.lane.b32.xlu1 %v422_v21, %s1897_s10 }
 0x41d   :  { %392 = vrot.lane.b32.xlu1 %v391_v22, %s1898_s11 }
 0x487   :  { %v412_v23 = vpop.permute.xlu0 %411  ;;  %v381_v24 = vpop.permute.xlu1 %380 }
 0x488   :  { %v414_v27 = vadd.f32 %v412_v23, %v2015_v25  ;;  %v383_v28 = vadd.f32 %v381_v24, %v2017_v26 }
 0x48a   :  { %1812 = vtanh.f32 %v414_v27 }
 0x48b   :  { %1814 = vtanh.f32 %v383_v28  ;;  %v424_v31 = vpop.permute.xlu1 %423 }
 0x48c   :  { %v426_v34 = vmul.f32 %v1811_v15, %v424_v31 }
 0x48f   :  { %v393_v36 = vpop.permute.xlu1 %392 }
 0x490   :  { %v395_v40 = vmul.f32 %v1809_v13, %v393_v36 }
 0x494   :  { %v1813_v29 = vpop.eup %1812 }
 0x495   :  { %418 = vrot.lane.b32.xlu0 %v1813_v29, %s1895_s4  ;;  %v1815_v30 = vpop.eup %1814 }
 0x499   :  { %387 = vrot.lane.b32.xlu0 %v1815_v30, %s1895_s4 }
 0x507   :  { %v419_v33 = vpop.permute.xlu0 %418 }
 0x508   :  { %v421_v35 = vmul.f32 %v419_v33, %v416_v32 }
 0x50a   :  { %v2057_v37 = vadd.f32 %v426_v34, %v421_v35 }
 0x50b   :  { %v388_v39 = vpop.permute.xlu0 %387 }
 0x50c   :  { %v390_v41 = vmul.f32 %v388_v39, %v385_v38  ;;  %v442_v42 = vrot.slane %v2057_v37, 2 }
 0x50e   :  { %v396_v43 = vadd.f32 %v395_v40, %v390_v41  ;;  %443 = vrot.lane.b32.xlu1 %v442_v42, %s1896_s29 }
 0x510   :  { %429 = vrot.lane.b32.xlu0 %v396_v43, %s1895_s4 }
 0x580   :  { %v444_v44 = vpop.permute.xlu1 %443 }
 0x582   :  { %v430_v45 = vpop.permute.xlu0 %429 }
 0x583   :  { %1527 = vst.msk [vmem:[%s2303_s7] sm:$0xc] %vm433_vm5, %v430_v45  ;;  %v446_v46 = vsel %vm279_vm3, %v430_v45, %v444_v44 }
 0x584   :  { %v459_v47 = vrot.slane %v446_v46, 2  ;;  %v558_v6 = vrot.slane %v446_v46, 6 }
 0x586   :  { %1660 = vmatmul.mubr.msk.f32.vlgmr.msra.gmra.mrb[2].mxu0 %vm135_vm4, %v459_v47 }
 0x587   :  { %1758 = vmatpush3.bf16.msra.mxu0 %v1965_v9  ;;  %1681 = vmatprep.mubr.msk.f32.mxu0 %vm1891_vm0, %v1892_v4 }
 0x588   :  { %1759 = vmatprep.subr.bf16.mxu0 %v1890_v0 }
 0x58b   :  { %1761 = vmatpush3.bf16.msra.mxu0 %v1977_v14 }
 0x58c   :  { %1768 = vmatprep.subr.bf16.mxu0 %v1890_v0 }
 0x659   :  { %v528_v48 = vpop.f32.mrb[2].mxu0 }
 0x65a   :  { %v529_v49 = vadd.f32 %v2007_v17, %v528_v48  ;;  %v1661_v50 = vpop.f32.mrb[3].mxu0 }
 0x65c   :  { %v533_v52 = vrot.slane %v529_v49, 4  ;;  %v564_v53 = vrot.slane %v529_v49, 6 }
 0x65e   :  { %573 = vrot.lane.b32.xlu0 %v564_v53, %s1893_s26  ;;  %542 = vrot.lane.b32.xlu1 %v533_v52, %s1893_s26  ;;  %v535_v54 = vadd.f32 %v533_v52, %v2017_v26  ;;  %v566_v55 = vadd.f32 %v564_v53, %v2015_v25 }
 0x660   :  { %v1531_v56 = vmul.f32 -1.442695, %v535_v54  ;;  %v1532_v57 = vmul.f32 -1.442695, %v566_v55 }
 0x662   :  { %1816 = vpow2.f32 %v1531_v56 }
 0x663   :  { %1818 = vpow2.f32 %v1532_v57 }
 0x66c   :  { %v1817_v58 = vpop.eup %1816 }
 0x66d   :  { %v1819_v59 = vpop.eup %1818  ;;  %v539_v60 = vadd.f32 1.0, %v1817_v58 }
 0x66e   :  { %v570_v61 = vadd.f32 1.0, %v1819_v59 }
 0x66f   :  { %1820 = vrcp.f32 %v539_v60 }
 0x670   :  { %1822 = vrcp.f32 %v570_v61 }
 0x679   :  { %v1821_v62 = vpop.eup %1820 }
 0x67a   :  { %v1823_v63 = vpop.eup %1822  ;;  %v552_v23 = vsub.f32 1.0, %v1821_v62 }
 0x67b   :  { %v583_v16 = vsub.f32 1.0, %v1823_v63 }
 0x6d0   :  { %v574_v1 = vpop.permute.xlu0 %573  ;;  %v543_v2 = vpop.permute.xlu1 %542 }
 0x6d1   :  { %v576_v3 = vmul.f32 %v1823_v63, %v574_v1  ;;  %v545_v5 = vmul.f32 %v1821_v62, %v543_v2 }
 0x6d3   :  { %578 = vrot.lane.b32.xlu0 %v576_v3, %s1894_s2  ;;  %547 = vrot.lane.b32.xlu1 %v545_v5, %s1894_s2 }
 0x6d7   :  { %589 = vrot.lane.b32.xlu1 %v446_v46, %s1897_s10 }
 0x6db   :  { %559 = vrot.lane.b32.xlu1 %v558_v6, %s1898_s11 }
 0x745   :  { %v579_v7 = vpop.permute.xlu0 %578  ;;  %v548_v8 = vpop.permute.xlu1 %547 }
 0x746   :  { %v581_v10 = vadd.f32 %v579_v7, %v2015_v25  ;;  %v550_v11 = vadd.f32 %v548_v8, %v2017_v26 }
 0x748   :  { %1824 = vtanh.f32 %v581_v10 }
 0x749   :  { %1826 = vtanh.f32 %v550_v11  ;;  %v590_v15 = vpop.permute.xlu1 %589 }
 0x74a   :  { %v592_v19 = vmul.f32 %v1823_v63, %v590_v15 }
 0x74d   :  { %v560_v21 = vpop.permute.xlu1 %559 }
 0x74e   :  { %v562_v27 = vmul.f32 %v1821_v62, %v560_v21 }
 0x752   :  { %v1825_v12 = vpop.eup %1824 }
 0x753   :  { %585 = vrot.lane.b32.xlu0 %v1825_v12, %s1895_s4  ;;  %v1827_v13 = vpop.eup %1826 }
 0x757   :  { %554 = vrot.lane.b32.xlu0 %v1827_v13, %s1895_s4 }
 0x7c5   :  { %v586_v18 = vpop.permute.xlu0 %585 }
 0x7c6   :  { %v588_v20 = vmul.f32 %v586_v18, %v583_v16 }
 0x7c8   :  { %v2087_v22 = vadd.f32 %v592_v19, %v588_v20 }
 0x7c9   :  { %v555_v24 = vpop.permute.xlu0 %554 }
 0x7ca   :  { %v557_v28 = vmul.f32 %v555_v24, %v552_v23  ;;  %v608_v29 = vrot.slane %v2087_v22, 6 }
 0x7cc   :  { %v563_v30 = vadd.f32 %v562_v27, %v557_v28  ;;  %609 = vrot.lane.b32.xlu1 %v608_v29, %s1896_s29 }
 0x7ce   :  { %595 = vrot.lane.b32.xlu0 %v563_v30, %s1895_s4 }
 0x83e   :  { %v610_v31 = vpop.permute.xlu1 %609 }
 0x840   :  { %v596_v32 = vpop.permute.xlu0 %595 }
 0x841   :  { %1533 = vst.msk [vmem:[%s2303_s7] sm:$0x30] %vm599_vm6, %v596_v32  ;;  %v612_v33 = vsel %vm279_vm3, %v596_v32, %v610_v31 }
 0x842   :  { %v625_v34 = vrot.slane %v612_v33, 4  ;;  %v724_v55 = vrot.slane %v612_v33, 6 }
 0x844   :  { %1671 = vmatmul.mubr.msk.f32.vlgmr.msra.gmra.mrb[4].mxu1 %vm135_vm4, %v625_v34 }
 0x845   :  { %1764 = vmatpush3.bf16.msra.mxu1 %v1965_v9  ;;  %1692 = vmatprep.mubr.msk.f32.mxu1 %vm1891_vm0, %v1892_v4 }
 0x846   :  { %1765 = vmatprep.subr.bf16.mxu1 %v1890_v0 }
 0x849   :  { %1767 = vmatpush3.bf16.msra.mxu1 %v1977_v14 }
 0x84a   :  { %1774 = vmatprep.subr.bf16.mxu1 %v1890_v0 }
 0x917   :  { %v694_v35 = vpop.f32.mrb[4].mxu1 }
 0x918   :  { %v695_v36 = vadd.f32 %v2007_v17, %v694_v35  ;;  %v1672_v38 = vpop.f32.mrb[5].mxu1 }
 0x91a   :  { %737 = vrot.lane.b32.xlu0 %v695_v36, %s1893_s26  ;;  %v699_v39 = vrot.slane %v695_v36, 2  ;;  %v730_v40 = vadd.f32 %v695_v36, %v2015_v25 }
 0x91c   :  { %708 = vrot.lane.b32.xlu1 %v699_v39, %s1893_s26  ;;  %v701_v41 = vadd.f32 %v699_v39, %v2017_v26  ;;  %v1538_v42 = vmul.f32 -1.442695, %v730_v40 }
 0x91e   :  { %v1537_v43 = vmul.f32 -1.442695, %v701_v41  ;;  %1828 = vpow2.f32 %v1538_v42 }
 0x920   :  { %1830 = vpow2.f32 %v1537_v43 }
 0x928   :  { %v1829_v44 = vpop.eup %1828 }
 0x929   :  { %v734_v46 = vadd.f32 1.0, %v1829_v44 }
 0x92a   :  { %v1831_v45 = vpop.eup %1830 }
 0x92b   :  { %v705_v47 = vadd.f32 1.0, %v1831_v45  ;;  %1832 = vrcp.f32 %v734_v46 }
 0x92d   :  { %1834 = vrcp.f32 %v705_v47 }
 0x935   :  { %v1833_v48 = vpop.eup %1832 }
 0x936   :  { %v747_v63 = vsub.f32 1.0, %v1833_v48 }
 0x937   :  { %v1835_v52 = vpop.eup %1834 }
 0x938   :  { %v718_v7 = vsub.f32 1.0, %v1835_v52 }
 0x98c   :  { %v738_v49 = vpop.permute.xlu0 %737 }
 0x98d   :  { %v740_v50 = vmul.f32 %v1833_v48, %v738_v49 }
 0x98e   :  { %v709_v53 = vpop.permute.xlu1 %708 }
 0x98f   :  { %v711_v54 = vmul.f32 %v1835_v52, %v709_v53  ;;  %742 = vrot.lane.b32.xlu0 %v740_v50, %s1894_s2 }
 0x991   :  { %713 = vrot.lane.b32.xlu1 %v711_v54, %s1894_s2 }
 0x995   :  { %753 = vrot.lane.b32.xlu1 %v625_v34, %s1897_s10 }
 0x999   :  { %725 = vrot.lane.b32.xlu1 %v724_v55, %s1898_s11 }
 0xa01   :  { %v743_v56 = vpop.permute.xlu0 %742 }
 0xa02   :  { %v745_v57 = vadd.f32 %v743_v56, %v2015_v25 }
 0xa03   :  { %v714_v58 = vpop.permute.xlu1 %713 }
 0xa04   :  { %1836 = vtanh.f32 %v745_v57  ;;  %v716_v59 = vadd.f32 %v714_v58, %v2017_v26 }
 0xa06   :  { %1838 = vtanh.f32 %v716_v59 }
 0xa07   :  { %v754_v62 = vpop.permute.xlu1 %753 }
 0xa08   :  { %v756_v2 = vmul.f32 %v1833_v48, %v754_v62 }
 0xa0b   :  { %v726_v5 = vpop.permute.xlu1 %725 }
 0xa0c   :  { %v728_v10 = vmul.f32 %v1835_v52, %v726_v5 }
 0xa0e   :  { %v1837_v60 = vpop.eup %1836 }
 0xa0f   :  { %749 = vrot.lane.b32.xlu0 %v1837_v60, %s1895_s4 }
 0xa10   :  { %v1839_v61 = vpop.eup %1838 }
 0xa13   :  { %720 = vrot.lane.b32.xlu0 %v1839_v61, %s1895_s4 }
 0xa81   :  { %v750_v1 = vpop.permute.xlu0 %749 }
 0xa82   :  { %v752_v3 = vmul.f32 %v750_v1, %v747_v63 }
 0xa84   :  { %v2117_v6 = vadd.f32 %v756_v2, %v752_v3 }
 0xa85   :  { %v721_v8 = vpop.permute.xlu0 %720 }
 0xa86   :  { %v723_v11 = vmul.f32 %v721_v8, %v718_v7  ;;  %v772_v12 = vrot.slane %v2117_v6, 2 }
 0xa88   :  { %v729_v13 = vadd.f32 %v728_v10, %v723_v11  ;;  %773 = vrot.lane.b32.xlu1 %v772_v12, %s1896_s29 }
 0xa8a   :  { %759 = vrot.lane.b32.xlu0 %v729_v13, %s1895_s4 }
 0xafa   :  { %v774_v15 = vpop.permute.xlu1 %773 }
 0xafc   :  { %v760_v16 = vpop.permute.xlu0 %759 }
 0xafd   :  { %1539 = vst.msk [vmem:[%s2303_s7] sm:$0xc0] %vm763_vm7, %v760_v16  ;;  %v776_v18 = vsel %vm279_vm3, %v760_v16, %v774_v15 }
 0xafe   :  { %v789_v19 = vrot.slane %v776_v18, 6 }
 0xb00   :  { %1682 = vmatmul.mubr.msk.f32.vlgmr.msra.gmra.mrb[4].mxu0 %vm135_vm4, %v789_v19 }
 0xb01   :  { %1770 = vmatpush3.bf16.msra.mxu0 %v1965_v9  ;;  %1703 = vmatprep.mubr.msk.f32.mxu0 %vm1891_vm0, %v1892_v4 }
 0xb02   :  { %1771 = vmatprep.subr.bf16.mxu0 %v1890_v0 }
 0xb05   :  { %1773 = vmatpush3.bf16.msra.mxu0 %v1977_v14 }
 0xb06   :  { %1780 = vmatprep.subr.bf16.mxu0 %v1890_v0 }
 0xbd3   :  { %v858_v20 = vpop.f32.mrb[4].mxu0 }
 0xbd4   :  { %v859_v21 = vadd.f32 %v2007_v17, %v858_v20  ;;  %v1683_v23 = vpop.f32.mrb[5].mxu0 }
 0xbd6   :  { %870 = vrot.lane.b32.xlu1 %v859_v21, %s1893_s26  ;;  %v891_v24 = vrot.slane %v859_v21, 2  ;;  %v862_v27 = vadd.f32 %v859_v21, %v2015_v25 }
 0xbd8   :  { %900 = vrot.lane.b32.xlu0 %v891_v24, %s1893_s26  ;;  %v893_v28 = vadd.f32 %v891_v24, %v2017_v26  ;;  %v1543_v29 = vmul.f32 -1.442695, %v862_v27 }
 0xbda   :  { %v1544_v30 = vmul.f32 -1.442695, %v893_v28  ;;  %1840 = vpow2.f32 %v1543_v29 }
 0xbdc   :  { %1842 = vpow2.f32 %v1544_v30 }
 0xbe4   :  { %v1841_v31 = vpop.eup %1840 }
 0xbe5   :  { %v866_v33 = vadd.f32 1.0, %v1841_v31 }
 0xbe6   :  { %v1843_v32 = vpop.eup %1842 }
 0xbe7   :  { %v897_v34 = vadd.f32 1.0, %v1843_v32  ;;  %1844 = vrcp.f32 %v866_v33 }
 0xbe9   :  { %1846 = vrcp.f32 %v897_v34 }
 0xbf1   :  { %v1845_v35 = vpop.eup %1844 }
 0xbf2   :  { %v880_v56 = vsub.f32 1.0, %v1845_v35 }
 0xbf3   :  { %v1847_v39 = vpop.eup %1846 }
 0xbf4   :  { %v910_v49 = vsub.f32 1.0, %v1847_v39 }
 0xc48   :  { %v871_v36 = vpop.permute.xlu1 %870 }
 0xc49   :  { %v873_v38 = vmul.f32 %v1845_v35, %v871_v36 }
 0xc4a   :  { %v901_v40 = vpop.permute.xlu0 %900 }
 0xc4b   :  { %v903_v41 = vmul.f32 %v1847_v39, %v901_v40  ;;  %875 = vrot.lane.b32.xlu1 %v873_v38, %s1894_s2 }
 0xc4d   :  { %905 = vrot.lane.b32.xlu0 %v903_v41, %s1894_s2 }
 0xc4f   :  { %916 = vrot.lane.b32.xlu1 %v776_v18, %s1897_s10 }
 0xc53   :  { %886 = vrot.lane.b32.xlu1 %v789_v19, %s1898_s11 }
 0xcbd   :  { %v876_v42 = vpop.permute.xlu1 %875 }
 0xcbe   :  { %v878_v45 = vadd.f32 %v876_v42, %v2015_v25 }
 0xcbf   :  { %v906_v43 = vpop.permute.xlu0 %905 }
 0xcc0   :  { %v908_v44 = vadd.f32 %v906_v43, %v2017_v26 }
 0xcc1   :  { %v917_v48 = vpop.permute.xlu1 %916 }
 0xcc2   :  { %1848 = vtanh.f32 %v908_v44  ;;  %v919_v52 = vmul.f32 %v1847_v39, %v917_v48 }
 0xcc3   :  { %1850 = vtanh.f32 %v878_v45 }
 0xcc5   :  { %v887_v54 = vpop.permute.xlu1 %886 }
 0xcc6   :  { %v889_v58 = vmul.f32 %v1845_v35, %v887_v54 }
 0xccc   :  { %v1849_v46 = vpop.eup %1848 }
 0xccd   :  { %912 = vrot.lane.b32.xlu0 %v1849_v46, %s1895_s4  ;;  %v1851_v47 = vpop.eup %1850 }
 0xcd1   :  { %882 = vrot.lane.b32.xlu0 %v1851_v47, %s1895_s4 }
 0xd3f   :  { %v913_v50 = vpop.permute.xlu0 %912 }
 0xd40   :  { %v915_v53 = vmul.f32 %v913_v50, %v910_v49 }
 0xd42   :  { %v2147_v55 = vadd.f32 %v919_v52, %v915_v53 }
 0xd43   :  { %v883_v57 = vpop.permute.xlu0 %882 }
 0xd44   :  { %v885_v59 = vmul.f32 %v883_v57, %v880_v56  ;;  %v931_v60 = vrot.slane %v2147_v55, 6 }
 0xd46   :  { %v890_v61 = vadd.f32 %v889_v58, %v885_v59  ;;  %932 = vrot.lane.b32.xlu1 %v931_v60, %s1896_s29 }
 0xd48   :  { %922 = vrot.lane.b32.xlu0 %v890_v61, %s1895_s4 }
 0xdb8   :  { %v933_v62 = vpop.permute.xlu1 %932 }
 0xdba   :  { %v2152_v63 = vpop.permute.xlu0 %922 }
 0xdbb   :  { %v935_v1 = vsel %vm279_vm3, %v2152_v63, %v933_v62 }
 0xdbc   :  { %1693 = vmatmul.mubr.msk.f32.vlgmr.msra.gmra.mrb[6].mxu1 %vm135_vm4, %v935_v1  ;;  %v1077_v24 = vrot.slane %v935_v1, 4  ;;  %v1046_v27 = vrot.slane %v935_v1, 6 }
 0xdbd   :  { %1776 = vmatpush3.bf16.msra.mxu1 %v1965_v9  ;;  %1714 = vmatprep.mubr.msk.f32.mxu1 %vm1891_vm0, %v1892_v4 }
 0xdbe   :  { %1777 = vmatprep.subr.bf16.mxu1 %v1890_v0 }
 0xdc1   :  { %1779 = vmatpush3.bf16.msra.mxu1 %v1977_v14 }
 0xe8f   :  { %v1016_v2 = vpop.f32.mrb[6].mxu1 }
 0xe90   :  { %v1017_v3 = vadd.f32 %v2007_v17, %v1016_v2  ;;  %v1694_v5 = vpop.f32.mrb[7].mxu1 }
 0xe92   :  { %v1021_v7 = vrot.slane %v1017_v3, 6  ;;  %v1052_v8 = vrot.slane %v1017_v3, 4 }
 0xe94   :  { %1061 = vrot.lane.b32.xlu0 %v1052_v8, %s1893_s26  ;;  %1030 = vrot.lane.b32.xlu1 %v1021_v7, %s1893_s26  ;;  %v1023_v10 = vadd.f32 %v1021_v7, %v2015_v25  ;;  %v1054_v9 = vadd.f32 %v1052_v8, %v2017_v26 }
 0xe96   :  { %v1549_v11 = vmul.f32 -1.442695, %v1023_v10  ;;  %v1550_v12 = vmul.f32 -1.442695, %v1054_v9 }
 0xe98   :  { %1852 = vpow2.f32 %v1549_v11 }
 0xe99   :  { %1854 = vpow2.f32 %v1550_v12 }
 0xea2   :  { %v1853_v0 = vpop.eup %1852 }
 0xea3   :  { %v1855_v14 = vpop.eup %1854  ;;  %v1027_v13 = vadd.f32 1.0, %v1853_v0 }
 0xea4   :  { %v1058_v15 = vadd.f32 1.0, %v1855_v14 }
 0xea5   :  { %1856 = vrcp.f32 %v1027_v13 }
 0xea6   :  { %1858 = vrcp.f32 %v1058_v15 }
 0xeaf   :  { %v1857_v16 = vpop.eup %1856 }
 0xeb0   :  { %v1859_v18 = vpop.eup %1858  ;;  %v1040_v42 = vsub.f32 1.0, %v1857_v16 }
 0xeb1   :  { %v1071_v35 = vsub.f32 1.0, %v1859_v18 }
 0xf06   :  { %v1062_v19 = vpop.permute.xlu0 %1061  ;;  %v1031_v20 = vpop.permute.xlu1 %1030 }
 0xf07   :  { %v1064_v21 = vmul.f32 %v1859_v18, %v1062_v19  ;;  %v1033_v23 = vmul.f32 %v1857_v16, %v1031_v20 }
 0xf09   :  { %1066 = vrot.lane.b32.xlu0 %v1064_v21, %s1894_s2  ;;  %1035 = vrot.lane.b32.xlu1 %v1033_v23, %s1894_s2 }
 0xf0d   :  { %1078 = vrot.lane.b32.xlu1 %v1077_v24, %s1897_s10 }
 0xf11   :  { %1047 = vrot.lane.b32.xlu1 %v1046_v27, %s1898_s11 }
 0xf7b   :  { %v1067_v28 = vpop.permute.xlu0 %1066  ;;  %v1036_v29 = vpop.permute.xlu1 %1035 }
 0xf7c   :  { %v1069_v30 = vadd.f32 %v1067_v28, %v2017_v26  ;;  %v1038_v31 = vadd.f32 %v1036_v29, %v2015_v25 }
 0xf7e   :  { %1860 = vtanh.f32 %v1069_v30 }
 0xf7f   :  { %1862 = vtanh.f32 %v1038_v31  ;;  %v1079_v34 = vpop.permute.xlu1 %1078 }
 0xf80   :  { %v1081_v38 = vmul.f32 %v1859_v18, %v1079_v34 }
 0xf83   :  { %v1048_v40 = vpop.permute.xlu1 %1047 }
 0xf84   :  { %v1050_v44 = vmul.f32 %v1857_v16, %v1048_v40 }
 0xf88   :  { %v1861_v32 = vpop.eup %1860 }
 0xf89   :  { %1073 = vrot.lane.b32.xlu0 %v1861_v32, %s1895_s4  ;;  %v1863_v33 = vpop.eup %1862 }
 0xf8d   :  { %1042 = vrot.lane.b32.xlu0 %v1863_v33, %s1895_s4 }
 0xffb   :  { %v1074_v36 = vpop.permute.xlu0 %1073 }
 0xffc   :  { %v1076_v39 = vmul.f32 %v1074_v36, %v1071_v35 }
 0xffe   :  { %v2175_v41 = vadd.f32 %v1081_v38, %v1076_v39 }
 0xfff   :  { %v1043_v43 = vpop.permute.xlu0 %1042 }
0x1000   :  { %v1045_v45 = vmul.f32 %v1043_v43, %v1040_v42  ;;  %v1093_v46 = vrot.slane %v2175_v41, 2 }
0x1002   :  { %v1051_v47 = vadd.f32 %v1050_v44, %v1045_v45  ;;  %1094 = vrot.lane.b32.xlu1 %v1093_v46, %s1896_s29 }
0x1004   :  { %1084 = vrot.lane.b32.xlu0 %v1051_v47, %s1895_s4 }
0x1074   :  { %v1095_v48 = vpop.permute.xlu1 %1094 }
0x1076   :  { %v2180_v49 = vpop.permute.xlu0 %1084 }
0x1077   :  { %v1097_v50 = vsel %vm279_vm3, %v2180_v49, %v1095_v48 }
0x1078   :  { %v1110_v52 = vrot.slane %v1097_v50, 2  ;;  %v1209_v12 = vrot.slane %v1097_v50, 6 }
0x107a   :  { %1704 = vmatmul.mubr.msk.f32.vlgmr.msra.gmra.mrb[6].mxu0 %vm135_vm4, %v1110_v52 }
0x107b   :  { %1721 = vmatprep.mubr.msk.f32.mxu0 %vm1891_vm0, %v1892_v4 }
0x114d   :  { %v1179_v53 = vpop.f32.mrb[6].mxu0 }
0x114e   :  { %v1180_v54 = vadd.f32 %v2007_v17, %v1179_v53  ;;  %v1705_v56 = vpop.f32.mrb[7].mxu0 }
0x1150   :  { %v1184_v57 = vrot.slane %v1180_v54, 4  ;;  %v1215_v58 = vrot.slane %v1180_v54, 6 }
0x1152   :  { %1224 = vrot.lane.b32.xlu0 %v1215_v58, %s1893_s26  ;;  %1193 = vrot.lane.b32.xlu1 %v1184_v57, %s1893_s26  ;;  %v1186_v59 = vadd.f32 %v1184_v57, %v2015_v25  ;;  %v1217_v60 = vadd.f32 %v1215_v58, %v2017_v26 }
0x1154   :  { %v1555_v61 = vmul.f32 -1.442695, %v1186_v59  ;;  %v1556_v62 = vmul.f32 -1.442695, %v1217_v60 }
0x1156   :  { %1864 = vpow2.f32 %v1555_v61 }
0x1157   :  { %1866 = vpow2.f32 %v1556_v62 }
0x1160   :  { %v1865_v1 = vpop.eup %1864 }
0x1161   :  { %v1867_v4 = vpop.eup %1866  ;;  %v1190_v2 = vadd.f32 1.0, %v1865_v1 }
0x1162   :  { %v1221_v3 = vadd.f32 1.0, %v1867_v4 }
0x1163   :  { %1868 = vrcp.f32 %v1190_v2 }
0x1164   :  { %1870 = vrcp.f32 %v1221_v3 }
0x116d   :  { %v1869_v5 = vpop.eup %1868 }
0x116e   :  { %v1871_v7 = vpop.eup %1870  ;;  %v1203_v29 = vsub.f32 1.0, %v1869_v5 }
0x116f   :  { %v1234_v20 = vsub.f32 1.0, %v1871_v7 }
0x11c4   :  { %v1225_v8 = vpop.permute.xlu0 %1224  ;;  %v1194_v10 = vpop.permute.xlu1 %1193 }
0x11c5   :  { %v1227_v9 = vmul.f32 %v1871_v7, %v1225_v8  ;;  %v1196_v11 = vmul.f32 %v1869_v5, %v1194_v10 }
0x11c7   :  { %1229 = vrot.lane.b32.xlu0 %v1227_v9, %s1894_s2  ;;  %1198 = vrot.lane.b32.xlu1 %v1196_v11, %s1894_s2 }
0x11cb   :  { %1240 = vrot.lane.b32.xlu1 %v1097_v50, %s1897_s10 }
0x11cf   :  { %1210 = vrot.lane.b32.xlu1 %v1209_v12, %s1898_s11 }
0x1239   :  { %v1230_v0 = vpop.permute.xlu0 %1229  ;;  %v1199_v14 = vpop.permute.xlu1 %1198 }
0x123a   :  { %v1232_v13 = vadd.f32 %v1230_v0, %v2017_v26  ;;  %v1201_v15 = vadd.f32 %v1199_v14, %v2015_v25 }
0x123c   :  { %1872 = vtanh.f32 %v1232_v13 }
0x123d   :  { %1874 = vtanh.f32 %v1201_v15  ;;  %v1241_v19 = vpop.permute.xlu1 %1240 }
0x123e   :  { %v1243_v23 = vmul.f32 %v1871_v7, %v1241_v19  ;;  %v1421_v19 = vld [vmem:[%s2304_s5 + $0x8] sm:$0xff] }
0x1241   :  { %v1211_v27 = vpop.permute.xlu1 %1210 }
0x1242   :  { %v1213_v31 = vmul.f32 %v1869_v5, %v1211_v27 }
0x1246   :  { %v1873_v16 = vpop.eup %1872 }
0x1247   :  { %1236 = vrot.lane.b32.xlu0 %v1873_v16, %s1895_s4  ;;  %v1875_v18 = vpop.eup %1874 }
0x124b   :  { %1205 = vrot.lane.b32.xlu0 %v1875_v18, %s1895_s4  ;;  %v1420_v18 = vld [vmem:[%s2304_s5] sm:$0xff] }
0x12b9   :  { %v1237_v21 = vpop.permute.xlu0 %1236 }
0x12ba   :  { %v1239_v24 = vmul.f32 %v1237_v21, %v1234_v20  ;;  %v1781_v20 = vpack.c.bf16 %v1421_v19, %v1420_v18 }
0x12bc   :  { %v2200_v28 = vadd.f32 %v1243_v23, %v1239_v24  ;;  %1782 = vmatpush3.bf16.msra.mxu0 %v1781_v20 }
0x12bd   :  { %v1206_v30 = vpop.permute.xlu0 %1205 }
0x12be   :  { %v1208_v32 = vmul.f32 %v1206_v30, %v1203_v29  ;;  %v1255_v33 = vrot.slane %v2200_v28, 6  ;;  %v1564_v30 = vld [vmem:[%s2305_s6] ss:$0 sm:$0xff] }
0x12c0   :  { %v1214_v34 = vadd.f32 %v1213_v31, %v1208_v32  ;;  %1256 = vrot.lane.b32.xlu1 %v1255_v33, %s1896_s29 }
0x12c2   :  { %1246 = vrot.lane.b32.xlu0 %v1214_v34, %s1895_s4 }
0x1332   :  { %v1257_v35 = vpop.permute.xlu1 %1256 }
0x1334   :  { %v2205_v36 = vpop.permute.xlu0 %1246 }
0x1335   :  { %v1259_v38 = vsel %vm279_vm3, %v2205_v36, %v1257_v35 }
0x1336   :  { %v1272_v39 = vrot.slane %v1259_v38, 4  ;;  %v1371_v61 = vrot.slane %v1259_v38, 6 }
0x1338   :  { %1715 = vmatmul.mubr.msk.f32.vlgmr.msra.gmra.mrb[8].mxu1 %vm135_vm4, %v1272_v39 }
0x140b   :  { %v1341_v40 = vpop.f32.mrb[8].mxu1 }
0x140c   :  { %v1342_v42 = vadd.f32 %v2007_v17, %v1341_v40  ;;  %v1716_v43 = vpop.f32.mrb[9].mxu1 }
0x140e   :  { %1384 = vrot.lane.b32.xlu0 %v1342_v42, %s1893_s26  ;;  %v1346_v44 = vrot.slane %v1342_v42, 2  ;;  %v1377_v45 = vadd.f32 %v1342_v42, %v2017_v26 }
0x1410   :  { %1355 = vrot.lane.b32.xlu1 %v1346_v44, %s1893_s26  ;;  %v1348_v46 = vadd.f32 %v1346_v44, %v2015_v25  ;;  %v1562_v47 = vmul.f32 -1.442695, %v1377_v45 }
0x1412   :  { %v1561_v48 = vmul.f32 -1.442695, %v1348_v46  ;;  %1876 = vpow2.f32 %v1562_v47 }
0x1414   :  { %1878 = vpow2.f32 %v1561_v48 }
0x141c   :  { %v1877_v50 = vpop.eup %1876 }
0x141d   :  { %v1381_v53 = vadd.f32 1.0, %v1877_v50 }
0x141e   :  { %v1879_v52 = vpop.eup %1878 }
0x141f   :  { %v1352_v54 = vadd.f32 1.0, %v1879_v52  ;;  %1880 = vrcp.f32 %v1381_v53 }
0x1421   :  { %1882 = vrcp.f32 %v1352_v54 }
0x1429   :  { %v1881_v17 = vpop.eup %1880 }
0x142a   :  { %v1394_v8 = vsub.f32 1.0, %v1881_v17 }
0x142b   :  { %v1883_v58 = vpop.eup %1882 }
0x142c   :  { %v1365_v14 = vsub.f32 1.0, %v1883_v58 }
0x1480   :  { %v1385_v56 = vpop.permute.xlu0 %1384 }
0x1481   :  { %v1387_v57 = vmul.f32 %v1881_v17, %v1385_v56 }
0x1482   :  { %v1356_v59 = vpop.permute.xlu1 %1355 }
0x1483   :  { %v1358_v60 = vmul.f32 %v1883_v58, %v1356_v59  ;;  %1389 = vrot.lane.b32.xlu0 %v1387_v57, %s1894_s2 }
0x1485   :  { %1360 = vrot.lane.b32.xlu1 %v1358_v60, %s1894_s2 }
0x1489   :  { %1400 = vrot.lane.b32.xlu1 %v1272_v39, %s1897_s10 }
0x148d   :  { %1372 = vrot.lane.b32.xlu1 %v1371_v61, %s1898_s11 }
0x14f5   :  { %v1390_v62 = vpop.permute.xlu0 %1389 }
0x14f6   :  { %v1392_v1 = vadd.f32 %v1390_v62, %v2017_v26 }
0x14f7   :  { %v1361_v4 = vpop.permute.xlu1 %1360 }
0x14f8   :  { %1884 = vtanh.f32 %v1392_v1  ;;  %v1363_v2 = vadd.f32 %v1361_v4, %v2015_v25 }
0x14fa   :  { %1886 = vtanh.f32 %v1363_v2 }
0x14fb   :  { %v1401_v7 = vpop.permute.xlu1 %1400 }
0x14fc   :  { %v1403_v9 = vmul.f32 %v1881_v17, %v1401_v7 }
0x14ff   :  { %v1373_v12 = vpop.permute.xlu1 %1372 }
0x1500   :  { %v1375_v13 = vmul.f32 %v1883_v58, %v1373_v12 }
0x1502   :  { %v1885_v3 = vpop.eup %1884 }
0x1503   :  { %1396 = vrot.lane.b32.xlu0 %v1885_v3, %s1895_s4 }
0x1504   :  { %v1887_v5 = vpop.eup %1886 }
0x1507   :  { %1367 = vrot.lane.b32.xlu0 %v1887_v5, %s1895_s4 }
0x1575   :  { %v1397_v10 = vpop.permute.xlu0 %1396 }
0x1576   :  { %v1399_v11 = vmul.f32 %v1397_v10, %v1394_v8 }
0x1578   :  { %v1404_v0 = vadd.f32 %v1403_v9, %v1399_v11 }
0x1579   :  { %v1368_v26 = vpop.permute.xlu0 %1367 }
0x157a   :  { %v1370_v15 = vmul.f32 %v1368_v26, %v1365_v14  ;;  %v1415_v16 = vrot.slane %v1404_v0, 2 }
0x157c   :  { %v1376_v25 = vadd.f32 %v1375_v13, %v1370_v15  ;;  %1416 = vrot.lane.b32.xlu1 %v1415_v16, %s1896_s29 }
0x157e   :  { %1406 = vrot.lane.b32.xlu0 %v1376_v25, %s1895_s4 }
0x1580   :  { %269 = vrot.lane.b32.xlu1 %v2027_v51, %s1896_s29 }
0x1584   :  { %602 = vrot.lane.b32.xlu1 %v2087_v22, %s1896_s29 }
0x1588   :  { %927 = vrot.lane.b32.xlu1 %v2147_v55, %s1896_s29 }
0x158c   :  { %1251 = vrot.lane.b32.xlu1 %v2200_v28, %s1896_s29 }
0x15ee   :  { %v1417_v51 = vpop.permute.xlu1 %1416 }
0x15f0   :  { %v1407_v21 = vpop.permute.xlu0 %1406 }
0x15f1   :  { %v1419_v22 = vsel %vm279_vm3, %v1407_v21, %v1417_v51 }
0x15f2   :  { %v1430_v23 = vrot.slane %v1419_v22, 6  ;;  %v270_v24 = vpop.permute.xlu1 %269 }
0x15f3   :  { %1522 = vst.msk [vmem:[%s2303_s7 + $0x8] sm:$0xc0] %vm273_vm8, %v270_v24 }
0x15f4   :  { %1563 = vst.msk [vmem:[%s2303_s7 + $0x8] sm:$0xc0] %vm763_vm7, %v1407_v21  ;;  %1431 = vrot.lane.b32.xlu0 %v1430_v23, %s1895_s4 }
0x15f6   :  { %v603_v55 = vpop.permute.xlu1 %602 }
0x15f7   :  { %1534 = vst.msk [vmem:[%s2303_s7 + $0x8] sm:$0xc] %vm606_vm9, %v603_v55 }
0x15f8   :  { %1551 = vst.msk [vmem:[%s2303_s7 + $0x8] sm:$0xc] %vm433_vm5, %v2180_v49  ;;  %436 = vrot.lane.b32.xlu0 %v2057_v37, %s1896_s29 }
0x15fa   :  { %v928_v27 = vpop.permute.xlu1 %927 }
0x15fb   :  { %1546 = vst.msk [vmem:[%s2303_s7] sm:$0xc0] %vm273_vm8, %v928_v27 }
0x15fc   :  { %766 = vrot.lane.b32.xlu0 %v2117_v6, %s1896_s29 }
0x15fe   :  { %v1252_v28 = vpop.permute.xlu1 %1251 }
0x15ff   :  { %1558 = vst.msk [vmem:[%s2303_s7] sm:$0xc] %vm606_vm9, %v1252_v28 }
0x1600   :  { %1089 = vrot.lane.b32.xlu0 %v2175_v41, %s1896_s29 }
0x1604   :  { %1411 = vrot.lane.b32.xlu0 %v1404_v0, %s1896_s29 }
0x1666   :  { %v1432_v49 = vpop.permute.xlu0 %1431 }
0x1667   :  { %1722 = vmatmul.mubr.msk.f32.vlgmr.msra.gmra.mrb[8].mxu0 %vm279_vm3, %v1432_v49 }
0x166a   :  { %v437_v37 = vpop.permute.xlu0 %436 }
0x166b   :  { %1528 = vst.msk [vmem:[%s2303_s7 + $0x8] sm:$0x30] %vm440_vm10, %v437_v37 }
0x166c   :  { %1557 = vst.msk [vmem:[%s2303_s7 + $0x8] sm:$0x30] %vm599_vm6, %v2205_v36 }
0x166e   :  { %v767_v6 = vpop.permute.xlu0 %766 }
0x166f   :  { %1540 = vst.msk [vmem:[%s2303_s7 + $0x8] sm:$0x3] %vm770_vm11, %v767_v6 }
0x1670   :  { %1545 = vst.msk [vmem:[%s2303_s7 + $0x8] sm:$0x3] %vm266_vm2, %v2152_v63 }
0x1672   :  { %v1090_v41 = vpop.permute.xlu0 %1089 }
0x1673   :  { %1552 = vst.msk [vmem:[%s2303_s7] sm:$0x30] %vm440_vm10, %v1090_v41 }
0x1676   :  { %v1412_v29 = vpop.permute.xlu0 %1411 }
0x1677   :  { %1414 = vst.msk [vmem:[%s2303_s7] sm:$0x3] %vm770_vm11, %v1412_v29 }
0x173a   :  { %v1501_v31 = vpop.f32.mrb[8].mxu0 }
0x173b   :  { %v1502_v32 = vadd.f32 %v1564_v30, %v1501_v31  ;;  %v1723_v33 = vpop.f32.mrb[9].mxu0 }
0x173d   :  { %1888 = vtanh.f32 %v1502_v32 }
0x1747   :  { %v1889_v63 = vpop.eup %1888 }
0x1748   :  { %1507 = vst.msk [vmem:[%s2306_s8] sm:$0x3] %vm1506_vm12, %v1889_v63 }

// kernel: nmt_forward.3
= control target key start
LH: loop header
LB: loop body
LE: loop exit
PB: predicated region body
PF: predicated region fallthrough
CT: control target
= control target key end

     0   :  { %vm67_vm0 = vcmask 130048   ;;  %v4587_v0 = vmov 0.0|0.0   ;;  %vm4588_vm1 = vmmov 0   ;;  %v4589_v4 = vmov 0.0   ;;  %s4591_s30 = smov 96   ;;  %s4592_s16 = smov 32   ;;  %s5615_s4 = inlined_call_operand.vmem [shape: f32[16,128], index: 4, kind: input, shape index: {}]   ;;  %s5616_s6 = inlined_call_operand.vmem [shape: f32[32,96], index: 6, kind: input, shape index: {}]   ;;  %s5617_s0 = inlined_call_operand.vmem [shape: f32[12,16], index: 0, kind: input, shape index: {}]   ;;  %s5618_s9 = inlined_call_operand.vmem [shape: f32[32,32], index: 9, kind: input, shape index: {}]   ;;  %s5619_s1 = inlined_call_operand.vmem [shape: f32[2,8,32], index: 1, kind: input, shape index: {}]   ;;  %s5620_s7 = inlined_call_operand.vmem [shape: f32[32,96], index: 7, kind: input, shape index: {}]   ;;  %s5621_s3 = inlined_call_operand.vmem [shape: f32[2,32], index: 3, kind: input, shape index: {}]   ;;  %s5622_s5 = inlined_call_operand.vmem [shape: f32[1,128], index: 5, kind: input, shape index: {}]   ;;  %s5623_s8 = inlined_call_operand.vmem [shape: f32[1,96], index: 8, kind: input, shape index: {}]   ;;  %s5624_s11 = inlined_call_operand.vmem [shape: f32[32,32], index: 11, kind: input, shape index: {}]   ;;  %s5625_s2 = inlined_call_operand.vmem [shape: f32[2,8], index: 2, kind: input, shape index: {}]   ;;  %s5626_s10 = inlined_call_operand.vmem [shape: f32[1,32], index: 10, kind: input, shape index: {}]   ;;  %s5627_s12 = inlined_call_operand.vmem [shape: f32[1,32], index: 12, kind: input, shape index: {}]   ;;  %s5628_s13 = inlined_call_operand.vmem [shape: f32[64,33], index: 13, kind: input, shape index: {}]   ;;  %s5629_s14 = inlined_call_operand.vmem [shape: f32[1,33], index: 14, kind: input, shape index: {}]   ;;  %s5630_s15 = inlined_call_operand.vmem [shape: f32[6,2,25], index: 15, kind: output, shape index: {}]  }
   0x1   :  { %4272 = vmatprep.subr.bf16.mxu1 %v4587_v0  ;;  %v58_v1 = vld [vmem:[%s5615_s4] sm:$0xff]  ;;  %v59_v2 = vld [vmem:[%s5615_s4 + $0x8] sm:$0xff]  ;;  %3952 = vmatprep.mubr.msk.f32.mxu1 %vm4588_vm1, %v4589_v4  ;;  %v310_v9 = vld [vmem:[%s5616_s6 + $0x10] sm:$0xff]  ;;  %vm160_vm2 = vcmask 261120   ;;  %v582_v60 = vlaneseq  ;;  %vm685_vm3 = vcmask 1041409   ;;  %vm688_vm4 = vcmask 58368  }
   0x2   :  { %v308_v3 = vld [vmem:[%s5616_s6] sm:$0xff]  ;;  %v4256_v5 = vpack.c.bf16 %v59_v2, %v58_v1  ;;  %v309_v6 = vld [vmem:[%s5616_s6 + $0x8] sm:$0xff]  ;;  %v311_v10 = vld [vmem:[%s5616_s6 + $0x18] sm:$0xff]  ;;  %vm793_vm5 = vcmask 523264   ;;  %vm1331_vm6 = vcmask 1043459   ;;  %vm1892_vm7 = vcmask 1045509  }
   0x3   :  { %v56_v7 = vld [vmem:[%s5617_s0] sm:$0xff]  ;;  %v4695_v8 = vpack.c.bf16 %v309_v6, %v308_v3  ;;  %v150_v12 = vld [vmem:[%s5618_s9 + $0x8] sm:$0xff]  ;;  %v4714_v14 = vpack.c.bf16 %v311_v10, %v310_v9  ;;  %v151_v16 = vld [vmem:[%s5618_s9 + $0x10] sm:$0xff]  ;;  %v4826_v63 = vshrl.u32 %v582_v60, 7  ;;  %vm2453_vm8 = vcmask 1047559   ;;  %s4596_s20 = smov 120  }
   0x4   :  { %3919 = vmatprep.mubr.msk.f32.mxu0 %vm67_vm0, %v56_v7  ;;  %v149_v11 = vld [vmem:[%s5618_s9] sm:$0xff]  ;;  %4257 = vmatprep.subr.bf16.mxu0 %v4256_v5  ;;  %v57_v13 = vld [vmem:[%s5617_s0 + $0x8] sm:$0xf]  ;;  %v152_v17 = vld [vmem:[%s5618_s9 + $0x18] sm:$0xff]  ;;  %vm903_vm9 = vcmask 195584   ;;  %vm905_vm10 = vcmask 197632  }
   0x5   :  { %4274 = vmatpush3.bf16.msra.mxu1 %v4695_v8  ;;  %4259 = vmatpush3.bf16.msra.mxu0 %v4256_v5  ;;  %v4261_v15 = vpack.c.bf16 %v150_v12, %v149_v11  ;;  %v4264_v18 = vpack.c.bf16 %v152_v17, %v151_v16  ;;  %v4734_v19 = vld [vmem:[%s5619_s1] sm:$0xff]  ;;  %v387_v21 = vld [vmem:[%s5620_s7 + $0x8] sm:$0xff]  ;;  %v388_v24 = vld [vmem:[%s5620_s7 + $0x10] sm:$0xff]  ;;  %v4829_v2 = vsub.s32 1, %v4826_v63  ;;  %v4833_v10 = vsub.s32 0, %v4826_v63 }
   0x6   :  { %4275 = vmatprep.subr.bf16.mxu1 %v4587_v0  ;;  %4260 = vmatprep.subr.bf16.mxu0 %v4587_v0  ;;  %v386_v20 = vld [vmem:[%s5620_s7] sm:$0xff]  ;;  %v4753_v22 = vld [vmem:[%s5619_s1 + $0x8] sm:$0xff]  ;;  %v389_v25 = vld [vmem:[%s5620_s7 + $0x18] sm:$0xff]  ;;  %vm2026_vm11 = vcmask 201732   ;;  %vm1465_vm12 = vcmask 199682   ;;  %vm2587_vm13 = vcmask 203782  }
   0x7   :  { %v4755_v23 = vpack.c.bf16 %v387_v21, %v386_v20  ;;  %v4767_v26 = vpack.c.bf16 %v389_v25, %v388_v24  ;;  %v307_v27 = vld [vmem:[%s5621_s3] sm:$0x3]  ;;  %v500_v54 = vld [vmem:[%s5624_s11 + $0x8] sm:$0xff]  ;;  %v501_v55 = vld [vmem:[%s5624_s11 + $0x10] sm:$0xff] }
   0x8   :  { %3920 = vmatmul.mubr.msk.f32.vlgmr.msra.gmra.mrb[0].mxu0 %vm67_vm0, %v57_v13  ;;  %v3698_v28 = vld [vmem:[%s5622_s5] ss:$0 sm:$0xff]  ;;  %s4590_s5 = smov 64   ;;  %v502_v57 = vld [vmem:[%s5624_s11 + $0x18] sm:$0xff] }
   0x9   :  { %4277 = vmatpush3.bf16.msra.mxu1 %v4714_v14  ;;  %4262 = vmatpush3.bf16.msra.mxu0 %v4261_v15  ;;  %v4792_v38 = vld [vmem:[%s5623_s8] ss:$0 sm:$0xff]  ;;  %v4815_v59 = vpack.c.bf16 %v502_v57, %v501_v55 }
   0xa   :  { %4263 = vmatprep.subr.bf16.mxu0 %v4587_v0  ;;  %3930 = vmatprep.mubr.msk.f32.mxu0 %vm4588_vm1, %v4589_v4  ;;  %v499_v53 = vld [vmem:[%s5624_s11] sm:$0xff] }
   0xb   :  { %4284 = vmatprep.subr.bf16.mxu1 %v4587_v0  ;;  %v4809_v56 = vpack.c.bf16 %v500_v54, %v499_v53  ;;  %v52_v61 = vld [vmem:[%s5625_s2] sm:$0x3] }
   0xc   :  { %3953 = vmatmul.mubr.f32.vlgmr.msra.gmra.mrb[0].mxu1 %v4589_v4  ;;  %v53_v62 = vsub.f32 1.0, %v52_v61  ;;  %v3701_v25 = vld [vmem:[%s5626_s10] ss:$0 sm:$0xff] }
   0xd   :  { %4265 = vmatpush3.bf16.msra.mxu0 %v4264_v18  ;;  %3974 = vmatprep.mubr.msk.f32.mxu1 %vm4588_vm1, %v4589_v4 }
   0xe   :  { %4266 = vmatprep.subr.bf16.mxu0 %v4587_v0  ;;  %4286 = vmatpush3.bf16.msra.mxu1 %v4809_v56  ;;  %v640_v3 = vrot.slane %v53_v62, %v4829_v2  ;;  %v633_v12 = vrot.slane %v53_v62, %v4833_v10 }
   0xf   :  { %4287 = vmatprep.subr.bf16.mxu1 %v4587_v0 }
  0x10   :  { %3931 = vmatmul.mubr.msk.f32.vlgmr.msra.gmra.mrb[2].mxu0 %vm160_vm2, %v4734_v19 }
  0x11   :  { %4268 = vmatpush3.bf16.msra.mxu0 %v4261_v15  ;;  %3941 = vmatprep.mubr.msk.f32.mxu0 %vm4588_vm1, %v4589_v4  ;;  %v4593_v15 = vmov 1966171168  }
  0x12   :  { %4269 = vmatprep.subr.bf16.mxu0 %v4587_v0  ;;  %4289 = vmatpush3.bf16.msra.mxu1 %v4815_v59  ;;  %v580_v16 = vunpack.c.l.s4 %v4593_v15 }
  0x13   :  { %4302 = vmatprep.subr.bf16.mxu1 %v4587_v0 }
  0x14   :  { %v581_v17 = vunpack.c.0.s8 %v580_v16 }
  0x15   :  { %4271 = vmatpush3.bf16.msra.mxu0 %v4264_v18 }
  0x16   :  { %4278 = vmatprep.subr.bf16.mxu0 %v4587_v0  ;;  %v4851_v18 = vsub.s32 %v581_v17, %v4826_v63 }
  0x18   :  { %3942 = vmatmul.mubr.msk.f32.vlgmr.msra.gmra.mrb[4].mxu0 %vm160_vm2, %v4753_v22 }
  0x19   :  { %4280 = vmatpush3.bf16.msra.mxu0 %v4755_v23  ;;  %3963 = vmatprep.mubr.msk.f32.mxu0 %vm4588_vm1, %v4589_v4 }
  0x1a   :  { %4281 = vmatprep.subr.bf16.mxu0 %v4587_v0 }
  0x1d   :  { %4283 = vmatpush3.bf16.msra.mxu0 %v4767_v26 }
  0x1e   :  { %4290 = vmatprep.subr.bf16.mxu0 %v4587_v0 }
  0x20   :  { %3964 = vmatmul.mubr.msk.f32.vlgmr.msra.gmra.mrb[6].mxu0 %vm160_vm2, %v307_v27 }
  0x21   :  { %3993 = vmatprep.mubr.msk.f32.mxu0 %vm4588_vm1, %v4589_v4 }
  0xdb   :  { %v3921_v29 = vpop.f32.mrb[0].mxu0 }
  0xdc   :  { %v4783_v30 = vadd.f32 %v3921_v29, %v3698_v28  ;;  %v140_v31 = vpop.f32.mrb[1].mxu0 }
  0xdd   :  { %v4796_v42 = vadd.f32 %v3698_v28, %v140_v31 }
  0xdf   :  { %v381_v32 = vpop.f32.mrb[0].mxu1 }
  0xe0   :  { %v3954_v33 = vpop.f32.mrb[1].mxu1  ;;  %v385_v43 = vadd.f32 %v381_v32, %v4796_v42 }
  0xe3   :  { %v4785_v34 = vpop.f32.mrb[2].mxu0 }
  0xe4   :  { %v3932_v35 = vpop.f32.mrb[3].mxu0  ;;  %v4859_v29 = vadd.f32 %v3701_v25, %v4785_v34  ;;  %v4872_v34 = vld [vmem:[%s5627_s12] ss:$0 sm:$0xff] }
  0xeb   :  { %v4787_v36 = vpop.f32.mrb[4].mxu0 }
  0xec   :  { %v3943_v37 = vpop.f32.mrb[5].mxu0  ;;  %v4864_v33 = vadd.f32 %v3701_v25, %v4787_v36 }
  0xf3   :  { %v466_v39 = vpop.f32.mrb[6].mxu0 }
  0xf4   :  { %v467_v40 = vadd.f32 %v4792_v38, %v466_v39  ;;  %v3965_v41 = vpop.f32.mrb[7].mxu0 }
  0xf6   :  { %478 = vrot.lane.b32.xlu0 %v467_v40, %s4590_s5  ;;  %v470_v44 = vadd.f32 %v467_v40, %v385_v43 }
  0xf8   :  { %v3706_v45 = vmul.f32 -1.442695, %v470_v44 }
  0xfa   :  { %4464 = vpow2.f32 %v3706_v45 }
 0x104   :  { %v4465_v46 = vpop.eup %4464 }
 0x105   :  { %v474_v47 = vadd.f32 1.0, %v4465_v46  ;;  %v54_v46 = vmul.f32 -1000000.0, %v52_v61 }
 0x107   :  { %4466 = vrcp.f32 %v474_v47  ;;  %v652_v47 = vrot.slane %v54_v46, %v4833_v10 }
 0x111   :  { %v4467_v48 = vpop.eup %4466 }
 0x112   :  { %v488_v5 = vsub.f32 1.0, %v4467_v48 }
 0x168   :  { %v479_v49 = vpop.permute.xlu0 %478 }
 0x169   :  { %v481_v50 = vmul.f32 %v4467_v48, %v479_v49  ;;  %v659_v49 = vrot.slane %v54_v46, %v4829_v2 }
 0x16b   :  { %483 = vrot.lane.b32.xlu0 %v481_v50, %s4590_s5 }
 0x1dd   :  { %v484_v51 = vpop.permute.xlu0 %483 }
 0x1de   :  { %v486_v52 = vadd.f32 %v484_v51, %v385_v43 }
 0x1e0   :  { %4468 = vtanh.f32 %v486_v52 }
 0x1ea   :  { %v4469_v58 = vpop.eup %4468 }
 0x1eb   :  { %490 = vrot.lane.b32.xlu1 %v4469_v58, %s4591_s30 }
 0x1ef   :  { %494 = vrot.lane.b32.xlu1 %v307_v27, %s4592_s16 }
 0x1f3   :  { %642 = vbcast.lane.b32.xlu1 %v640_v3, 256 }
 0x25d   :  { %v491_v1 = vpop.permute.xlu1 %490 }
 0x25e   :  { %v493_v7 = vmul.f32 %v491_v1, %v488_v5  ;;  %v4893_v1 = vand.u32 127, %v582_v60 }
 0x260   :  { %v4897_v3 = vsub.s32 %v4893_v1, %v4826_v63 }
 0x261   :  { %v495_v6 = vpop.permute.xlu1 %494 }
 0x262   :  { %v497_v9 = vmul.f32 %v4467_v48, %v495_v6  ;;  %v4594_v48 = vmov 0  }
 0x263   :  { %4462 = vset.pattern.permute.xlu1 %v4594_v48  ;;  %4463 = vset.pattern.permute.xlu0 %v4594_v48 }
 0x264   :  { %v4835_v11 = vadd.f32 %v497_v9, %v493_v7 }
 0x265   :  { %v4880_v50 = vpop.permute.xlu1 %642 }
 0x266   :  { %504 = vrot.lane.b32.xlu0 %v4835_v11, %s4591_s30 }
 0x26a   :  { %635 = vbcast.lane.b32.xlu0 %v633_v12, 256 }
 0x2d8   :  { %v4840_v13 = vpop.permute.xlu0 %504 }
 0x2d9   :  { %3975 = vmatmul.mubr.msk.f32.vlgmr.msra.gmra.mrb[2].mxu1 %vm160_vm2, %v4840_v13 }
 0x2da   :  { %4304 = vmatpush3.bf16.msra.mxu1 %v4695_v8  ;;  %4004 = vmatprep.mubr.msk.f32.mxu1 %vm4588_vm1, %v4589_v4 }
 0x2db   :  { %4305 = vmatprep.subr.bf16.mxu1 %v4587_v0 }
 0x2dc   :  { %v4882_v51 = vpop.permute.xlu0 %635 }
 0x2de   :  { %4307 = vmatpush3.bf16.msra.mxu1 %v4714_v14 }
 0x2df   :  { %4308 = vmatprep.subr.bf16.mxu1 %v4587_v0 }
 0x3ac   :  { %v574_v20 = vpop.f32.mrb[2].mxu1 }
 0x3ad   :  { %v585_v21 = vrot.slane %v574_v20, %v4851_v18  ;;  %v3976_v24 = vpop.f32.mrb[3].mxu1 }
 0x3af   :  { %v586_v27 = vcombine.high %v585_v21, %v585_v21  ;;  %v593_v28 = vrot.slane %v585_v21, %v4851_v18 }
 0x3b1   :  { %v600_v31 = vrot.slane %v586_v27, %v4851_v18  ;;  %v604_v32 = vrot.slane %v593_v28, %v4833_v10 }
 0x3b3   :  { %v608_v35 = vrot.slane %v600_v31, %v4833_v10  ;;  %v611_v37 = vadd.f32 %v604_v32, %v4859_v29 }
 0x3b5   :  { %v612_v39 = vadd.f32 %v608_v35, %v4864_v33  ;;  %4470 = vtanh.f32 %v611_v37 }
 0x3b7   :  { %4472 = vtanh.f32 %v612_v39 }
 0x3bf   :  { %v4471_v40 = vpop.eup %4470 }
 0x3c0   :  { %v621_v41 = vmul.f32 %v4471_v40, %v4872_v34 }
 0x3c1   :  { %v4473_v43 = vpop.eup %4472 }
 0x3c2   :  { %v623_v36 = vsel %vm160_vm2, %v621_v41, 0.0  ;;  %v622_v44 = vmul.f32 %v4473_v43, %v4872_v34 }
 0x3c3   :  { %624 = vadd.xlane.f32.xlu1 %v623_v36 }
 0x3c4   :  { %v626_v45 = vsel %vm160_vm2, %v622_v44, 0.0 }
 0x3c5   :  { %627 = vadd.xlane.f32.xlu0 %v626_v45 }
 0x3d4   :  { %654 = vbcast.lane.b32.xlu1 %v652_v47, 256 }
 0x3db   :  { %661 = vbcast.lane.b32.xlu0 %v659_v49, 256 }
 0x450   :  { %v625_v52 = vpop.xlane.xlu1 %624 }
 0x451   :  { %v646_v54 = vmul.f32 %v4882_v51, %v625_v52 }
 0x452   :  { %v628_v53 = vpop.xlane.xlu0 %627 }
 0x453   :  { %v647_v57 = vmul.f32 %v4880_v50, %v628_v53 }
 0x454   :  { %v4885_v55 = vpop.permute.xlu1 %654 }
 0x455   :  { %v665_v58 = vadd.f32 %v4885_v55, %v646_v54 }
 0x456   :  { %v4889_v61 = vpop.permute.xlu0 %661 }
 0x457   :  { %670 = vperm.xlu1 %4462, %v665_v58   ;;  %v666_v62 = vadd.f32 %v4889_v61, %v647_v57 }
 0x459   :  { %673 = vperm.xlu0 %4463, %v666_v62  }
 0x4d6   :  { %v671_v5 = vpop.permute.xlu1 %670 }
 0x4d7   :  { %v680_v7 = vrot.slane %v671_v5, %v4897_v3 }
 0x4d8   :  { %v674_v6 = vpop.permute.xlu0 %673 }
 0x4d9   :  { %v684_v9 = vrot.slane %v674_v6, %v4897_v3 }
 0x4db   :  { %v686_v12 = vsel %vm685_vm3, %v684_v9, %v680_v7 }
 0x4dc   :  { %v689_v15 = vsel %vm688_vm4, %v686_v12, -inf }
 0x4dd   :  { %690 = vmax.xlane.f32.xlu1 %v689_v15 }
 0x56a   :  { %v691_v16 = vpop.xlane.xlu1 %690 }
 0x56b   :  { %v696_v60 = vrot.slane %v691_v16, %v4833_v10  ;;  %v700_v17 = vrot.slane %v691_v16, %v4829_v2 }
 0x56d   :  { %v703_v20 = vsub.f32 %v665_v58, %v696_v60  ;;  %v704_v21 = vsub.f32 %v666_v62, %v700_v17 }
 0x56f   :  { %v705_v24 = vmul.f32 1.442695, %v703_v20  ;;  %v707_v25 = vmul.f32 1.442695, %v704_v21 }
 0x571   :  { %4474 = vpow2.f32 %v705_v24 }
 0x572   :  { %4476 = vpow2.f32 %v707_v25 }
 0x57b   :  { %v4475_v27 = vpop.eup %4474 }
 0x57c   :  { %712 = vperm.xlu0 %4463, %v4475_v27   ;;  %v4477_v28 = vpop.eup %4476 }
 0x580   :  { %715 = vperm.xlu0 %4463, %v4477_v28  }
 0x5fb   :  { %v713_v31 = vpop.permute.xlu0 %712 }
 0x5fc   :  { %v720_v35 = vrot.slane %v713_v31, %v4897_v3 }
 0x5ff   :  { %v716_v32 = vpop.permute.xlu0 %715 }
 0x600   :  { %v724_v37 = vrot.slane %v716_v32, %v4897_v3 }
 0x602   :  { %v725_v39 = vsel %vm685_vm3, %v724_v37, %v720_v35 }
 0x603   :  { %v727_v40 = vsel %vm688_vm4, %v725_v39, 0.0 }
 0x604   :  { %728 = vadd.xlane.f32.xlu0 %v727_v40 }
 0x691   :  { %v729_v41 = vpop.xlane.xlu0 %728 }
 0x692   :  { %4478 = vrcp.f32 %v729_v41 }
 0x69c   :  { %v4479_v43 = vpop.eup %4478 }
 0x69d   :  { %v739_v36 = vrot.slane %v4479_v43, %v4829_v2  ;;  %v735_v44 = vrot.slane %v4479_v43, %v4833_v10 }
 0x69f   :  { %v743_v45 = vmul.f32 %v4477_v28, %v739_v36  ;;  %v742_v46 = vmul.f32 %v4475_v27, %v735_v44 }
 0x6a1   :  { %751 = vperm.xlu0 %4463, %v743_v45   ;;  %746 = vperm.xlu1 %4462, %v742_v46   ;;  %v778_v45 = vld [vmem:[%s5628_s13] sm:$0xff]  ;;  %v779_v46 = vld [vmem:[%s5628_s13 + $0x8] sm:$0xff] }
 0x720   :  { %v4911_v47 = vpop.permute.xlu0 %751  ;;  %v4913_v48 = vpop.permute.xlu1 %746 }
 0x721   :  { %v755_v49 = vmul.f32 %v4911_v47, %v4753_v22  ;;  %v754_v52 = vmul.f32 %v4913_v48, %v4734_v19 }
 0x723   :  { %v763_v53 = vsel %vm160_vm2, %v755_v49, 0.0  ;;  %v756_v54 = vsel %vm160_vm2, %v754_v52, 0.0  ;;  %v780_v49 = vld [vmem:[%s5628_s13 + $0x10] sm:$0xff]  ;;  %v4946_v52 = vpack.c.bf16 %v779_v46, %v778_v45 }
 0x724   :  { %v764_v57 = vrot.slane %v763_v53, 4  ;;  %v757_v58 = vrot.slane %v756_v54, 4 }
 0x725   :  { %4292 = vmatpush3.bf16.msra.mxu0 %v4946_v52 }
 0x726   :  { %v765_v62 = vadd.f32 %v764_v57, %v763_v53  ;;  %v758_v5 = vadd.f32 %v757_v58, %v756_v54  ;;  %v781_v53 = vld [vmem:[%s5628_s13 + $0x18] sm:$0xff]  ;;  %4293 = vmatprep.subr.bf16.mxu0 %v4587_v0  ;;  %v782_v57 = vld [vmem:[%s5628_s13 + $0x20] sm:$0xff]  ;;  %v783_v58 = vld [vmem:[%s5628_s13 + $0x28] sm:$0xff] }
 0x727   :  { %v4952_v54 = vpack.c.bf16 %v781_v53, %v780_v49 }
 0x728   :  { %v766_v6 = vrot.slane %v765_v62, 2  ;;  %v759_v7 = vrot.slane %v758_v5, 2 }
 0x729   :  { %4295 = vmatpush3.bf16.msra.mxu0 %v4952_v54 }
 0x72a   :  { %v767_v9 = vadd.f32 %v766_v6, %v765_v62  ;;  %v760_v12 = vadd.f32 %v759_v7, %v758_v5  ;;  %v4964_v62 = vpack.c.bf16 %v783_v58, %v782_v57  ;;  %4296 = vmatprep.subr.bf16.mxu0 %v4587_v0  ;;  %v784_v6 = vld [vmem:[%s5628_s13 + $0x30] sm:$0xff]  ;;  %v785_v7 = vld [vmem:[%s5628_s13 + $0x38] sm:$0xff] }
 0x72c   :  { %v768_v15 = vrot.slane %v767_v9, 1  ;;  %v761_v16 = vrot.slane %v760_v12, 1 }
 0x72d   :  { %4298 = vmatpush3.bf16.msra.mxu0 %v4964_v62 }
 0x72e   :  { %v762_v60 = vadd.f32 %v761_v16, %v760_v12  ;;  %v769_v17 = vadd.f32 %v768_v15, %v767_v9  ;;  %4299 = vmatprep.subr.bf16.mxu0 %v4587_v0  ;;  %v4979_v12 = vpack.c.bf16 %v785_v7, %v784_v6  ;;  %v1094_v16 = vrot.slane %v4835_v11, 6 }
 0x730   :  { %v773_v20 = vsel %vm685_vm3, %v769_v17, %v762_v60 }
 0x731   :  { %4005 = vmatmul.mubr.msk.f32.vlgmr.msra.gmra.mrb[4].mxu1 %vm160_vm2, %v773_v20  ;;  %4301 = vmatpush3.bf16.msra.mxu0 %v4979_v12 }
 0x732   :  { %4310 = vmatpush3.bf16.msra.mxu1 %v4755_v23  ;;  %4015 = vmatprep.mubr.msk.f32.mxu1 %vm4588_vm1, %v4589_v4 }
 0x733   :  { %4311 = vmatprep.subr.bf16.mxu1 %v4587_v0  ;;  %4314 = vmatprep.subr.bf16.mxu0 %v4587_v0 }
 0x736   :  { %4313 = vmatpush3.bf16.msra.mxu1 %v4767_v26 }
 0x737   :  { %4320 = vmatprep.subr.bf16.mxu1 %v4587_v0 }
 0x739   :  { %4016 = vmatmul.mubr.msk.f32.vlgmr.msra.gmra.mrb[6].mxu1 %vm160_vm2, %v4840_v13 }
 0x73a   :  { %4045 = vmatprep.mubr.msk.f32.mxu1 %vm4588_vm1, %v4589_v4  ;;  %4322 = vmatpush3.bf16.msra.mxu1 %v4946_v52 }
 0x73b   :  { %4323 = vmatprep.subr.bf16.mxu1 %v4587_v0 }
 0x73e   :  { %4325 = vmatpush3.bf16.msra.mxu1 %v4952_v54 }
 0x73f   :  { %4326 = vmatprep.subr.bf16.mxu1 %v4587_v0 }
 0x742   :  { %4328 = vmatpush3.bf16.msra.mxu1 %v4964_v62 }
 0x743   :  { %4329 = vmatprep.subr.bf16.mxu1 %v4587_v0 }
 0x746   :  { %4331 = vmatpush3.bf16.msra.mxu1 %v4979_v12 }
 0x747   :  { %4344 = vmatprep.subr.bf16.mxu1 %v4587_v0 }
 0x804   :  { %v979_v21 = vpop.f32.mrb[4].mxu1 }
 0x805   :  { %v4006_v24 = vpop.f32.mrb[5].mxu1  ;;  %v984_v32 = vrot.slane %v979_v21, 6 }
 0x807   :  { %v986_v35 = vadd.f32 %v984_v32, %v4796_v42 }
 0x80c   :  { %v1064_v25 = vpop.f32.mrb[6].mxu1 }
 0x80d   :  { %v1065_v27 = vadd.f32 %v4792_v38, %v1064_v25  ;;  %v4017_v28 = vpop.f32.mrb[7].mxu1 }
 0x80f   :  { %v1069_v31 = vrot.slane %v1065_v27, 6 }
 0x811   :  { %1078 = vrot.lane.b32.xlu1 %v1069_v31, %s4590_s5  ;;  %v1071_v37 = vadd.f32 %v1069_v31, %v986_v35 }
 0x813   :  { %v3715_v39 = vmul.f32 -1.442695, %v1071_v37 }
 0x815   :  { %4480 = vpow2.f32 %v3715_v39 }
 0x81f   :  { %v4481_v40 = vpop.eup %4480 }
 0x820   :  { %v1075_v41 = vadd.f32 1.0, %v4481_v40 }
 0x822   :  { %4482 = vrcp.f32 %v1075_v41 }
 0x82c   :  { %v4483_v43 = vpop.eup %4482 }
 0x82d   :  { %v1088_v60 = vsub.f32 1.0, %v4483_v43  ;;  %v1096_v21 = vmul.f32 %v4483_v43, %v1094_v16 }
 0x883   :  { %v1079_v36 = vpop.permute.xlu1 %1078 }
 0x884   :  { %v1081_v44 = vmul.f32 %v4483_v43, %v1079_v36 }
 0x886   :  { %1083 = vrot.lane.b32.xlu1 %v1081_v44, %s4590_s5 }
 0x8f8   :  { %v1084_v5 = vpop.permute.xlu1 %1083 }
 0x8f9   :  { %v1086_v9 = vadd.f32 %v1084_v5, %v986_v35 }
 0x8fb   :  { %4484 = vtanh.f32 %v1086_v9 }
 0x905   :  { %v4485_v15 = vpop.eup %4484 }
 0x906   :  { %1090 = vrot.lane.b32.xlu1 %v4485_v15, %s4591_s30 }
 0x90a   :  { %774 = vrot.lane.b32.xlu1 %v773_v20, %s4592_s16 }
 0x978   :  { %v1091_v17 = vpop.permute.xlu1 %1090 }
 0x979   :  { %v1093_v24 = vmul.f32 %v1091_v17, %v1088_v60 }
 0x97b   :  { %v4988_v25 = vadd.f32 %v1096_v21, %v1093_v24 }
 0x97c   :  { %v775_v27 = vpop.permute.xlu1 %774 }
 0x97d   :  { %v777_v28 = vsel %vm160_vm2, %v4840_v13, %v775_v27  ;;  %v1103_v31 = vrot.slane %v4988_v25, 2 }
 0x97e   :  { %3994 = vmatmul.mubr.msk.f32.vlgmr.msra.gmra.mrb[8].mxu0 %vm793_vm5, %v777_v28 }
 0x97f   :  { %1104 = vrot.lane.b32.xlu0 %v1103_v31, %s4591_s30  ;;  %4316 = vmatpush3.bf16.msra.mxu0 %v4809_v56 }
 0x980   :  { %4317 = vmatprep.subr.bf16.mxu0 %v4587_v0  ;;  %4026 = vmatprep.mubr.msk.f32.mxu0 %vm4588_vm1, %v4589_v4 }
 0x983   :  { %4319 = vmatpush3.bf16.msra.mxu0 %v4815_v59 }
 0x984   :  { %4332 = vmatprep.subr.bf16.mxu0 %v4587_v0 }
 0x9f1   :  { %v5001_v11 = vpop.permute.xlu0 %1104 }
 0x9f2   :  { %4027 = vmatmul.mubr.msk.f32.vlgmr.msra.gmra.mrb[10].mxu0 %vm160_vm2, %v5001_v11 }
 0x9f3   :  { %4334 = vmatpush3.bf16.msra.mxu0 %v4695_v8  ;;  %4056 = vmatprep.mubr.msk.f32.mxu0 %vm4588_vm1, %v4589_v4 }
 0x9f4   :  { %4335 = vmatprep.subr.bf16.mxu0 %v4587_v0 }
 0x9f7   :  { %4337 = vmatpush3.bf16.msra.mxu0 %v4714_v14 }
 0x9f8   :  { %4338 = vmatprep.subr.bf16.mxu0 %v4587_v0 }
 0xa51   :  { %v5011_v13 = vpop.f32.mrb[8].mxu0 }
 0xa52   :  { %v3995_v20 = vpop.f32.mrb[9].mxu0 }
 0xac5   :  { %v1174_v32 = vpop.f32.mrb[10].mxu0 }
 0xac6   :  { %v1185_v35 = vrot.slane %v1174_v32, %v4851_v18  ;;  %v4028_v37 = vpop.f32.mrb[11].mxu0 }
 0xac8   :  { %v1186_v39 = vcombine.high %v1185_v35, %v1185_v35  ;;  %v1193_v40 = vrot.slane %v1185_v35, %v4851_v18 }
 0xaca   :  { %v1200_v8 = vrot.slane %v1186_v39, %v4851_v18  ;;  %v1204_v41 = vrot.slane %v1193_v40, %v4833_v10 }
 0xacc   :  { %v1208_v43 = vrot.slane %v1200_v8, %v4833_v10  ;;  %v1211_v14 = vadd.f32 %v1204_v41, %v4859_v29 }
 0xace   :  { %v1212_v36 = vadd.f32 %v1208_v43, %v4864_v33  ;;  %4486 = vtanh.f32 %v1211_v14 }
 0xad0   :  { %4488 = vtanh.f32 %v1212_v36 }
 0xad8   :  { %v4487_v44 = vpop.eup %4486 }
 0xad9   :  { %v1215_v45 = vmul.f32 %v4487_v44, %v4872_v34 }
 0xada   :  { %v4489_v46 = vpop.eup %4488 }
 0xadb   :  { %v1217_v49 = vsel %vm160_vm2, %v1215_v45, 0.0  ;;  %v1216_v53 = vmul.f32 %v4489_v46, %v4872_v34 }
 0xadc   :  { %1218 = vadd.xlane.f32.xlu1 %v1217_v49 }
 0xadd   :  { %v1220_v57 = vsel %vm160_vm2, %v1216_v53, 0.0 }
 0xade   :  { %1221 = vadd.xlane.f32.xlu0 %v1220_v57 }
 0xb69   :  { %v1219_v58 = vpop.xlane.xlu1 %1218 }
 0xb6a   :  { %v1223_v5 = vmul.f32 %v1219_v58, %v4882_v51 }
 0xb6b   :  { %v1222_v6 = vpop.xlane.xlu0 %1221 }
 0xb6c   :  { %v1225_v7 = vadd.f32 %v1223_v5, %v4885_v55  ;;  %v1224_v9 = vmul.f32 %v1222_v6, %v4880_v50 }
 0xb6e   :  { %v1226_v15 = vadd.f32 %v1224_v9, %v4889_v61  ;;  %1230 = vperm.xlu0 %4463, %v1225_v7  }
 0xb70   :  { %1233 = vperm.xlu1 %4462, %v1226_v15  }
 0xbed   :  { %v1231_v16 = vpop.permute.xlu0 %1230 }
 0xbee   :  { %v1238_v17 = vrot.slane %v1231_v16, %v4897_v3 }
 0xbef   :  { %v1234_v60 = vpop.permute.xlu1 %1233 }
 0xbf0   :  { %v1242_v21 = vrot.slane %v1234_v60, %v4897_v3 }
 0xbf2   :  { %v1243_v24 = vsel %vm685_vm3, %v1242_v21, %v1238_v17 }
 0xbf3   :  { %v1245_v27 = vsel %vm688_vm4, %v1243_v24, -inf }
 0xbf4   :  { %1246 = vmax.xlane.f32.xlu1 %v1245_v27 }
 0xc81   :  { %v1247_v28 = vpop.xlane.xlu1 %1246 }
 0xc82   :  { %v1252_v31 = vrot.slane %v1247_v28, %v4833_v10  ;;  %v1256_v20 = vrot.slane %v1247_v28, %v4829_v2 }
 0xc84   :  { %v1259_v32 = vsub.f32 %v1225_v7, %v1252_v31  ;;  %v1260_v35 = vsub.f32 %v1226_v15, %v1256_v20 }
 0xc86   :  { %v1261_v37 = vmul.f32 1.442695, %v1259_v32  ;;  %v1263_v39 = vmul.f32 1.442695, %v1260_v35 }
 0xc88   :  { %4490 = vpow2.f32 %v1261_v37 }
 0xc89   :  { %4492 = vpow2.f32 %v1263_v39 }
 0xc92   :  { %v4491_v40 = vpop.eup %4490 }
 0xc93   :  { %1268 = vperm.xlu0 %4463, %v4491_v40   ;;  %v4493_v8 = vpop.eup %4492 }
 0xc97   :  { %1271 = vperm.xlu0 %4463, %v4493_v8  }
 0xd12   :  { %v1269_v41 = vpop.permute.xlu0 %1268 }
 0xd13   :  { %v1276_v14 = vrot.slane %v1269_v41, %v4897_v3 }
 0xd16   :  { %v1272_v43 = vpop.permute.xlu0 %1271 }
 0xd17   :  { %v1280_v36 = vrot.slane %v1272_v43, %v4897_v3 }
 0xd19   :  { %v1281_v44 = vsel %vm685_vm3, %v1280_v36, %v1276_v14 }
 0xd1a   :  { %v1283_v45 = vsel %vm688_vm4, %v1281_v44, 0.0 }
 0xd1b   :  { %1284 = vadd.xlane.f32.xlu0 %v1283_v45 }
 0xda8   :  { %v1285_v46 = vpop.xlane.xlu0 %1284 }
 0xda9   :  { %4494 = vrcp.f32 %v1285_v46 }
 0xdb3   :  { %v4495_v49 = vpop.eup %4494 }
 0xdb4   :  { %v1295_v53 = vrot.slane %v4495_v49, %v4829_v2  ;;  %v1291_v57 = vrot.slane %v4495_v49, %v4833_v10 }
 0xdb6   :  { %v1299_v58 = vmul.f32 %v4493_v8, %v1295_v53  ;;  %v1298_v5 = vmul.f32 %v4491_v40, %v1291_v57 }
 0xdb8   :  { %1307 = vperm.xlu0 %4463, %v1299_v58   ;;  %1302 = vperm.xlu1 %4462, %v1298_v5   ;;  %v1655_v58 = vrot.slane %v4988_v25, 6 }
 0xdbc   :  { %1326 = vrot.lane.b32.xlu0 %v4988_v25, %s4591_s30 }
 0xe37   :  { %v5042_v6 = vpop.permute.xlu0 %1307  ;;  %v5044_v7 = vpop.permute.xlu1 %1302 }
 0xe38   :  { %v1311_v9 = vmul.f32 %v5042_v6, %v4753_v22  ;;  %v1310_v15 = vmul.f32 %v5044_v7, %v4734_v19 }
 0xe3a   :  { %v1319_v16 = vsel %vm160_vm2, %v1311_v9, 0.0  ;;  %v1312_v60 = vsel %vm160_vm2, %v1310_v15, 0.0 }
 0xe3b   :  { %v1320_v17 = vrot.slane %v1319_v16, 4  ;;  %v1313_v21 = vrot.slane %v1312_v60, 4 }
 0xe3d   :  { %v1321_v24 = vadd.f32 %v1320_v17, %v1319_v16  ;;  %v1314_v27 = vadd.f32 %v1313_v21, %v1312_v60  ;;  %v1327_v60 = vpop.permute.xlu0 %1326 }
 0xe3f   :  { %v1322_v28 = vrot.slane %v1321_v24, 2  ;;  %v1315_v31 = vrot.slane %v1314_v27, 2 }
 0xe41   :  { %v1323_v20 = vadd.f32 %v1322_v28, %v1321_v24  ;;  %v1316_v32 = vadd.f32 %v1315_v31, %v1314_v27 }
 0xe43   :  { %v1324_v35 = vrot.slane %v1323_v20, 1  ;;  %v1317_v37 = vrot.slane %v1316_v32, 1 }
 0xe45   :  { %v1325_v39 = vadd.f32 %v1324_v35, %v1323_v20  ;;  %v1318_v40 = vadd.f32 %v1317_v37, %v1316_v32 }
 0xe47   :  { %v1471_v22 = vsel %vm685_vm3, %v1325_v39, %v1318_v40  ;;  %v1332_v19 = vsel %vm1331_vm6, %v1325_v39, %v1318_v40 }
 0xe48   :  { %4057 = vmatmul.mubr.msk.f32.vlgmr.msra.gmra.mrb[12].mxu0 %vm160_vm2, %v1471_v22 }
 0xe49   :  { %4340 = vmatpush3.bf16.msra.mxu0 %v4755_v23  ;;  %4067 = vmatprep.mubr.msk.f32.mxu0 %vm4588_vm1, %v4589_v4 }
 0xe4a   :  { %4341 = vmatprep.subr.bf16.mxu0 %v4587_v0 }
 0xe4d   :  { %4343 = vmatpush3.bf16.msra.mxu0 %v4767_v26 }
 0xe4e   :  { %4350 = vmatprep.subr.bf16.mxu0 %v4587_v0 }
 0xe50   :  { %4068 = vmatmul.mubr.msk.f32.vlgmr.msra.gmra.mrb[14].mxu0 %vm160_vm2, %v5001_v11 }
 0xe51   :  { %4352 = vmatpush3.bf16.msra.mxu0 %v4946_v52  ;;  %4097 = vmatprep.mubr.msk.f32.mxu0 %vm4588_vm1, %v4589_v4 }
 0xe52   :  { %4353 = vmatprep.subr.bf16.mxu0 %v4587_v0 }
 0xe55   :  { %4355 = vmatpush3.bf16.msra.mxu0 %v4952_v54 }
 0xe56   :  { %4356 = vmatprep.subr.bf16.mxu0 %v4587_v0 }
 0xe59   :  { %4358 = vmatpush3.bf16.msra.mxu0 %v4964_v62 }
 0xe5a   :  { %4359 = vmatprep.subr.bf16.mxu0 %v4587_v0 }
 0xe5d   :  { %4361 = vmatpush3.bf16.msra.mxu0 %v4979_v12 }
 0xe5e   :  { %4374 = vmatprep.subr.bf16.mxu0 %v4587_v0 }
 0xf1b   :  { %v1540_v23 = vpop.f32.mrb[12].mxu0 }
 0xf1c   :  { %v4058_v26 = vpop.f32.mrb[13].mxu0  ;;  %v1545_v54 = vrot.slane %v1540_v23, 4 }
 0xf1e   :  { %v1547_v43 = vadd.f32 %v1545_v54, %v4796_v42 }
 0xf23   :  { %v1625_v52 = vpop.f32.mrb[14].mxu0 }
 0xf24   :  { %v1626_v11 = vadd.f32 %v4792_v38, %v1625_v52  ;;  %v4069_v8 = vpop.f32.mrb[15].mxu0 }
 0xf26   :  { %v1630_v41 = vrot.slane %v1626_v11, 4 }
 0xf28   :  { %1639 = vrot.lane.b32.xlu1 %v1630_v41, %s4590_s5  ;;  %v1632_v14 = vadd.f32 %v1630_v41, %v1547_v43 }
 0xf2a   :  { %v3724_v62 = vmul.f32 -1.442695, %v1632_v14 }
 0xf2c   :  { %4496 = vpow2.f32 %v3724_v62 }
 0xf36   :  { %v4497_v36 = vpop.eup %4496 }
 0xf37   :  { %v1636_v44 = vadd.f32 1.0, %v4497_v36 }
 0xf39   :  { %4498 = vrcp.f32 %v1636_v44 }
 0xf43   :  { %v4499_v12 = vpop.eup %4498 }
 0xf44   :  { %v1649_v57 = vsub.f32 1.0, %v4499_v12  ;;  %v1657_v9 = vmul.f32 %v4499_v12, %v1655_v58 }
 0xf9a   :  { %v1640_v45 = vpop.permute.xlu1 %1639 }
 0xf9b   :  { %v1642_v46 = vmul.f32 %v4499_v12, %v1640_v45 }
 0xf9d   :  { %1644 = vrot.lane.b32.xlu1 %v1642_v46, %s4590_s5 }
0x100f   :  { %v1645_v49 = vpop.permute.xlu1 %1644 }
0x1010   :  { %v1647_v38 = vadd.f32 %v1645_v49, %v1547_v43 }
0x1012   :  { %4500 = vtanh.f32 %v1647_v38 }
0x101c   :  { %v4501_v53 = vpop.eup %4500 }
0x101d   :  { %1651 = vrot.lane.b32.xlu1 %v4501_v53, %s4591_s30 }
0x1021   :  { %1333 = vrot.lane.b32.xlu1 %v1332_v19, %s4592_s16 }
0x108f   :  { %v1652_v5 = vpop.permute.xlu1 %1651 }
0x1090   :  { %v1654_v15 = vmul.f32 %v1652_v5, %v1649_v57 }
0x1092   :  { %v5080_v16 = vadd.f32 %v1657_v9, %v1654_v15 }
0x1093   :  { %v1334_v17 = vpop.permute.xlu1 %1333 }
0x1094   :  { %v1336_v21 = vsel %vm160_vm2, %v1327_v60, %v1334_v17  ;;  %v1664_v24 = vrot.slane %v5080_v16, 4 }
0x1095   :  { %v1353_v27 = vrot.slane %v1336_v21, 2 }
0x1096   :  { %1665 = vrot.lane.b32.xlu0 %v1664_v24, %s4591_s30 }
0x1097   :  { %4046 = vmatmul.mubr.msk.f32.vlgmr.msra.gmra.mrb[8].mxu1 %vm793_vm5, %v1353_v27 }
0x1098   :  { %4346 = vmatpush3.bf16.msra.mxu1 %v4809_v56  ;;  %4078 = vmatprep.mubr.msk.f32.mxu1 %vm4588_vm1, %v4589_v4 }
0x1099   :  { %4347 = vmatprep.subr.bf16.mxu1 %v4587_v0 }
0x109c   :  { %4349 = vmatpush3.bf16.msra.mxu1 %v4815_v59 }
0x109d   :  { %4362 = vmatprep.subr.bf16.mxu1 %v4587_v0 }
0x1108   :  { %v5092_v25 = vpop.permute.xlu0 %1665 }
0x1109   :  { %4079 = vmatmul.mubr.msk.f32.vlgmr.msra.gmra.mrb[10].mxu1 %vm160_vm2, %v5092_v25 }
0x110a   :  { %4108 = vmatprep.mubr.msk.f32.mxu1 %vm4588_vm1, %v4589_v4 }
0x116a   :  { %v5098_v28 = vpop.f32.mrb[8].mxu1 }
0x116b   :  { %v4047_v56 = vpop.f32.mrb[9].mxu1 }
0x11dc   :  { %v1735_v31 = vpop.f32.mrb[10].mxu1 }
0x11dd   :  { %v1746_v20 = vrot.slane %v1735_v31, %v4851_v18  ;;  %v4080_v32 = vpop.f32.mrb[11].mxu1 }
0x11df   :  { %v1747_v35 = vcombine.high %v1746_v20, %v1746_v20  ;;  %v1754_v59 = vrot.slane %v1746_v20, %v4851_v18 }
0x11e1   :  { %v1761_v37 = vrot.slane %v1747_v35, %v4851_v18  ;;  %v1765_v39 = vrot.slane %v1754_v59, %v4833_v10 }
0x11e3   :  { %v1769_v40 = vrot.slane %v1761_v37, %v4833_v10  ;;  %v1772_v22 = vadd.f32 %v1765_v39, %v4859_v29 }
0x11e5   :  { %v1773_v19 = vadd.f32 %v1769_v40, %v4864_v33  ;;  %4502 = vtanh.f32 %v1772_v22 }
0x11e7   :  { %4504 = vtanh.f32 %v1773_v19  ;;  %v2028_v19 = vld [vmem:[%s5616_s6] sm:$0xff] }
0x11ef   :  { %v4503_v23 = vpop.eup %4502 }
0x11f0   :  { %v1776_v26 = vmul.f32 %v4503_v23, %v4872_v34  ;;  %v2029_v23 = vld [vmem:[%s5616_s6 + $0x8] sm:$0xff] }
0x11f1   :  { %v4505_v52 = vpop.eup %4504 }
0x11f2   :  { %v1778_v11 = vsel %vm160_vm2, %v1776_v26, 0.0  ;;  %v1777_v8 = vmul.f32 %v4505_v52, %v4872_v34  ;;  %v5135_v26 = vpack.c.bf16 %v2029_v23, %v2028_v19  ;;  %v2030_v52 = vld [vmem:[%s5616_s6 + $0x10] sm:$0xff] }
0x11f3   :  { %1779 = vadd.xlane.f32.xlu1 %v1778_v11  ;;  %v2031_v11 = vld [vmem:[%s5616_s6 + $0x18] sm:$0xff] }
0x11f4   :  { %v1781_v41 = vsel %vm160_vm2, %v1777_v8, 0.0  ;;  %4364 = vmatpush3.bf16.msra.mxu1 %v5135_v26  ;;  %v5145_v8 = vpack.c.bf16 %v2031_v11, %v2030_v52 }
0x11f5   :  { %1782 = vadd.xlane.f32.xlu0 %v1781_v41  ;;  %4365 = vmatprep.subr.bf16.mxu1 %v4587_v0  ;;  %v887_v41 = vadd.s32 4294967280, %v4893_v1 }
0x11f8   :  { %4367 = vmatpush3.bf16.msra.mxu1 %v5145_v8 }
0x11f9   :  { %4368 = vmatprep.subr.bf16.mxu1 %v4587_v0 }
0x1280   :  { %v1780_v54 = vpop.xlane.xlu1 %1779 }
0x1281   :  { %v1784_v43 = vmul.f32 %v1780_v54, %v4882_v51  ;;  %v5151_v54 = vsub.s32 %v887_v41, %v4826_v63 }
0x1282   :  { %v1783_v14 = vpop.xlane.xlu0 %1782 }
0x1283   :  { %v1786_v62 = vadd.f32 %v1784_v43, %v4885_v55  ;;  %v1785_v36 = vmul.f32 %v1783_v14, %v4880_v50 }
0x1285   :  { %v1787_v44 = vadd.f32 %v1785_v36, %v4889_v61  ;;  %1791 = vperm.xlu0 %4463, %v1786_v62  }
0x1287   :  { %1794 = vperm.xlu1 %4462, %v1787_v44  }
0x1304   :  { %v1792_v12 = vpop.permute.xlu0 %1791 }
0x1305   :  { %v1799_v34 = vrot.slane %v1792_v12, %v4897_v3  ;;  %v5163_v12 = vld [vmem:[%s5619_s1] sm:$0xff] }
0x1306   :  { %v1795_v45 = vpop.permute.xlu1 %1794 }
0x1307   :  { %v1803_v46 = vrot.slane %v1795_v45, %v4897_v3 }
0x1309   :  { %v1804_v49 = vsel %vm685_vm3, %v1803_v46, %v1799_v34 }
0x130a   :  { %v1806_v38 = vsel %vm688_vm4, %v1804_v49, -inf }
0x130b   :  { %1807 = vmax.xlane.f32.xlu1 %v1806_v38 }
0x1398   :  { %v1808_v53 = vpop.xlane.xlu1 %1807 }
0x1399   :  { %v1813_v57 = vrot.slane %v1808_v53, %v4833_v10  ;;  %v1817_v58 = vrot.slane %v1808_v53, %v4829_v2 }
0x139b   :  { %v1820_v5 = vsub.f32 %v1786_v62, %v1813_v57  ;;  %v1821_v9 = vsub.f32 %v1787_v44, %v1817_v58  ;;  %v5156_v62 = vld [vmem:[%s5619_s1 + $0x8] sm:$0xff] }
0x139d   :  { %v1822_v15 = vmul.f32 1.442695, %v1820_v5  ;;  %v1824_v60 = vmul.f32 1.442695, %v1821_v9 }
0x139f   :  { %4506 = vpow2.f32 %v1822_v15 }
0x13a0   :  { %4508 = vpow2.f32 %v1824_v60  ;;  %v2109_v60 = vld [vmem:[%s5620_s7] sm:$0xff] }
0x13a9   :  { %v4507_v17 = vpop.eup %4506 }
0x13aa   :  { %1829 = vperm.xlu0 %4463, %v4507_v17   ;;  %v4509_v21 = vpop.eup %4508 }
0x13ae   :  { %1832 = vperm.xlu0 %4463, %v4509_v21  }
0x1429   :  { %v1830_v24 = vpop.permute.xlu0 %1829 }
0x142a   :  { %v1837_v56 = vrot.slane %v1830_v24, %v4897_v3 }
0x142d   :  { %v1833_v27 = vpop.permute.xlu0 %1832 }
0x142e   :  { %v1841_v31 = vrot.slane %v1833_v27, %v4897_v3 }
0x1430   :  { %v1842_v20 = vsel %vm685_vm3, %v1841_v31, %v1837_v56 }
0x1431   :  { %v1844_v32 = vsel %vm688_vm4, %v1842_v20, 0.0  ;;  %v2111_v20 = vld [vmem:[%s5620_s7 + $0x10] sm:$0xff] }
0x1432   :  { %1845 = vadd.xlane.f32.xlu0 %v1844_v32  ;;  %v2112_v32 = vld [vmem:[%s5620_s7 + $0x18] sm:$0xff] }
0x14bf   :  { %v1846_v35 = vpop.xlane.xlu0 %1845 }
0x14c0   :  { %4510 = vrcp.f32 %v1846_v35 }
0x14ca   :  { %v4511_v59 = vpop.eup %4510 }
0x14cb   :  { %v1856_v37 = vrot.slane %v4511_v59, %v4829_v2  ;;  %v1852_v39 = vrot.slane %v4511_v59, %v4833_v10 }
0x14cd   :  { %v1860_v40 = vmul.f32 %v4509_v21, %v1856_v37  ;;  %v1859_v22 = vmul.f32 %v4507_v17, %v1852_v39  ;;  %v2110_v17 = vld [vmem:[%s5620_s7 + $0x8] sm:$0xff]  ;;  %v5190_v37 = vpack.c.bf16 %v2112_v32, %v2111_v20  ;;  %v2222_v32 = vld [vmem:[%s5624_s11 + $0x10] sm:$0xff] }
0x14ce   :  { %v5178_v31 = vpack.c.bf16 %v2110_v17, %v2109_v60  ;;  %v2221_v60 = vld [vmem:[%s5624_s11 + $0x8] sm:$0xff] }
0x14cf   :  { %1868 = vperm.xlu0 %4463, %v1860_v40   ;;  %1863 = vperm.xlu1 %4462, %v1859_v22   ;;  %v5204_v22 = vld [vmem:[%s5623_s8] ss:$0 sm:$0xff] }
0x14d3   :  { %1887 = vrot.lane.b32.xlu0 %v5080_v16, %s4591_s30 }
0x154e   :  { %v1869_v43 = vpop.permute.xlu0 %1868  ;;  %v1864_v14 = vpop.permute.xlu1 %1863 }
0x154f   :  { %v1872_v36 = vmul.f32 %v5156_v62, %v1869_v43  ;;  %v2015_v44 = vrot.slane %v1869_v43, %v5151_v54  ;;  %v1871_v63 = vmul.f32 %v5163_v12, %v1864_v14  ;;  %v2011_v1 = vrot.slane %v1864_v14, %v5151_v54 }
0x1551   :  { %v1880_v45 = vsel %vm160_vm2, %v1872_v36, 0.0  ;;  %v1873_v34 = vsel %vm160_vm2, %v1871_v63, 0.0  ;;  %v5170_v46 = vsel %vm1892_vm7, %v2015_v44, %v2011_v1 }
0x1552   :  { %v1881_v49 = vrot.slane %v1880_v45, 4  ;;  %v1874_v38 = vrot.slane %v1873_v34, 4 }
0x1554   :  { %v1882_v53 = vadd.f32 %v1881_v49, %v1880_v45  ;;  %v1875_v57 = vadd.f32 %v1874_v38, %v1873_v34 }
0x1556   :  { %v1883_v58 = vrot.slane %v1882_v53, 2  ;;  %v1876_v5 = vrot.slane %v1875_v57, 2 }
0x1558   :  { %v1884_v9 = vadd.f32 %v1883_v58, %v1882_v53  ;;  %v1877_v15 = vadd.f32 %v1876_v5, %v1875_v57  ;;  %v2216_v57 = vrot.slane %v5080_v16, 6 }
0x155a   :  { %v1885_v21 = vrot.slane %v1884_v9, 1  ;;  %v1878_v24 = vrot.slane %v1877_v15, 1 }
0x155c   :  { %v1886_v27 = vadd.f32 %v1885_v21, %v1884_v9  ;;  %v1879_v56 = vadd.f32 %v1878_v24, %v1877_v15  ;;  %v2220_v15 = vld [vmem:[%s5624_s11] sm:$0xff]  ;;  %v1888_v21 = vpop.permute.xlu0 %1887 }
0x155d   :  { %v5223_v16 = vpack.c.bf16 %v2221_v60, %v2220_v15 }
0x155e   :  { %v2032_v35 = vsel %vm685_vm3, %v1886_v27, %v1879_v56  ;;  %v1893_v59 = vsel %vm1892_vm7, %v1886_v27, %v1879_v56 }
0x155f   :  { %4109 = vmatmul.mubr.msk.f32.vlgmr.msra.gmra.mrb[12].mxu1 %vm160_vm2, %v2032_v35  ;;  %v2223_v35 = vld [vmem:[%s5624_s11 + $0x18] sm:$0xff] }
0x1560   :  { %4370 = vmatpush3.bf16.msra.mxu1 %v5178_v31  ;;  %4119 = vmatprep.mubr.msk.f32.mxu1 %vm4588_vm1, %v4589_v4 }
0x1561   :  { %4371 = vmatprep.subr.bf16.mxu1 %v4587_v0 }
0x1564   :  { %4373 = vmatpush3.bf16.msra.mxu1 %v5190_v37 }
0x1565   :  { %4380 = vmatprep.subr.bf16.mxu1 %v4587_v0 }
0x1567   :  { %4120 = vmatmul.mubr.msk.f32.vlgmr.msra.gmra.mrb[14].mxu1 %vm160_vm2, %v5092_v25 }
0x1568   :  { %4149 = vmatprep.mubr.msk.f32.mxu1 %vm4588_vm1, %v4589_v4 }
0x1632   :  { %v2101_v39 = vpop.f32.mrb[12].mxu1 }
0x1633   :  { %v4110_v40 = vpop.f32.mrb[13].mxu1  ;;  %v2106_v41 = vrot.slane %v2101_v39, 2 }
0x1635   :  { %v2108_v25 = vadd.f32 %v2106_v41, %v4796_v42 }
0x163a   :  { %v2186_v19 = vpop.f32.mrb[14].mxu1 }
0x163b   :  { %v2187_v23 = vadd.f32 %v5204_v22, %v2186_v19  ;;  %v4121_v52 = vpop.f32.mrb[15].mxu1 }
0x163d   :  { %v2191_v11 = vrot.slane %v2187_v23, 2 }
0x163f   :  { %2200 = vrot.lane.b32.xlu1 %v2191_v11, %s4590_s5  ;;  %v2193_v43 = vadd.f32 %v2191_v11, %v2108_v25 }
0x1641   :  { %v3733_v14 = vmul.f32 -1.442695, %v2193_v43 }
0x1643   :  { %4512 = vpow2.f32 %v3733_v14 }
0x164d   :  { %v4513_v36 = vpop.eup %4512 }
0x164e   :  { %v2197_v44 = vadd.f32 1.0, %v4513_v36 }
0x1650   :  { %4514 = vrcp.f32 %v2197_v44 }
0x165a   :  { %v4515_v63 = vpop.eup %4514 }
0x165b   :  { %v2210_v53 = vsub.f32 1.0, %v4515_v63  ;;  %v2218_v5 = vmul.f32 %v4515_v63, %v2216_v57 }
0x16b1   :  { %v2201_v1 = vpop.permute.xlu1 %2200 }
0x16b2   :  { %v2203_v45 = vmul.f32 %v4515_v63, %v2201_v1 }
0x16b4   :  { %2205 = vrot.lane.b32.xlu1 %v2203_v45, %s4590_s5  ;;  %v5265_v45 = vld [vmem:[%s5627_s12] ss:$0 sm:$0xff] }
0x1726   :  { %v2206_v34 = vpop.permute.xlu1 %2205 }
0x1727   :  { %v2208_v49 = vadd.f32 %v2206_v34, %v2108_v25 }
0x1729   :  { %4516 = vtanh.f32 %v2208_v49 }
0x1733   :  { %v4517_v38 = vpop.eup %4516 }
0x1734   :  { %2212 = vrot.lane.b32.xlu1 %v4517_v38, %s4591_s30 }
0x1738   :  { %1894 = vrot.lane.b32.xlu1 %v1893_v59, %s4592_s16  ;;  %v5236_v59 = vpack.c.bf16 %v2223_v35, %v2222_v32 }
0x17a6   :  { %v2213_v58 = vpop.permute.xlu1 %2212 }
0x17a7   :  { %v2215_v9 = vmul.f32 %v2213_v58, %v2210_v53 }
0x17a9   :  { %v5219_v17 = vadd.f32 %v2218_v5, %v2215_v9 }
0x17aa   :  { %v1895_v24 = vpop.permute.xlu1 %1894 }
0x17ab   :  { %v1897_v27 = vsel %vm160_vm2, %v1888_v21, %v1895_v24  ;;  %v2225_v56 = vrot.slane %v5219_v17, 6 }
0x17ac   :  { %v1914_v20 = vrot.slane %v1897_v27, 4 }
0x17ad   :  { %2226 = vrot.lane.b32.xlu0 %v2225_v56, %s4591_s30 }
0x17ae   :  { %4098 = vmatmul.mubr.msk.f32.vlgmr.msra.gmra.mrb[16].mxu0 %vm793_vm5, %v1914_v20 }
0x17af   :  { %4376 = vmatpush3.bf16.msra.mxu0 %v5223_v16  ;;  %4130 = vmatprep.mubr.msk.f32.mxu0 %vm4588_vm1, %v4589_v4 }
0x17b0   :  { %4377 = vmatprep.subr.bf16.mxu0 %v4587_v0 }
0x17b3   :  { %4379 = vmatpush3.bf16.msra.mxu0 %v5236_v59 }
0x17b4   :  { %4392 = vmatprep.subr.bf16.mxu0 %v4587_v0 }
0x181f   :  { %v5243_v39 = vpop.permute.xlu0 %2226 }
0x1820   :  { %4131 = vmatmul.mubr.msk.f32.vlgmr.msra.gmra.mrb[18].mxu0 %vm160_vm2, %v5243_v39 }
0x1821   :  { %4394 = vmatpush3.bf16.msra.mxu0 %v5135_v26  ;;  %4160 = vmatprep.mubr.msk.f32.mxu0 %vm4588_vm1, %v4589_v4 }
0x1822   :  { %4395 = vmatprep.subr.bf16.mxu0 %v4587_v0 }
0x1825   :  { %4397 = vmatpush3.bf16.msra.mxu0 %v5145_v8 }
0x1826   :  { %4398 = vmatprep.subr.bf16.mxu0 %v4587_v0 }
0x1881   :  { %v5253_v40 = vpop.f32.mrb[16].mxu0 }
0x1882   :  { %v4099_v19 = vpop.f32.mrb[17].mxu0 }
0x18f3   :  { %v2296_v23 = vpop.f32.mrb[18].mxu0 }
0x18f4   :  { %v2307_v52 = vrot.slane %v2296_v23, %v4851_v18  ;;  %v4132_v11 = vpop.f32.mrb[19].mxu0 }
0x18f6   :  { %v2308_v41 = vcombine.high %v2307_v52, %v2307_v52  ;;  %v2315_v25 = vrot.slane %v2307_v52, %v4851_v18 }
0x18f8   :  { %v2322_v43 = vrot.slane %v2308_v41, %v4851_v18  ;;  %v2326_v14 = vrot.slane %v2315_v25, %v4833_v10 }
0x18fa   :  { %v2330_v36 = vrot.slane %v2322_v43, %v4833_v10  ;;  %v2333_v44 = vadd.f32 %v2326_v14, %v4859_v29 }
0x18fc   :  { %v2334_v63 = vadd.f32 %v2330_v36, %v4864_v33  ;;  %4518 = vtanh.f32 %v2333_v44 }
0x18fe   :  { %4520 = vtanh.f32 %v2334_v63 }
0x1906   :  { %v4519_v1 = vpop.eup %4518 }
0x1907   :  { %v2337_v34 = vmul.f32 %v5265_v45, %v4519_v1 }
0x1908   :  { %v4521_v49 = vpop.eup %4520 }
0x1909   :  { %v2339_v38 = vsel %vm160_vm2, %v2337_v34, 0.0  ;;  %v2338_v53 = vmul.f32 %v5265_v45, %v4521_v49 }
0x190a   :  { %2340 = vadd.xlane.f32.xlu1 %v2339_v38 }
0x190b   :  { %v2342_v57 = vsel %vm160_vm2, %v2338_v53, 0.0 }
0x190c   :  { %2343 = vadd.xlane.f32.xlu0 %v2342_v57 }
0x1997   :  { %v2341_v58 = vpop.xlane.xlu1 %2340 }
0x1998   :  { %v2345_v5 = vmul.f32 %v2341_v58, %v4882_v51 }
0x1999   :  { %v2344_v9 = vpop.xlane.xlu0 %2343 }
0x199a   :  { %v2347_v15 = vadd.f32 %v2345_v5, %v4885_v55  ;;  %v2346_v60 = vmul.f32 %v2344_v9, %v4880_v50 }
0x199c   :  { %v2348_v21 = vadd.f32 %v2346_v60, %v4889_v61  ;;  %2352 = vperm.xlu0 %4463, %v2347_v15  }
0x199e   :  { %2355 = vperm.xlu1 %4462, %v2348_v21  }
0x1a1b   :  { %v2353_v24 = vpop.permute.xlu0 %2352 }
0x1a1c   :  { %v2360_v20 = vrot.slane %v2353_v24, %v4897_v3 }
0x1a1d   :  { %v2356_v27 = vpop.permute.xlu1 %2355 }
0x1a1e   :  { %v2364_v32 = vrot.slane %v2356_v27, %v4897_v3 }
0x1a20   :  { %v2365_v35 = vsel %vm685_vm3, %v2364_v32, %v2360_v20 }
0x1a21   :  { %v2367_v19 = vsel %vm688_vm4, %v2365_v35, -inf }
0x1a22   :  { %2368 = vmax.xlane.f32.xlu1 %v2367_v19 }
0x1aaf   :  { %v2369_v23 = vpop.xlane.xlu1 %2368 }
0x1ab0   :  { %v2374_v52 = vrot.slane %v2369_v23, %v4833_v10  ;;  %v2378_v11 = vrot.slane %v2369_v23, %v4829_v2 }
0x1ab2   :  { %v2381_v41 = vsub.f32 %v2347_v15, %v2374_v52  ;;  %v2382_v25 = vsub.f32 %v2348_v21, %v2378_v11 }
0x1ab4   :  { %v2383_v43 = vmul.f32 1.442695, %v2381_v41  ;;  %v2385_v14 = vmul.f32 1.442695, %v2382_v25 }
0x1ab6   :  { %4522 = vpow2.f32 %v2383_v43 }
0x1ab7   :  { %4524 = vpow2.f32 %v2385_v14 }
0x1ac0   :  { %v4523_v36 = vpop.eup %4522 }
0x1ac1   :  { %2390 = vperm.xlu0 %4463, %v4523_v36   ;;  %v4525_v44 = vpop.eup %4524 }
0x1ac5   :  { %2393 = vperm.xlu0 %4463, %v4525_v44  }
0x1b40   :  { %v2391_v63 = vpop.permute.xlu0 %2390 }
0x1b41   :  { %v2398_v34 = vrot.slane %v2391_v63, %v4897_v3 }
0x1b44   :  { %v2394_v1 = vpop.permute.xlu0 %2393 }
0x1b45   :  { %v2402_v49 = vrot.slane %v2394_v1, %v4897_v3 }
0x1b47   :  { %v2403_v38 = vsel %vm685_vm3, %v2402_v49, %v2398_v34 }
0x1b48   :  { %v2405_v53 = vsel %vm688_vm4, %v2403_v38, 0.0 }
0x1b49   :  { %2406 = vadd.xlane.f32.xlu0 %v2405_v53 }
0x1bd6   :  { %v2407_v57 = vpop.xlane.xlu0 %2406 }
0x1bd7   :  { %4526 = vrcp.f32 %v2407_v57 }
0x1be1   :  { %v4527_v58 = vpop.eup %4526 }
0x1be2   :  { %v2417_v5 = vrot.slane %v4527_v58, %v4829_v2  ;;  %v2413_v9 = vrot.slane %v4527_v58, %v4833_v10 }
0x1be4   :  { %v2421_v15 = vmul.f32 %v4525_v44, %v2417_v5  ;;  %v2420_v60 = vmul.f32 %v4523_v36, %v2413_v9 }
0x1be6   :  { %2429 = vperm.xlu0 %4463, %v2421_v15   ;;  %2424 = vperm.xlu1 %4462, %v2420_v60  }
0x1bea   :  { %2448 = vrot.lane.b32.xlu0 %v5219_v17, %s4591_s30 }
0x1c65   :  { %v2430_v21 = vpop.permute.xlu0 %2429  ;;  %v2425_v24 = vpop.permute.xlu1 %2424 }
0x1c66   :  { %v2433_v27 = vmul.f32 %v5156_v62, %v2430_v21  ;;  %v2576_v20 = vrot.slane %v2430_v21, %v5151_v54  ;;  %v2432_v32 = vmul.f32 %v5163_v12, %v2425_v24  ;;  %v2572_v35 = vrot.slane %v2425_v24, %v5151_v54 }
0x1c68   :  { %v2441_v19 = vsel %vm160_vm2, %v2433_v27, 0.0  ;;  %v2434_v23 = vsel %vm160_vm2, %v2432_v32, 0.0  ;;  %v5296_v52 = vsel %vm2453_vm8, %v2576_v20, %v2572_v35 }
0x1c69   :  { %v2442_v11 = vrot.slane %v2441_v19, 4  ;;  %v2435_v41 = vrot.slane %v2434_v23, 4 }
0x1c6b   :  { %v2443_v25 = vadd.f32 %v2442_v11, %v2441_v19  ;;  %v2436_v43 = vadd.f32 %v2435_v41, %v2434_v23  ;;  %v2459_v23 = vld [vmem:[%s5628_s13] sm:$0xff]  ;;  %v2460_v11 = vld [vmem:[%s5628_s13 + $0x8] sm:$0xff]  ;;  %v2461_v41 = vld [vmem:[%s5628_s13 + $0x10] sm:$0xff] }
0x1c6d   :  { %v2444_v14 = vrot.slane %v2443_v25, 2  ;;  %v2437_v36 = vrot.slane %v2436_v43, 2 }
0x1c6f   :  { %v2445_v44 = vadd.f32 %v2444_v14, %v2443_v25  ;;  %v2438_v63 = vadd.f32 %v2437_v36, %v2436_v43  ;;  %v5324_v25 = vpack.c.bf16 %v2460_v11, %v2459_v23  ;;  %v2462_v43 = vld [vmem:[%s5628_s13 + $0x18] sm:$0xff]  ;;  %v2463_v36 = vld [vmem:[%s5628_s13 + $0x20] sm:$0xff] }
0x1c70   :  { %v5330_v14 = vpack.c.bf16 %v2462_v43, %v2461_v41 }
0x1c71   :  { %v2446_v1 = vrot.slane %v2445_v44, 1  ;;  %v2439_v34 = vrot.slane %v2438_v63, 1  ;;  %4382 = vmatpush3.bf16.msra.mxu1 %v5324_v25 }
0x1c72   :  { %4383 = vmatprep.subr.bf16.mxu1 %v4587_v0 }
0x1c73   :  { %v2447_v49 = vadd.f32 %v2446_v1, %v2445_v44  ;;  %v2440_v38 = vadd.f32 %v2439_v34, %v2438_v63  ;;  %v2464_v44 = vld [vmem:[%s5628_s13 + $0x28] sm:$0xff] }
0x1c74   :  { %v5345_v63 = vpack.c.bf16 %v2464_v44, %v2463_v36 }
0x1c75   :  { %v2593_v53 = vsel %vm685_vm3, %v2447_v49, %v2440_v38  ;;  %v2454_v57 = vsel %vm2453_vm8, %v2447_v49, %v2440_v38  ;;  %4385 = vmatpush3.bf16.msra.mxu1 %v5330_v14  ;;  %v2465_v49 = vld [vmem:[%s5628_s13 + $0x30] sm:$0xff]  ;;  %v2466_v38 = vld [vmem:[%s5628_s13 + $0x38] sm:$0xff] }
0x1c76   :  { %4161 = vmatmul.mubr.msk.f32.vlgmr.msra.gmra.mrb[20].mxu0 %vm160_vm2, %v2593_v53  ;;  %4386 = vmatprep.subr.bf16.mxu1 %v4587_v0  ;;  %v5357_v53 = vpack.c.bf16 %v2466_v38, %v2465_v49 }
0x1c77   :  { %4400 = vmatpush3.bf16.msra.mxu0 %v5178_v31  ;;  %4171 = vmatprep.mubr.msk.f32.mxu0 %vm4588_vm1, %v4589_v4 }
0x1c78   :  { %4401 = vmatprep.subr.bf16.mxu0 %v4587_v0 }
0x1c79   :  { %4388 = vmatpush3.bf16.msra.mxu1 %v5345_v63 }
0x1c7a   :  { %4389 = vmatprep.subr.bf16.mxu1 %v4587_v0 }
0x1c7b   :  { %4403 = vmatpush3.bf16.msra.mxu0 %v5190_v37 }
0x1c7c   :  { %4410 = vmatprep.subr.bf16.mxu0 %v4587_v0 }
0x1c7d   :  { %4391 = vmatpush3.bf16.msra.mxu1 %v5357_v53 }
0x1c7e   :  { %4172 = vmatmul.mubr.msk.f32.vlgmr.msra.gmra.mrb[22].mxu0 %vm160_vm2, %v5243_v39  ;;  %4404 = vmatprep.subr.bf16.mxu1 %v4587_v0 }
0x1c7f   :  { %4201 = vmatprep.mubr.msk.f32.mxu0 %vm4588_vm1, %v4589_v4  ;;  %4412 = vmatpush3.bf16.msra.mxu0 %v5324_v25 }
0x1c80   :  { %4413 = vmatprep.subr.bf16.mxu0 %v4587_v0 }
0x1c83   :  { %4415 = vmatpush3.bf16.msra.mxu0 %v5330_v14 }
0x1c84   :  { %4416 = vmatprep.subr.bf16.mxu0 %v4587_v0 }
0x1c87   :  { %4418 = vmatpush3.bf16.msra.mxu0 %v5345_v63 }
0x1c88   :  { %4419 = vmatprep.subr.bf16.mxu0 %v4587_v0 }
0x1c8b   :  { %4421 = vmatpush3.bf16.msra.mxu0 %v5357_v53 }
0x1c8c   :  { %4434 = vmatprep.subr.bf16.mxu0 %v4587_v0 }
0x1d49   :  { %v2662_v58 = vpop.f32.mrb[20].mxu0 }
0x1d4a   :  { %v4162_v5 = vpop.f32.mrb[21].mxu0  ;;  %v2666_v21 = vadd.f32 %v2662_v58, %v4783_v30 }
0x1d51   :  { %v2744_v9 = vpop.f32.mrb[22].mxu0 }
0x1d52   :  { %v2745_v15 = vadd.f32 %v5204_v22, %v2744_v9  ;;  %v4173_v60 = vpop.f32.mrb[23].mxu0 }
0x1d54   :  { %2756 = vrot.lane.b32.xlu1 %v2745_v15, %s4590_s5  ;;  %v2748_v24 = vadd.f32 %v2745_v15, %v2666_v21 }
0x1d56   :  { %v3742_v27 = vmul.f32 -1.442695, %v2748_v24  ;;  %v2449_v24 = vpop.permute.xlu0 %2448 }
0x1d58   :  { %4528 = vpow2.f32 %v3742_v27 }
0x1d62   :  { %v4529_v20 = vpop.eup %4528 }
0x1d63   :  { %v2752_v32 = vadd.f32 1.0, %v4529_v20 }
0x1d65   :  { %4530 = vrcp.f32 %v2752_v32 }
0x1d6f   :  { %v4531_v39 = vpop.eup %4530 }
0x1d70   :  { %v2766_v5 = vsub.f32 1.0, %v4531_v39  ;;  %v2773_v15 = vmul.f32 %v4531_v39, %v2225_v56 }
0x1dc6   :  { %v2757_v35 = vpop.permute.xlu1 %2756 }
0x1dc7   :  { %v2759_v19 = vmul.f32 %v4531_v39, %v2757_v35 }
0x1dc9   :  { %2761 = vrot.lane.b32.xlu1 %v2759_v19, %s4590_s5 }
0x1e3b   :  { %v2762_v1 = vpop.permute.xlu1 %2761 }
0x1e3c   :  { %v2764_v34 = vadd.f32 %v2762_v1, %v2666_v21 }
0x1e3e   :  { %4532 = vtanh.f32 %v2764_v34 }
0x1e48   :  { %v4533_v58 = vpop.eup %4532 }
0x1e49   :  { %2768 = vrot.lane.b32.xlu1 %v4533_v58, %s4591_s30 }
0x1e4d   :  { %2455 = vrot.lane.b32.xlu1 %v2454_v57, %s4592_s16 }
0x1ebb   :  { %v2769_v9 = vpop.permute.xlu1 %2768 }
0x1ebc   :  { %v2771_v60 = vmul.f32 %v2769_v9, %v2766_v5 }
0x1ebe   :  { %v5367_v21 = vadd.f32 %v2773_v15, %v2771_v60 }
0x1ebf   :  { %v2456_v27 = vpop.permute.xlu1 %2455 }
0x1ec0   :  { %v2458_v20 = vsel %vm160_vm2, %v2449_v24, %v2456_v27  ;;  %2780 = vrot.lane.b32.xlu0 %v5367_v21, %s4591_s30 }
0x1ec1   :  { %v2475_v32 = vrot.slane %v2458_v20, 6 }
0x1ec3   :  { %4150 = vmatmul.mubr.msk.f32.vlgmr.msra.gmra.mrb[16].mxu1 %vm793_vm5, %v2475_v32 }
0x1ec4   :  { %4406 = vmatpush3.bf16.msra.mxu1 %v5223_v16  ;;  %4182 = vmatprep.mubr.msk.f32.mxu1 %vm4588_vm1, %v4589_v4 }
0x1ec5   :  { %4407 = vmatprep.subr.bf16.mxu1 %v4587_v0 }
0x1ec8   :  { %4409 = vmatpush3.bf16.msra.mxu1 %v5236_v59 }
0x1ec9   :  { %4422 = vmatprep.subr.bf16.mxu1 %v4587_v0 }
0x1f32   :  { %v5379_v17 = vpop.permute.xlu0 %2780 }
0x1f33   :  { %4183 = vmatmul.mubr.msk.f32.vlgmr.msra.gmra.mrb[18].mxu1 %vm160_vm2, %v5379_v17 }
0x1f34   :  { %4424 = vmatpush3.bf16.msra.mxu1 %v5135_v26  ;;  %4212 = vmatprep.mubr.msk.f32.mxu1 %vm4588_vm1, %v4589_v4 }
0x1f35   :  { %4425 = vmatprep.subr.bf16.mxu1 %v4587_v0 }
0x1f38   :  { %4427 = vmatpush3.bf16.msra.mxu1 %v5145_v8 }
0x1f39   :  { %4428 = vmatprep.subr.bf16.mxu1 %v4587_v0 }
0x1f96   :  { %v5389_v56 = vpop.f32.mrb[16].mxu1 }
0x1f97   :  { %v4151_v57 = vpop.f32.mrb[17].mxu1 }
0x2006   :  { %v2850_v39 = vpop.f32.mrb[18].mxu1 }
0x2007   :  { %v2861_v35 = vrot.slane %v2850_v39, %v4851_v18  ;;  %v4184_v19 = vpop.f32.mrb[19].mxu1 }
0x2009   :  { %v2862_v23 = vcombine.high %v2861_v35, %v2861_v35  ;;  %v2869_v11 = vrot.slane %v2861_v35, %v4851_v18 }
0x200b   :  { %v2876_v26 = vrot.slane %v2862_v23, %v4851_v18  ;;  %v2880_v41 = vrot.slane %v2869_v11, %v4833_v10 }
0x200d   :  { %v2884_v43 = vrot.slane %v2876_v26, %v4833_v10  ;;  %v2887_v8 = vadd.f32 %v2880_v41, %v4859_v29 }
0x200f   :  { %v2888_v36 = vadd.f32 %v2884_v43, %v4864_v33  ;;  %4534 = vtanh.f32 %v2887_v8 }
0x2011   :  { %4536 = vtanh.f32 %v2888_v36 }
0x2019   :  { %v4535_v44 = vpop.eup %4534 }
0x201a   :  { %v2891_v1 = vmul.f32 %v5265_v45, %v4535_v44 }
0x201b   :  { %v4537_v34 = vpop.eup %4536 }
0x201c   :  { %v2893_v49 = vsel %vm160_vm2, %v2891_v1, 0.0  ;;  %v2892_v38 = vmul.f32 %v5265_v45, %v4537_v34 }
0x201d   :  { %2894 = vadd.xlane.f32.xlu1 %v2893_v49 }
0x201e   :  { %v2896_v58 = vsel %vm160_vm2, %v2892_v38, 0.0 }
0x201f   :  { %2897 = vadd.xlane.f32.xlu0 %v2896_v58 }
0x20aa   :  { %v2895_v5 = vpop.xlane.xlu1 %2894 }
0x20ab   :  { %v2899_v9 = vmul.f32 %v2895_v5, %v4882_v51 }
0x20ac   :  { %v2898_v15 = vpop.xlane.xlu0 %2897 }
0x20ad   :  { %v2901_v60 = vadd.f32 %v2899_v9, %v4885_v55  ;;  %v2900_v24 = vmul.f32 %v2898_v15, %v4880_v50 }
0x20af   :  { %v2902_v27 = vadd.f32 %v2900_v24, %v4889_v61  ;;  %2906 = vperm.xlu0 %4463, %v2901_v60  }
0x20b1   :  { %2909 = vperm.xlu1 %4462, %v2902_v27  }
0x212e   :  { %v2907_v20 = vpop.permute.xlu0 %2906 }
0x212f   :  { %v2914_v57 = vrot.slane %v2907_v20, %v4897_v3 }
0x2130   :  { %v2910_v32 = vpop.permute.xlu1 %2909 }
0x2131   :  { %v2918_v39 = vrot.slane %v2910_v32, %v4897_v3 }
0x2133   :  { %v2919_v35 = vsel %vm685_vm3, %v2918_v39, %v2914_v57 }
0x2134   :  { %v2921_v19 = vsel %vm688_vm4, %v2919_v35, -inf }
0x2135   :  { %2922 = vmax.xlane.f32.xlu1 %v2921_v19 }
0x21c2   :  { %v2923_v23 = vpop.xlane.xlu1 %2922 }
0x21c3   :  { %v2928_v11 = vrot.slane %v2923_v23, %v4833_v10  ;;  %v2932_v26 = vrot.slane %v2923_v23, %v4829_v2 }
0x21c5   :  { %v2935_v41 = vsub.f32 %v2901_v60, %v2928_v11  ;;  %v2936_v43 = vsub.f32 %v2902_v27, %v2932_v26 }
0x21c7   :  { %v2937_v8 = vmul.f32 1.442695, %v2935_v41  ;;  %v2939_v36 = vmul.f32 1.442695, %v2936_v43 }
0x21c9   :  { %4538 = vpow2.f32 %v2937_v8 }
0x21ca   :  { %4540 = vpow2.f32 %v2939_v36 }
0x21d3   :  { %v4539_v44 = vpop.eup %4538 }
0x21d4   :  { %2944 = vperm.xlu0 %4463, %v4539_v44   ;;  %v4541_v1 = vpop.eup %4540 }
0x21d8   :  { %2947 = vperm.xlu0 %4463, %v4541_v1  }
0x2253   :  { %v2945_v34 = vpop.permute.xlu0 %2944 }
0x2254   :  { %v2952_v38 = vrot.slane %v2945_v34, %v4897_v3 }
0x2257   :  { %v2948_v49 = vpop.permute.xlu0 %2947 }
0x2258   :  { %v2956_v58 = vrot.slane %v2948_v49, %v4897_v3 }
0x225a   :  { %v2957_v5 = vsel %vm685_vm3, %v2956_v58, %v2952_v38 }
0x225b   :  { %v2959_v9 = vsel %vm688_vm4, %v2957_v5, 0.0 }
0x225c   :  { %2960 = vadd.xlane.f32.xlu0 %v2959_v9 }
0x22e9   :  { %v2961_v15 = vpop.xlane.xlu0 %2960 }
0x22ea   :  { %4542 = vrcp.f32 %v2961_v15 }
0x22f4   :  { %v4543_v60 = vpop.eup %4542 }
0x22f5   :  { %v2971_v24 = vrot.slane %v4543_v60, %v4829_v2  ;;  %v2967_v27 = vrot.slane %v4543_v60, %v4833_v10 }
0x22f7   :  { %v2975_v20 = vmul.f32 %v4541_v1, %v2971_v24  ;;  %v2974_v32 = vmul.f32 %v4539_v44, %v2967_v27 }
0x22f9   :  { %2983 = vperm.xlu0 %4463, %v2975_v20   ;;  %2978 = vperm.xlu1 %4462, %v2974_v32  }
0x2378   :  { %v5418_v57 = vpop.permute.xlu0 %2983  ;;  %v5420_v39 = vpop.permute.xlu1 %2978 }
0x2379   :  { %v2987_v35 = vmul.f32 %v5156_v62, %v5418_v57  ;;  %v2986_v19 = vmul.f32 %v5163_v12, %v5420_v39 }
0x237b   :  { %v2995_v23 = vsel %vm160_vm2, %v2987_v35, 0.0  ;;  %v2988_v11 = vsel %vm160_vm2, %v2986_v19, 0.0 }
0x237c   :  { %v2996_v26 = vrot.slane %v2995_v23, 4  ;;  %v2989_v41 = vrot.slane %v2988_v11, 4 }
0x237e   :  { %v2997_v43 = vadd.f32 %v2996_v26, %v2995_v23  ;;  %v2990_v8 = vadd.f32 %v2989_v41, %v2988_v11  ;;  %v3323_v26 = vrot.slane %v5367_v21, 6 }
0x2380   :  { %v2998_v36 = vrot.slane %v2997_v43, 2  ;;  %v2991_v44 = vrot.slane %v2990_v8, 2 }
0x2382   :  { %v2999_v1 = vadd.f32 %v2998_v36, %v2997_v43  ;;  %v2992_v34 = vadd.f32 %v2991_v44, %v2990_v8 }
0x2384   :  { %v2993_v49 = vrot.slane %v2992_v34, 1  ;;  %v3000_v38 = vrot.slane %v2999_v1, 1 }
0x2386   :  { %v2994_v58 = vadd.f32 %v2993_v49, %v2992_v34  ;;  %v3001_v5 = vadd.f32 %v3000_v38, %v2999_v1 }
0x2388   :  { %v3005_v9 = vsel %vm685_vm3, %v3001_v5, %v2994_v58 }
0x2389   :  { %3006 = vrot.lane.b32.xlu0 %v3005_v9, %s4592_s16  ;;  %4213 = vmatmul.mubr.msk.f32.vlgmr.msra.gmra.mrb[20].mxu1 %vm160_vm2, %v3005_v9 }
0x238a   :  { %4430 = vmatpush3.bf16.msra.mxu1 %v5178_v31  ;;  %4223 = vmatprep.mubr.msk.f32.mxu1 %vm4588_vm1, %v4589_v4 }
0x238b   :  { %4431 = vmatprep.subr.bf16.mxu1 %v4587_v0 }
0x238e   :  { %4433 = vmatpush3.bf16.msra.mxu1 %v5190_v37 }
0x238f   :  { %4440 = vmatprep.subr.bf16.mxu1 %v4587_v0 }
0x2391   :  { %4224 = vmatmul.mubr.msk.f32.vlgmr.msra.gmra.mrb[22].mxu1 %vm160_vm2, %v5379_v17 }
0x2392   :  { %4442 = vmatpush3.bf16.msra.mxu1 %v5324_v25  ;;  %4253 = vmatprep.mubr.msk.f32.mxu1 %vm4588_vm1, %v4589_v4 }
0x2393   :  { %4443 = vmatprep.subr.bf16.mxu1 %v4587_v0 }
0x2396   :  { %4445 = vmatpush3.bf16.msra.mxu1 %v5330_v14 }
0x2397   :  { %4446 = vmatprep.subr.bf16.mxu1 %v4587_v0 }
0x239a   :  { %4448 = vmatpush3.bf16.msra.mxu1 %v5345_v63 }
0x239b   :  { %4449 = vmatprep.subr.bf16.mxu1 %v4587_v0 }
0x239e   :  { %4451 = vmatpush3.bf16.msra.mxu1 %v5357_v53 }
0x23fb   :  { %v3007_v31 = vpop.permute.xlu0 %3006 }
0x23fc   :  { %v3009_v37 = vsel %vm160_vm2, %v5379_v17, %v3007_v31 }
0x23fd   :  { %4202 = vmatmul.mubr.msk.f32.vlgmr.msra.gmra.mrb[24].mxu0 %vm793_vm5, %v3009_v37 }
0x23fe   :  { %4436 = vmatpush3.bf16.msra.mxu0 %v5223_v16  ;;  %4234 = vmatprep.mubr.msk.f32.mxu0 %vm4588_vm1, %v4589_v4 }
0x23ff   :  { %4437 = vmatprep.subr.bf16.mxu0 %v4587_v0 }
0x2402   :  { %4439 = vmatpush3.bf16.msra.mxu0 %v5236_v59 }
0x245c   :  { %v3208_v25 = vpop.f32.mrb[20].mxu1 }
0x245d   :  { %v4214_v14 = vpop.f32.mrb[21].mxu1  ;;  %v3213_v17 = vrot.slane %v3208_v25, 6 }
0x245f   :  { %v3215_v24 = vadd.f32 %v3213_v17, %v4783_v30 }
0x2464   :  { %v3293_v63 = vpop.f32.mrb[22].mxu1 }
0x2465   :  { %v3294_v53 = vadd.f32 %v5204_v22, %v3293_v63  ;;  %v4225_v15 = vpop.f32.mrb[23].mxu1 }
0x2467   :  { %v3298_v60 = vrot.slane %v3294_v53, 6 }
0x2469   :  { %3307 = vrot.lane.b32.xlu1 %v3298_v60, %s4590_s5  ;;  %v3300_v16 = vadd.f32 %v3298_v60, %v3215_v24 }
0x246b   :  { %v3751_v27 = vmul.f32 -1.442695, %v3300_v16 }
0x246d   :  { %4544 = vpow2.f32 %v3751_v27 }
0x2477   :  { %v4545_v4 = vpop.eup %4544 }
0x2478   :  { %v3304_v20 = vadd.f32 1.0, %v4545_v4 }
0x247a   :  { %4546 = vrcp.f32 %v3304_v20 }
0x2484   :  { %v4547_v32 = vpop.eup %4546 }
0x2485   :  { %v3317_v41 = vsub.f32 1.0, %v4547_v32  ;;  %v3325_v8 = vmul.f32 %v4547_v32, %v3323_v26 }
0x24d0   :  { %v5459_v0 = vpop.f32.mrb[24].mxu0 }
0x24d1   :  { %v4203_v59 = vpop.f32.mrb[25].mxu0 }
0x24db   :  { %v3308_v35 = vpop.permute.xlu1 %3307 }
0x24dc   :  { %v3310_v19 = vmul.f32 %v4547_v32, %v3308_v35 }
0x24de   :  { %3312 = vrot.lane.b32.xlu1 %v3310_v19, %s4590_s5 }
0x2550   :  { %v3313_v22 = vpop.permute.xlu1 %3312 }
0x2551   :  { %v3315_v23 = vadd.f32 %v3313_v22, %v3215_v24 }
0x2553   :  { %4548 = vtanh.f32 %v3315_v23 }
0x255d   :  { %v4549_v11 = vpop.eup %4548 }
0x255e   :  { %3319 = vrot.lane.b32.xlu1 %v4549_v11, %s4591_s30 }
0x25d0   :  { %v3320_v43 = vpop.permute.xlu1 %3319 }
0x25d1   :  { %v3322_v36 = vmul.f32 %v3320_v43, %v3317_v41 }
0x25d3   :  { %v5464_v44 = vadd.f32 %v3325_v8, %v3322_v36 }
0x25d5   :  { %v3332_v1 = vrot.slane %v5464_v44, 2 }
0x25d7   :  { %3333 = vrot.lane.b32.xlu1 %v3332_v1, %s4591_s30 }
0x2649   :  { %v3334_v34 = vpop.permute.xlu1 %3333 }
0x264a   :  { %4235 = vmatmul.mubr.msk.f32.vlgmr.msra.gmra.mrb[26].mxu0 %vm160_vm2, %v3334_v34 }
0x271d   :  { %v3403_v49 = vpop.f32.mrb[26].mxu0 }
0x271e   :  { %v3414_v38 = vrot.slane %v3403_v49, %v4851_v18  ;;  %v4236_v58 = vpop.f32.mrb[27].mxu0 }
0x2720   :  { %v3415_v5 = vcombine.high %v3414_v38, %v3414_v38  ;;  %v3422_v21 = vrot.slane %v3414_v38, %v4851_v18 }
0x2722   :  { %v3429_v9 = vrot.slane %v3415_v5, %v4851_v18  ;;  %v3433_v31 = vrot.slane %v3422_v21, %v4833_v10 }
0x2724   :  { %v3437_v37 = vrot.slane %v3429_v9, %v4833_v10  ;;  %v3440_v25 = vadd.f32 %v3433_v31, %v4859_v29  ;;  %v3709_v9 = vld [vmem:[%s5629_s14] ss:$0 sm:$0xff] }
0x2725   :  { %v5500_v31 = vadd.f32 %v3709_v9, %v5098_v28 }
0x2726   :  { %v3441_v14 = vadd.f32 %v3437_v37, %v4864_v33  ;;  %4550 = vtanh.f32 %v3440_v25  ;;  %v5505_v25 = vld [vmem:[%s5629_s14] ss:$0 sm:$0xff]  ;;  %s4595_s14 = smov 112  }
0x2728   :  { %4552 = vtanh.f32 %v3441_v14 }
0x2730   :  { %v4551_v63 = vpop.eup %4550 }
0x2731   :  { %v3444_v53 = vmul.f32 %v5265_v45, %v4551_v63 }
0x2732   :  { %v4553_v15 = vpop.eup %4552 }
0x2733   :  { %v3446_v60 = vsel %vm160_vm2, %v3444_v53, 0.0  ;;  %v3445_v17 = vmul.f32 %v5265_v45, %v4553_v15 }
0x2734   :  { %3447 = vadd.xlane.f32.xlu0 %v3446_v60 }
0x2735   :  { %v3449_v18 = vsel %vm160_vm2, %v3445_v17, 0.0 }
0x2736   :  { %3450 = vadd.xlane.f32.xlu1 %v3449_v18 }
0x27c1   :  { %v3448_v24 = vpop.xlane.xlu0 %3447 }
0x27c2   :  { %v3452_v16 = vmul.f32 %v3448_v24, %v4882_v51 }
0x27c3   :  { %v3451_v29 = vpop.xlane.xlu1 %3450 }
0x27c4   :  { %v3454_v33 = vadd.f32 %v3452_v16, %v4885_v55  ;;  %v3453_v27 = vmul.f32 %v3451_v29, %v4880_v50 }
0x27c6   :  { %v3455_v4 = vadd.f32 %v3453_v27, %v4889_v61  ;;  %3459 = vperm.xlu0 %4463, %v3454_v33  }
0x27c8   :  { %3462 = vperm.xlu1 %4462, %v3455_v4  }
0x2845   :  { %v3460_v20 = vpop.permute.xlu0 %3459 }
0x2846   :  { %v3467_v45 = vrot.slane %v3460_v20, %v4897_v3 }
0x2847   :  { %v3463_v59 = vpop.permute.xlu1 %3462 }
0x2848   :  { %v3471_v32 = vrot.slane %v3463_v59, %v4897_v3 }
0x284a   :  { %v3472_v35 = vsel %vm685_vm3, %v3471_v32, %v3467_v45 }
0x284b   :  { %v3474_v19 = vsel %vm688_vm4, %v3472_v35, -inf }
0x284c   :  { %3475 = vmax.xlane.f32.xlu0 %v3474_v19  ;;  %v864_v19 = vadd.f32 %v3709_v9, %v5011_v13 }
0x28d9   :  { %v3476_v51 = vpop.xlane.xlu0 %3475 }
0x28da   :  { %v3481_v55 = vrot.slane %v3476_v51, %v4833_v10  ;;  %v3485_v50 = vrot.slane %v3476_v51, %v4829_v2  ;;  %v1984_v51 = vadd.f32 %v3709_v9, %v5253_v40 }
0x28dc   :  { %v3488_v22 = vsub.f32 %v3454_v33, %v3481_v55  ;;  %v3489_v61 = vsub.f32 %v3455_v4, %v3485_v50  ;;  %v1988_v55 = vrot.slane %v1984_v51, 4  ;;  %v3095_v50 = vadd.f32 %v5505_v25, %v5459_v0 }
0x28de   :  { %v3490_v23 = vmul.f32 1.442695, %v3488_v22  ;;  %v3492_v11 = vmul.f32 1.442695, %v3489_v61 }
0x28e0   :  { %4554 = vpow2.f32 %v3490_v23 }
0x28e1   :  { %4556 = vpow2.f32 %v3492_v11 }
0x28ea   :  { %v4555_v26 = vpop.eup %4554 }
0x28eb   :  { %3497 = vperm.xlu1 %4462, %v4555_v26   ;;  %v4557_v41 = vpop.eup %4556 }
0x28ef   :  { %3500 = vperm.xlu1 %4462, %v4557_v41  }
0x296a   :  { %v3498_v43 = vpop.permute.xlu1 %3497 }
0x296b   :  { %v3505_v36 = vrot.slane %v3498_v43, %v4897_v3 }
0x296e   :  { %v3501_v8 = vpop.permute.xlu1 %3500 }
0x296f   :  { %v3509_v1 = vrot.slane %v3501_v8, %v4897_v3  ;;  %v3711_v8 = vmul.f32 -1.442695, %v864_v19 }
0x2971   :  { %v3510_v34 = vsel %vm685_vm3, %v3509_v1, %v3505_v36  ;;  %v3728_v36 = vmul.f32 -1.442695, %v1984_v51  ;;  %v3746_v1 = vmul.f32 -1.442695, %v3095_v50 }
0x2972   :  { %v3512_v49 = vsel %vm688_vm4, %v3510_v34, 0.0 }
0x2973   :  { %3513 = vadd.xlane.f32.xlu1 %v3512_v49 }
0x2a00   :  { %v3514_v38 = vpop.xlane.xlu1 %3513 }
0x2a01   :  { %4558 = vrcp.f32 %v3514_v38 }
0x2a02   :  { %4560 = vpow2.f32 %v3711_v8 }
0x2a03   :  { %4562 = vpow2.f32 %v3728_v36 }
0x2a04   :  { %4564 = vpow2.f32 %v3746_v1 }
0x2a0b   :  { %v4559_v58 = vpop.eup %4558 }
0x2a0c   :  { %v3524_v5 = vrot.slane %v4559_v58, %v4829_v2  ;;  %v3520_v21 = vrot.slane %v4559_v58, %v4833_v10  ;;  %v1427_v2 = vrot.slane %v5500_v31, 6  ;;  %v5510_v10 = vadd.f32 %v5505_v25, %v5389_v56  ;;  %v4561_v34 = vpop.eup %4560 }
0x2a0d   :  { %v4563_v49 = vpop.eup %4562  ;;  %v875_v38 = vadd.f32 1.0, %v4561_v34 }
0x2a0e   :  { %v3528_v3 = vmul.f32 %v4557_v41, %v3524_v5  ;;  %v3527_v37 = vmul.f32 %v4555_v26, %v3520_v21  ;;  %v2549_v28 = vrot.slane %v5510_v10, 2  ;;  %v1996_v58 = vadd.f32 1.0, %v4563_v49 }
0x2a0f   :  { %4566 = vrcp.f32 %v875_v38 }
0x2a10   :  { %3536 = vperm.xlu1 %4462, %v3528_v3   ;;  %3531 = vperm.xlu0 %4463, %v3527_v37   ;;  %4568 = vrcp.f32 %v1996_v58  ;;  %v4565_v3 = vpop.eup %4564 }
0x2a14   :  { %1428 = vrot.lane.b32.xlu1 %v1427_v2, %s4591_s30  ;;  %3555 = vrot.lane.b32.xlu0 %v5464_v44, %s4591_s30  ;;  %v3106_v2 = vadd.f32 1.0, %v4565_v3  ;;  %v1454_v3 = vrot.slane %v5042_v6, %v5151_v54 }
0x2a16   :  { %4570 = vrcp.f32 %v3106_v2 }
0x2a18   :  { %2550 = vrot.lane.b32.xlu1 %v2549_v28, %s4591_s30 }
0x2a8f   :  { %v3537_v14 = vpop.permute.xlu1 %3536  ;;  %v3532_v63 = vpop.permute.xlu0 %3531 }
0x2a90   :  { %v3540_v53 = vmul.f32 %v5156_v62, %v3537_v14  ;;  %v3682_v15 = vrot.slane %v3537_v14, %v5151_v54  ;;  %v3539_v60 = vmul.f32 %v5163_v12, %v3532_v63  ;;  %v3678_v56 = vrot.slane %v3532_v63, %v5151_v54  ;;  %v4567_v63 = vpop.eup %4566 }
0x2a92   :  { %v3548_v17 = vsel %vm160_vm2, %v3540_v53, 0.0  ;;  %v3541_v18 = vsel %vm160_vm2, %v3539_v60, 0.0  ;;  %v5524_v44 = vsel %vm1331_vm6, %v3682_v15, %v3678_v56  ;;  %v4569_v53 = vpop.eup %4568 }
0x2a93   :  { %v3549_v24 = vrot.slane %v3548_v17, 4  ;;  %v3542_v16 = vrot.slane %v3541_v18, 4  ;;  %v3556_v22 = vpop.permute.xlu0 %3555  ;;  %v2019_v15 = vrot.slane %v4569_v53, 4  ;;  %v4571_v60 = vpop.eup %4570 }
0x2a95   :  { %v3550_v29 = vadd.f32 %v3549_v24, %v3548_v17  ;;  %v3543_v33 = vadd.f32 %v3542_v16, %v3541_v18  ;;  %v1429_v24 = vpop.permute.xlu1 %1428 }
0x2a97   :  { %v3551_v27 = vrot.slane %v3550_v29, 2  ;;  %v3544_v4 = vrot.slane %v3543_v33, 2 }
0x2a99   :  { %v3552_v62 = vadd.f32 %v3551_v27, %v3550_v29  ;;  %v3545_v20 = vadd.f32 %v3544_v4, %v3543_v33  ;;  %v1431_v29 = vadd.f32 %v1429_v24, %v4796_v42  ;;  %v2551_v33 = vpop.permute.xlu1 %2550 }
0x2a9a   :  { %v2553_v27 = vadd.f32 %v2551_v33, %v4796_v42 }
0x2a9b   :  { %v3546_v59 = vrot.slane %v3545_v20, 1  ;;  %v3553_v45 = vrot.slane %v3552_v62, 1 }
0x2a9d   :  { %v3547_v12 = vadd.f32 %v3546_v59, %v3545_v20  ;;  %v3554_v32 = vadd.f32 %v3553_v45, %v3552_v62  ;;  %v895_v20 = vrot.slane %v4911_v47, %v5151_v54  ;;  %v3125_v47 = vrot.slane %v5418_v57, %v5151_v54 }
0x2a9f   :  { %v3560_v35 = vsel %vm1331_vm6, %v3554_v32, %v3547_v12 }
0x2aa0   :  { %3561 = vrot.lane.b32.xlu0 %v3560_v35, %s4592_s16 }
0x2aa4   :  { %868 = vrot.lane.b32.xlu0 %v864_v19, %s4591_s30 }
0x2aa8   :  { %1989 = vrot.lane.b32.xlu0 %v1988_v55, %s4591_s30 }
0x2aac   :  { %3099 = vrot.lane.b32.xlu0 %v3095_v50, %s4591_s30 }
0x2b12   :  { %v3562_v61 = vpop.permute.xlu0 %3561 }
0x2b13   :  { %v3564_v23 = vsel %vm160_vm2, %v3556_v22, %v3562_v61 }
0x2b14   :  { %v3581_v11 = vrot.slane %v3564_v23, 2 }
0x2b16   :  { %4254 = vmatmul.mubr.msk.f32.vlgmr.msra.gmra.mrb[24].mxu1 %vm793_vm5, %v3581_v11  ;;  %v869_v13 = vpop.permute.xlu0 %868 }
0x2b17   :  { %v871_v40 = vadd.f32 %v869_v13, %v4796_v42 }
0x2b19   :  { %879 = vrot.lane.b32.xlu0 %v871_v40, %s4595_s14 }
0x2b1a   :  { %v1990_v26 = vpop.permute.xlu0 %1989 }
0x2b1b   :  { %v1992_v41 = vadd.f32 %v1990_v26, %v4796_v42 }
0x2b1d   :  { %2000 = vrot.lane.b32.xlu0 %v1992_v41, %s4595_s14 }
0x2b1e   :  { %v3100_v0 = vpop.permute.xlu0 %3099 }
0x2b1f   :  { %v3102_v43 = vadd.f32 %v3100_v0, %v4783_v30 }
0x2b21   :  { %3110 = vrot.lane.b32.xlu0 %v3102_v43, %s4595_s14 }
0x2b8b   :  { %v880_v5 = vpop.permute.xlu0 %879 }
0x2b8c   :  { %v882_v21 = vmax.f32 %v871_v40, %v880_v5 }
0x2b8e   :  { %884 = vrot.lane.b32.xlu0 %v882_v21, %s4592_s16 }
0x2b8f   :  { %v2001_v9 = vpop.permute.xlu0 %2000 }
0x2b90   :  { %v2003_v37 = vmax.f32 %v1992_v41, %v2001_v9 }
0x2b92   :  { %2005 = vrot.lane.b32.xlu0 %v2003_v37, %s4592_s16  ;;  %v1450_v37 = vrot.slane %v5044_v7, %v5151_v54 }
0x2b93   :  { %v3111_v28 = vpop.permute.xlu0 %3110 }
0x2b94   :  { %v3113_v14 = vmax.f32 %v3102_v43, %v3111_v28  ;;  %v1455_v28 = vsel %vm1331_vm6, %v1454_v3, %v1450_v37 }
0x2b96   :  { %3115 = vrot.lane.b32.xlu0 %v3113_v14, %s4592_s16 }
0x2b9a   :  { %899 = vrot.lane.b32.xlu0 %v4567_v63, %s4596_s20 }
0x2b9e   :  { %2020 = vrot.lane.b32.xlu0 %v2019_v15, %s4596_s20 }
0x2ba2   :  { %3129 = vrot.lane.b32.xlu0 %v4571_v60, %s4596_s20 }
0x2be9   :  { %v3650_v56 = vpop.f32.mrb[24].mxu1 }
0x2bea   :  { %v3651_v17 = vadd.f32 %v5505_v25, %v3650_v56  ;;  %v4255_v18 = vpop.f32.mrb[25].mxu1  ;;  %v891_v25 = vrot.slane %v4913_v48, %v5151_v54  ;;  %v3121_v48 = vrot.slane %v5420_v39, %v5151_v54  ;;  %v3737_v39 = vmul.f32 -1.442695, %v5510_v10 }
0x2bec   :  { %v3655_v16 = vrot.slane %v3651_v17, 6  ;;  %v896_v45 = vsel %vm685_vm3, %v895_v20, %v891_v25  ;;  %v3126_v55 = vsel %vm685_vm3, %v3125_v47, %v3121_v48 }
0x2bee   :  { %3656 = vrot.lane.b32.xlu1 %v3655_v16, %s4591_s30 }
0x2bf2   :  { %1439 = vrot.lane.b32.xlu1 %v1431_v29, %s4595_s14 }
0x2bf6   :  { %2561 = vrot.lane.b32.xlu1 %v2553_v27, %s4595_s14 }
0x2c00   :  { %v885_v4 = vpop.permute.xlu0 %884 }
0x2c01   :  { %v902_v12 = vsel %vm67_vm0, %v885_v4, %v896_v45 }
0x2c04   :  { %v2006_v62 = vpop.permute.xlu0 %2005 }
0x2c05   :  { %v2023_v35 = vsel %vm67_vm0, %v2006_v62, %v5170_v46  ;;  %v3719_v46 = vmul.f32 -1.442695, %v5500_v31 }
0x2c07   :  { %4572 = vpow2.f32 %v3719_v46 }
0x2c08   :  { %v3116_v59 = vpop.permute.xlu0 %3115  ;;  %4574 = vpow2.f32 %v3737_v39 }
0x2c09   :  { %v3132_v50 = vsel %vm67_vm0, %v3116_v59, %v3126_v55 }
0x2c0c   :  { %v900_v32 = vpop.permute.xlu0 %899 }
0x2c0d   :  { %v904_v42 = vsel %vm903_vm9, %v902_v12, %v900_v32 }
0x2c0e   :  { %906 = vst.msk [vmem:[%s5630_s15] sm:$0x3] %vm905_vm10, %v904_v42 }
0x2c10   :  { %v2021_v19 = vpop.permute.xlu0 %2020 }
0x2c11   :  { %v2024_v51 = vsel %vm903_vm9, %v2023_v35, %v2021_v19  ;;  %v4573_v61 = vpop.eup %4572 }
0x2c12   :  { %3729 = vst.msk [vmem:[%s5630_s15] sm:$0x30] %vm2026_vm11, %v2024_v51  ;;  %v1435_v23 = vadd.f32 1.0, %v4573_v61  ;;  %v4575_v11 = vpop.eup %4574 }
0x2c13   :  { %v2557_v13 = vadd.f32 1.0, %v4575_v11 }
0x2c14   :  { %v3130_v22 = vpop.permute.xlu0 %3129  ;;  %4576 = vrcp.f32 %v1435_v23 }
0x2c15   :  { %v3133_v57 = vsel %vm903_vm9, %v3132_v50, %v3130_v22  ;;  %4578 = vrcp.f32 %v2557_v13 }
0x2c16   :  { %3747 = vst.msk [vmem:[%s5630_s15 + $0x8] sm:$0x3] %vm905_vm10, %v3133_v57 }
0x2c1e   :  { %v4577_v8 = vpop.eup %4576 }
0x2c1f   :  { %v1458_v10 = vrot.slane %v4577_v8, 6  ;;  %v4579_v36 = vpop.eup %4578 }
0x2c20   :  { %v2580_v1 = vrot.slane %v4579_v36, 2 }
0x2c60   :  { %v3657_v40 = vpop.permute.xlu1 %3656 }
0x2c61   :  { %v3659_v26 = vadd.f32 %v3657_v40, %v4783_v30  ;;  %v3755_v30 = vmul.f32 -1.442695, %v3651_v17 }
0x2c63   :  { %3667 = vrot.lane.b32.xlu1 %v3659_v26, %s4595_s14  ;;  %4580 = vpow2.f32 %v3755_v30 }
0x2c64   :  { %v1440_v41 = vpop.permute.xlu1 %1439 }
0x2c65   :  { %v1442_v0 = vmax.f32 %v1431_v29, %v1440_v41 }
0x2c67   :  { %1444 = vrot.lane.b32.xlu1 %v1442_v0, %s4592_s16 }
0x2c68   :  { %v2562_v31 = vpop.permute.xlu1 %2561 }
0x2c69   :  { %v2564_v43 = vmax.f32 %v2553_v27, %v2562_v31 }
0x2c6b   :  { %2566 = vrot.lane.b32.xlu1 %v2564_v43, %s4592_s16 }
0x2c6d   :  { %v4581_v34 = vpop.eup %4580 }
0x2c6e   :  { %v3663_v49 = vadd.f32 1.0, %v4581_v34 }
0x2c6f   :  { %1459 = vrot.lane.b32.xlu1 %v1458_v10, %s4596_s20 }
0x2c70   :  { %4582 = vrcp.f32 %v3663_v49 }
0x2c73   :  { %2581 = vrot.lane.b32.xlu1 %v2580_v1, %s4596_s20 }
0x2c7a   :  { %v4583_v5 = vpop.eup %4582 }
0x2c7b   :  { %v3686_v9 = vrot.slane %v4583_v5, 6 }
0x2cd5   :  { %v3668_v38 = vpop.permute.xlu1 %3667 }
0x2cd6   :  { %v3670_v58 = vmax.f32 %v3659_v26, %v3668_v38 }
0x2cd8   :  { %3672 = vrot.lane.b32.xlu1 %v3670_v58, %s4592_s16 }
0x2cd9   :  { %v1445_v21 = vpop.permute.xlu1 %1444 }
0x2cda   :  { %v1462_v14 = vsel %vm67_vm0, %v1445_v21, %v1455_v28 }
0x2cdc   :  { %3687 = vrot.lane.b32.xlu1 %v3686_v9, %s4596_s20 }
0x2cdd   :  { %v2567_v2 = vpop.permute.xlu1 %2566 }
0x2cde   :  { %v2584_v6 = vsel %vm67_vm0, %v2567_v2, %v5296_v52 }
0x2ce1   :  { %v1460_v63 = vpop.permute.xlu1 %1459 }
0x2ce2   :  { %v1463_v53 = vsel %vm903_vm9, %v1462_v14, %v1460_v63 }
0x2ce3   :  { %3720 = vst.msk [vmem:[%s5630_s15] sm:$0xc] %vm1465_vm12, %v1463_v53 }
0x2ce5   :  { %v2582_v7 = vpop.permute.xlu1 %2581 }
0x2ce6   :  { %v2585_v54 = vsel %vm903_vm9, %v2584_v6, %v2582_v7 }
0x2ce7   :  { %3738 = vst.msk [vmem:[%s5630_s15] sm:$0xc0] %vm2587_vm13, %v2585_v54 }
0x2d4a   :  { %v3673_v15 = vpop.permute.xlu1 %3672 }
0x2d4b   :  { %v3690_v60 = vsel %vm67_vm0, %v3673_v15, %v5524_v44 }
0x2d4e   :  { %v3688_v56 = vpop.permute.xlu1 %3687 }
0x2d4f   :  { %v3691_v17 = vsel %vm903_vm9, %v3690_v60, %v3688_v56 }
0x2d50   :  { %3756 = vst.msk [vmem:[%s5630_s15 + $0x8] sm:$0xc] %vm1465_vm12, %v3691_v17 }

</bundles_post_ra>
